<compile_context>
chip_gen: v7x
topology: tpu7x:2x2x1
jax: 0.10.0
libtpu: 0.0.40
codegen_flags: <defaults>
</compile_context>

<pallas_src>
import functools

import jax
import jax.numpy as jnp
from jax import lax
from jax.experimental import pallas as pl
from jax.experimental.pallas import tpu as pltpu


def _outnet_kernel(x_ref, w3_ref, b3_ref, w1_ref, b1_ref, m_ref, o_ref, *, W):
    # x_ref : (bt, C, HW)   channel-major input block (lane axis = H*W)
    # w3_ref: (9, 3C, C)    fused 3x3 conv weights, tap-major
    # b3_ref: (3C, 1)
    # w1_ref: (9, 3C)       block-diagonal fused 1x1 head weights
    # b1_ref: (9, 1)
    # m_ref : (9, 1, HW)    0/1 boundary masks per tap
    # o_ref : (bt, 9, HW)   lane-dense output block (NCHW after a free reshape)
    bt, C, HW = x_ref.shape

    # Static tap table: (tap index, lane-roll amount).  Center tap (k == 4)
    # needs neither roll nor mask.
    off_taps = []
    for k in range(9):
        dy, dx = k // 3 - 1, k % 3 - 1
        if dy == 0 and dx == 0:
            continue
        off_taps.append((k, (-(dy * W + dx)) % HW))

    def one_image(b, carry):
        xi = x_ref[b]                                             # (C, HW)
        # Center tap initializes the accumulator (saves a zeros + add).
        acc = jnp.dot(w3_ref[4], xi, preferred_element_type=jnp.float32)
        for k, shift in off_taps:
            # Shift by (dy*W + dx) along the flattened H*W lane axis; the mask
            # zeroes lanes whose shifted source fell outside the image
            # ("same" padding semantics, including row-wrap positions).
            shifted = pltpu.roll(xi, shift, axis=1) * m_ref[k]    # XLU + VPU
            acc = acc + jnp.dot(w3_ref[k], shifted,
                                preferred_element_type=jnp.float32)
        act = acc + b3_ref[...]                                   # (3C, HW)
        # ELU, alpha = 1.0 (torch.nn.functional.elu default); overflow-safe.
        act = jnp.where(act > 0, act, jnp.exp(jnp.minimum(act, 0.0)) - 1.0)
        out = jnp.dot(w1_ref[...], act,
                      preferred_element_type=jnp.float32) + b1_ref[...]
        o_ref[b] = out.astype(o_ref.dtype)                        # (9, HW)
        return carry

    lax.fori_loop(0, bt, one_image, 0, unroll=min(bt, 4))


def _tile_config(n, c, hw):
    """Generation-aware batch tile + VMEM limit.

    v7x : 2 TensorCores, 64 MiB VMEM  -> keep >= 1 grid step per core,
          ~16 MiB block budget, vmem_limit ~48 MiB.
    v5e/v6e: 1 TensorCore, 128 MiB    -> one big grid step is best,
          ~32 MiB block budget.
    """
    vmem_cap = 64 << 20                      # conservative fallback (= v7x)
    try:
        vmem_cap = int(pltpu.get_tpu_info().vmem_capacity_bytes)
    except Exception:
        pass
    num_tc = 1
    try:
        if "v7" in jax.devices()[0].device_kind.lower():
            num_tc = 2
    except Exception:
        pass

    per_img = 4 * 2 * (c + 16) * hw          # double-buffered f32 in/out blocks
    fixed = 4 * 2 * (9 * 3 * c * c + 3 * c + 9 * 3 * c + 9 + 9 * hw)
    budget = max(per_img, vmem_cap // 4 - fixed)
    bt = max(1, min(n, budget // per_img))
    if num_tc > 1:                           # >= one grid step per TensorCore
        bt = min(bt, max(1, n // num_tc))
    while bt > 1 and n % bt != 0:            # keep the grid exact
        bt -= 1
    vmem_limit = int(min(vmem_cap * 3 // 4, 96 << 20))
    return bt, vmem_limit


def outnet_forward(params, x_nchw):
    """Input/outputs follow the PyTorch module: NCHW in, dict of NCHW out."""
    x = x_nchw.astype(jnp.float32)
    n, c, h, w = x.shape
    hw = h * w
    x = x.reshape(n, c, hw)                                   # free, stays NCHW

    # --- fuse the three branches' weights (cheap; fused by XLA under jit) ----
    # Params "*_out_w" are (9, C, C) laid out (tap, in, out).
    w3 = jnp.concatenate([params["p_out_w"], params["xyzi_out_w"],
                          params["xyzis_out1_w"]], axis=-1)   # (9, C, 3C)
    w3 = jnp.transpose(w3, (0, 2, 1))                         # (9, 3C, C)
    b3 = jnp.concatenate([params["p_out_b"], params["xyzi_out_b"],
                          params["xyzis_out1_b"]], axis=-1).T  # (3C, 1)
    # Block-diagonal fused 1x1 heads: rows = [p | xyzi(4) | xyzi_sig(4)].
    w1 = jnp.zeros((9, 3 * c), jnp.float32)
    w1 = w1.at[0:1, 0:c].set(params["p_out1_w"].T)
    w1 = w1.at[1:5, c:2 * c].set(params["xyzi_out1_w"].T)
    w1 = w1.at[5:9, 2 * c:3 * c].set(params["xyzis_out2_w"].T)
    b1 = jnp.concatenate([params["p_out1_b"], params["xyzi_out1_b"],
                          params["xyzis_out2_b"]], axis=-1).T  # (9, 1)

    # --- per-tap boundary masks over the flattened H*W lane axis -------------
    lane = jnp.arange(hw, dtype=jnp.int32)
    row, col = lane // w, lane % w
    masks = []
    for k in range(9):
        dy, dx = k // 3 - 1, k % 3 - 1
        valid = ((row + dy >= 0) & (row + dy < h) &
                 (col + dx >= 0) & (col + dx < w))
        masks.append(valid)
    masks = jnp.stack(masks).astype(jnp.float32).reshape(9, 1, hw)

    bt, vmem_limit = _tile_config(n, c, hw)
    assert n % bt == 0

    out = pl.pallas_call(
        functools.partial(_outnet_kernel, W=w),
        out_shape=jax.ShapeDtypeStruct((n, 9, hw), jnp.float32),
        grid_spec=pltpu.PrefetchScalarGridSpec(
            num_scalar_prefetch=0,
            grid=(n // bt,),
            in_specs=[
                pl.BlockSpec((bt, c, hw), lambda i: (i, 0, 0)),       # x
                pl.BlockSpec((9, 3 * c, c), lambda i: (0, 0, 0)),     # w3
                pl.BlockSpec((3 * c, 1), lambda i: (0, 0)),           # b3
                pl.BlockSpec((9, 3 * c), lambda i: (0, 0)),           # w1
                pl.BlockSpec((9, 1), lambda i: (0, 0)),               # b1
                pl.BlockSpec((9, 1, hw), lambda i: (0, 0, 0)),        # masks
            ],
            out_specs=pl.BlockSpec((bt, 9, hw), lambda i: (i, 0, 0)),
        ),
        compiler_params=pltpu.CompilerParams(
            dimension_semantics=("parallel",),     # megacore over batch tiles
            vmem_limit_bytes=vmem_limit,
        ),
    )(x, w3, b3, w1, b1, masks)

    out = out.reshape(n, 9, h, w)                  # already NCHW: free reshape
    return {"p": out[:, 0:1], "xyzi": out[:, 1:5], "xyzi_sig": out[:, 5:9]}


def init_params(key, C):
    """Deterministic re-implementation of the module's __init__ initializers."""
    ks = jax.random.split(key, 9)

    def kaiming(k, shape, fan_in, gain):
        std = gain / jnp.sqrt(jnp.float32(fan_in))
        return jax.random.normal(k, shape, jnp.float32) * std

    def uniform_bias(k, shape, fan_in):
        bound = 1.0 / jnp.sqrt(jnp.float32(fan_in))
        return jax.random.uniform(k, shape, jnp.float32, -bound, bound)

    g_relu, g_sig, g_tanh = jnp.sqrt(2.0), 1.0, 5.0 / 3.0
    fan3, fan1 = C * 9, C

    return {
        # p branch
        "p_out_w": kaiming(ks[0], (9, C, C), fan3, g_relu),
        "p_out_b": uniform_bias(ks[1], (1, C), fan3),
        "p_out1_w": kaiming(ks[2], (C, 1), fan1, g_sig),
        "p_out1_b": jnp.full((1, 1), -6.0, jnp.float32),
        # xyzi branch
        "xyzi_out_w": kaiming(ks[3], (9, C, C), fan3, g_relu),
        "xyzi_out_b": uniform_bias(ks[4], (1, C), fan3),
        "xyzi_out1_w": kaiming(ks[5], (C, 4), fan1, g_tanh),
        "xyzi_out1_b": jnp.zeros((1, 4), jnp.float32),
        # xyzi_sig branch
        "xyzis_out1_w": kaiming(ks[6], (9, C, C), fan3, g_relu),
        "xyzis_out1_b": uniform_bias(ks[7], (1, C), fan3),
        "xyzis_out2_w": kaiming(ks[8], (C, 4), fan1, g_sig),
        "xyzis_out2_b": jnp.zeros((1, 4), jnp.float32),
    }


def _ref_branch(x_nhwc, w3, b3, w1, b1):
    """Pure-JAX reference (SAME-pad 3x3 conv -> ELU -> 1x1 conv)."""
    C = x_nhwc.shape[-1]
    y = lax.conv_general_dilated(
        x_nhwc, w3.reshape(3, 3, C, C), (1, 1), "SAME",
        dimension_numbers=("NHWC", "HWIO", "NHWC")) + b3[0]
    y = jax.nn.elu(y)
    return jnp.einsum("nhwc,cd->nhwd", y, w1) + b1[0]


if __name__ == "__main__":
    key = jax.random.PRNGKey(0)
    k_param, k_x = jax.random.split(key)

    N, C, H, W = 2, 32, 16, 16
    params = init_params(k_param, C)
    x = jax.random.normal(k_x, (N, C, H, W), jnp.float32)          # NCHW input

    fwd = jax.jit(outnet_forward)
    outs = jax.block_until_ready(fwd(params, x))

    # Correctness check vs. plain-JAX reference.
    x_nhwc = jnp.transpose(x, (0, 2, 3, 1))
    refs = {
        "p": _ref_branch(x_nhwc, params["p_out_w"], params["p_out_b"],
                         params["p_out1_w"], params["p_out1_b"]),
        "xyzi": _ref_branch(x_nhwc, params["xyzi_out_w"], params["xyzi_out_b"],
                            params["xyzi_out1_w"], params["xyzi_out1_b"]),
        "xyzi_sig": _ref_branch(x_nhwc, params["xyzis_out1_w"], params["xyzis_out1_b"],
                                params["xyzis_out2_w"], params["xyzis_out2_b"]),
    }
    for name in ("p", "xyzi", "xyzi_sig"):
        got = jnp.transpose(outs[name], (0, 2, 3, 1))
        assert got.shape == refs[name].shape, (name, got.shape, refs[name].shape)
        assert jnp.allclose(got, refs[name], rtol=1e-3, atol=1e-3), name

    print("KERNEL_OK")
</pallas_src>

<mosaic_0001>
module attributes {stable_mosaic.version = 11 : i64} {
  func.func @_outnet_kernel(%arg0: i32, %arg1: memref<2x32x256xf32, #tpu.memory_space<vmem>>, %arg2: memref<9x96x32xf32, #tpu.memory_space<vmem>>, %arg3: memref<96x1xf32, #tpu.memory_space<vmem>>, %arg4: memref<9x96xf32, #tpu.memory_space<vmem>>, %arg5: memref<9x1xf32, #tpu.memory_space<vmem>>, %arg6: memref<9x1x256xf32, #tpu.memory_space<vmem>>, %arg7: memref<2x9x256xf32, #tpu.memory_space<vmem>>) attributes {dimension_semantics = [#tpu.dimension_semantics<parallel>], iteration_bounds = array<i64: 1>, scalar_prefetch = 0 : i64, scratch_operands = 0 : i64, tpu.core_type = #tpu.core_type<tc>, window_params = [{transform_indices = @transform_0, window_bounds = array<i64: 2, 32, 256>}, {pipeline_mode = #tpu.pipeline_mode<synchronous>, transform_indices = @transform_1, window_bounds = array<i64: 9, 96, 32>}, {pipeline_mode = #tpu.pipeline_mode<synchronous>, transform_indices = @transform_2, window_bounds = array<i64: 96, 1>}, {pipeline_mode = #tpu.pipeline_mode<synchronous>, transform_indices = @transform_3, window_bounds = array<i64: 9, 96>}, {pipeline_mode = #tpu.pipeline_mode<synchronous>, transform_indices = @transform_4, window_bounds = array<i64: 9, 1>}, {pipeline_mode = #tpu.pipeline_mode<synchronous>, transform_indices = @transform_5, window_bounds = array<i64: 9, 1, 256>}, {transform_indices = @transform_6, window_bounds = array<i64: 2, 9, 256>}]} {
    %c0_i32 = arith.constant 0 : i32
    %0 = arith.index_cast %c0_i32 : i32 to index
    %c0 = arith.constant 0 : index
    %c0_0 = arith.constant 0 : index
    %1 = vector.load %arg1[%0, %c0, %c0_0] : memref<2x32x256xf32, #tpu.memory_space<vmem>>, vector<1x32x256xf32>
    %2 = vector.shape_cast %1 : vector<1x32x256xf32> to vector<32x256xf32>
    %c4 = arith.constant 4 : index
    %c0_1 = arith.constant 0 : index
    %c0_2 = arith.constant 0 : index
    %3 = vector.load %arg2[%c4, %c0_1, %c0_2] : memref<9x96x32xf32, #tpu.memory_space<vmem>>, vector<1x96x32xf32>
    %4 = vector.shape_cast %3 : vector<1x96x32xf32> to vector<96x32xf32>
    %cst = arith.constant dense<0.000000e+00> : vector<96x256xf32>
    %5 = tpu.matmul %4, %2, %cst {dimension_numbers = #tpu.dot_dimension_numbers<[1], [0], [0], [1], [0, 0, 1, 1], [], []>} : vector<96x32xf32>, vector<32x256xf32>, vector<96x256xf32> -> vector<96x256xf32>
    %c17_i32 = arith.constant 17 : i32
    %6 = tpu.dynamic_rotate %2 by %c17_i32 dim 1 : vector<32x256xf32>, i32 -> vector<32x256xf32>
    %c0_3 = arith.constant 0 : index
    %c0_4 = arith.constant 0 : index
    %c0_5 = arith.constant 0 : index
    %7 = vector.load %arg6[%c0_3, %c0_4, %c0_5] : memref<9x1x256xf32, #tpu.memory_space<vmem>>, vector<1x1x256xf32>
    %8 = vector.shape_cast %7 : vector<1x1x256xf32> to vector<1x256xf32>
    %9 = vector.broadcast %8 : vector<1x256xf32> to vector<32x256xf32>
    %10 = arith.mulf %6, %9 : vector<32x256xf32>
    %c0_6 = arith.constant 0 : index
    %c0_7 = arith.constant 0 : index
    %c0_8 = arith.constant 0 : index
    %11 = vector.load %arg2[%c0_6, %c0_7, %c0_8] : memref<9x96x32xf32, #tpu.memory_space<vmem>>, vector<1x96x32xf32>
    %12 = vector.shape_cast %11 : vector<1x96x32xf32> to vector<96x32xf32>
    %cst_9 = arith.constant dense<0.000000e+00> : vector<96x256xf32>
    %13 = tpu.matmul %12, %10, %cst_9 {dimension_numbers = #tpu.dot_dimension_numbers<[1], [0], [0], [1], [0, 0, 1, 1], [], []>} : vector<96x32xf32>, vector<32x256xf32>, vector<96x256xf32> -> vector<96x256xf32>
    %14 = arith.addf %5, %13 : vector<96x256xf32>
    %c16_i32 = arith.constant 16 : i32
    %15 = tpu.dynamic_rotate %2 by %c16_i32 dim 1 : vector<32x256xf32>, i32 -> vector<32x256xf32>
    %c1 = arith.constant 1 : index
    %c0_10 = arith.constant 0 : index
    %c0_11 = arith.constant 0 : index
    %16 = vector.load %arg6[%c1, %c0_10, %c0_11] : memref<9x1x256xf32, #tpu.memory_space<vmem>>, vector<1x1x256xf32>
    %17 = vector.shape_cast %16 : vector<1x1x256xf32> to vector<1x256xf32>
    %18 = vector.broadcast %17 : vector<1x256xf32> to vector<32x256xf32>
    %19 = arith.mulf %15, %18 : vector<32x256xf32>
    %c1_12 = arith.constant 1 : index
    %c0_13 = arith.constant 0 : index
    %c0_14 = arith.constant 0 : index
    %20 = vector.load %arg2[%c1_12, %c0_13, %c0_14] : memref<9x96x32xf32, #tpu.memory_space<vmem>>, vector<1x96x32xf32>
    %21 = vector.shape_cast %20 : vector<1x96x32xf32> to vector<96x32xf32>
    %cst_15 = arith.constant dense<0.000000e+00> : vector<96x256xf32>
    %22 = tpu.matmul %21, %19, %cst_15 {dimension_numbers = #tpu.dot_dimension_numbers<[1], [0], [0], [1], [0, 0, 1, 1], [], []>} : vector<96x32xf32>, vector<32x256xf32>, vector<96x256xf32> -> vector<96x256xf32>
    %23 = arith.addf %14, %22 : vector<96x256xf32>
    %c15_i32 = arith.constant 15 : i32
    %24 = tpu.dynamic_rotate %2 by %c15_i32 dim 1 : vector<32x256xf32>, i32 -> vector<32x256xf32>
    %c2 = arith.constant 2 : index
    %c0_16 = arith.constant 0 : index
    %c0_17 = arith.constant 0 : index
    %25 = vector.load %arg6[%c2, %c0_16, %c0_17] : memref<9x1x256xf32, #tpu.memory_space<vmem>>, vector<1x1x256xf32>
    %26 = vector.shape_cast %25 : vector<1x1x256xf32> to vector<1x256xf32>
    %27 = vector.broadcast %26 : vector<1x256xf32> to vector<32x256xf32>
    %28 = arith.mulf %24, %27 : vector<32x256xf32>
    %c2_18 = arith.constant 2 : index
    %c0_19 = arith.constant 0 : index
    %c0_20 = arith.constant 0 : index
    %29 = vector.load %arg2[%c2_18, %c0_19, %c0_20] : memref<9x96x32xf32, #tpu.memory_space<vmem>>, vector<1x96x32xf32>
    %30 = vector.shape_cast %29 : vector<1x96x32xf32> to vector<96x32xf32>
    %cst_21 = arith.constant dense<0.000000e+00> : vector<96x256xf32>
    %31 = tpu.matmul %30, %28, %cst_21 {dimension_numbers = #tpu.dot_dimension_numbers<[1], [0], [0], [1], [0, 0, 1, 1], [], []>} : vector<96x32xf32>, vector<32x256xf32>, vector<96x256xf32> -> vector<96x256xf32>
    %32 = arith.addf %23, %31 : vector<96x256xf32>
    %c1_i32 = arith.constant 1 : i32
    %33 = tpu.dynamic_rotate %2 by %c1_i32 dim 1 : vector<32x256xf32>, i32 -> vector<32x256xf32>
    %c3 = arith.constant 3 : index
    %c0_22 = arith.constant 0 : index
    %c0_23 = arith.constant 0 : index
    %34 = vector.load %arg6[%c3, %c0_22, %c0_23] : memref<9x1x256xf32, #tpu.memory_space<vmem>>, vector<1x1x256xf32>
    %35 = vector.shape_cast %34 : vector<1x1x256xf32> to vector<1x256xf32>
    %36 = vector.broadcast %35 : vector<1x256xf32> to vector<32x256xf32>
    %37 = arith.mulf %33, %36 : vector<32x256xf32>
    %c3_24 = arith.constant 3 : index
    %c0_25 = arith.constant 0 : index
    %c0_26 = arith.constant 0 : index
    %38 = vector.load %arg2[%c3_24, %c0_25, %c0_26] : memref<9x96x32xf32, #tpu.memory_space<vmem>>, vector<1x96x32xf32>
    %39 = vector.shape_cast %38 : vector<1x96x32xf32> to vector<96x32xf32>
    %cst_27 = arith.constant dense<0.000000e+00> : vector<96x256xf32>
    %40 = tpu.matmul %39, %37, %cst_27 {dimension_numbers = #tpu.dot_dimension_numbers<[1], [0], [0], [1], [0, 0, 1, 1], [], []>} : vector<96x32xf32>, vector<32x256xf32>, vector<96x256xf32> -> vector<96x256xf32>
    %41 = arith.addf %32, %40 : vector<96x256xf32>
    %c255_i32 = arith.constant 255 : i32
    %42 = tpu.dynamic_rotate %2 by %c255_i32 dim 1 : vector<32x256xf32>, i32 -> vector<32x256xf32>
    %c5 = arith.constant 5 : index
    %c0_28 = arith.constant 0 : index
    %c0_29 = arith.constant 0 : index
    %43 = vector.load %arg6[%c5, %c0_28, %c0_29] : memref<9x1x256xf32, #tpu.memory_space<vmem>>, vector<1x1x256xf32>
    %44 = vector.shape_cast %43 : vector<1x1x256xf32> to vector<1x256xf32>
    %45 = vector.broadcast %44 : vector<1x256xf32> to vector<32x256xf32>
    %46 = arith.mulf %42, %45 : vector<32x256xf32>
    %c5_30 = arith.constant 5 : index
    %c0_31 = arith.constant 0 : index
    %c0_32 = arith.constant 0 : index
    %47 = vector.load %arg2[%c5_30, %c0_31, %c0_32] : memref<9x96x32xf32, #tpu.memory_space<vmem>>, vector<1x96x32xf32>
    %48 = vector.shape_cast %47 : vector<1x96x32xf32> to vector<96x32xf32>
    %cst_33 = arith.constant dense<0.000000e+00> : vector<96x256xf32>
    %49 = tpu.matmul %48, %46, %cst_33 {dimension_numbers = #tpu.dot_dimension_numbers<[1], [0], [0], [1], [0, 0, 1, 1], [], []>} : vector<96x32xf32>, vector<32x256xf32>, vector<96x256xf32> -> vector<96x256xf32>
    %50 = arith.addf %41, %49 : vector<96x256xf32>
    %c241_i32 = arith.constant 241 : i32
    %51 = tpu.dynamic_rotate %2 by %c241_i32 dim 1 : vector<32x256xf32>, i32 -> vector<32x256xf32>
    %c6 = arith.constant 6 : index
    %c0_34 = arith.constant 0 : index
    %c0_35 = arith.constant 0 : index
    %52 = vector.load %arg6[%c6, %c0_34, %c0_35] : memref<9x1x256xf32, #tpu.memory_space<vmem>>, vector<1x1x256xf32>
    %53 = vector.shape_cast %52 : vector<1x1x256xf32> to vector<1x256xf32>
    %54 = vector.broadcast %53 : vector<1x256xf32> to vector<32x256xf32>
    %55 = arith.mulf %51, %54 : vector<32x256xf32>
    %c6_36 = arith.constant 6 : index
    %c0_37 = arith.constant 0 : index
    %c0_38 = arith.constant 0 : index
    %56 = vector.load %arg2[%c6_36, %c0_37, %c0_38] : memref<9x96x32xf32, #tpu.memory_space<vmem>>, vector<1x96x32xf32>
    %57 = vector.shape_cast %56 : vector<1x96x32xf32> to vector<96x32xf32>
    %cst_39 = arith.constant dense<0.000000e+00> : vector<96x256xf32>
    %58 = tpu.matmul %57, %55, %cst_39 {dimension_numbers = #tpu.dot_dimension_numbers<[1], [0], [0], [1], [0, 0, 1, 1], [], []>} : vector<96x32xf32>, vector<32x256xf32>, vector<96x256xf32> -> vector<96x256xf32>
    %59 = arith.addf %50, %58 : vector<96x256xf32>
    %c240_i32 = arith.constant 240 : i32
    %60 = tpu.dynamic_rotate %2 by %c240_i32 dim 1 : vector<32x256xf32>, i32 -> vector<32x256xf32>
    %c7 = arith.constant 7 : index
    %c0_40 = arith.constant 0 : index
    %c0_41 = arith.constant 0 : index
    %61 = vector.load %arg6[%c7, %c0_40, %c0_41] : memref<9x1x256xf32, #tpu.memory_space<vmem>>, vector<1x1x256xf32>
    %62 = vector.shape_cast %61 : vector<1x1x256xf32> to vector<1x256xf32>
    %63 = vector.broadcast %62 : vector<1x256xf32> to vector<32x256xf32>
    %64 = arith.mulf %60, %63 : vector<32x256xf32>
    %c7_42 = arith.constant 7 : index
    %c0_43 = arith.constant 0 : index
    %c0_44 = arith.constant 0 : index
    %65 = vector.load %arg2[%c7_42, %c0_43, %c0_44] : memref<9x96x32xf32, #tpu.memory_space<vmem>>, vector<1x96x32xf32>
    %66 = vector.shape_cast %65 : vector<1x96x32xf32> to vector<96x32xf32>
    %cst_45 = arith.constant dense<0.000000e+00> : vector<96x256xf32>
    %67 = tpu.matmul %66, %64, %cst_45 {dimension_numbers = #tpu.dot_dimension_numbers<[1], [0], [0], [1], [0, 0, 1, 1], [], []>} : vector<96x32xf32>, vector<32x256xf32>, vector<96x256xf32> -> vector<96x256xf32>
    %68 = arith.addf %59, %67 : vector<96x256xf32>
    %c239_i32 = arith.constant 239 : i32
    %69 = tpu.dynamic_rotate %2 by %c239_i32 dim 1 : vector<32x256xf32>, i32 -> vector<32x256xf32>
    %c8 = arith.constant 8 : index
    %c0_46 = arith.constant 0 : index
    %c0_47 = arith.constant 0 : index
    %70 = vector.load %arg6[%c8, %c0_46, %c0_47] : memref<9x1x256xf32, #tpu.memory_space<vmem>>, vector<1x1x256xf32>
    %71 = vector.shape_cast %70 : vector<1x1x256xf32> to vector<1x256xf32>
    %72 = vector.broadcast %71 : vector<1x256xf32> to vector<32x256xf32>
    %73 = arith.mulf %69, %72 : vector<32x256xf32>
    %c8_48 = arith.constant 8 : index
    %c0_49 = arith.constant 0 : index
    %c0_50 = arith.constant 0 : index
    %74 = vector.load %arg2[%c8_48, %c0_49, %c0_50] : memref<9x96x32xf32, #tpu.memory_space<vmem>>, vector<1x96x32xf32>
    %75 = vector.shape_cast %74 : vector<1x96x32xf32> to vector<96x32xf32>
    %cst_51 = arith.constant dense<0.000000e+00> : vector<96x256xf32>
    %76 = tpu.matmul %75, %73, %cst_51 {dimension_numbers = #tpu.dot_dimension_numbers<[1], [0], [0], [1], [0, 0, 1, 1], [], []>} : vector<96x32xf32>, vector<32x256xf32>, vector<96x256xf32> -> vector<96x256xf32>
    %77 = arith.addf %68, %76 : vector<96x256xf32>
    %c0_52 = arith.constant 0 : index
    %c0_53 = arith.constant 0 : index
    %78 = vector.load %arg3[%c0_52, %c0_53] : memref<96x1xf32, #tpu.memory_space<vmem>>, vector<96x1xf32>
    %79 = vector.broadcast %78 : vector<96x1xf32> to vector<96x256xf32>
    %80 = arith.addf %77, %79 : vector<96x256xf32>
    %cst_54 = arith.constant 0.000000e+00 : f32
    %81 = vector.broadcast %cst_54 : f32 to vector<96x256xf32>
    %82 = arith.cmpf ogt, %80, %81 : vector<96x256xf32>
    %cst_55 = arith.constant 0.000000e+00 : f32
    %83 = vector.broadcast %cst_55 : f32 to vector<96x256xf32>
    %84 = arith.minimumf %80, %83 : vector<96x256xf32>
    %85 = math.exp %84 : vector<96x256xf32>
    %cst_56 = arith.constant 1.000000e+00 : f32
    %86 = vector.broadcast %cst_56 : f32 to vector<96x256xf32>
    %87 = arith.subf %85, %86 : vector<96x256xf32>
    %88 = arith.select %82, %80, %87 : vector<96x256xi1>, vector<96x256xf32>
    %c0_57 = arith.constant 0 : index
    %c0_58 = arith.constant 0 : index
    %89 = vector.load %arg4[%c0_57, %c0_58] : memref<9x96xf32, #tpu.memory_space<vmem>>, vector<9x96xf32>
    %cst_59 = arith.constant dense<0.000000e+00> : vector<9x256xf32>
    %90 = tpu.matmul %89, %88, %cst_59 {dimension_numbers = #tpu.dot_dimension_numbers<[1], [0], [0], [1], [0, 0, 1, 1], [], []>} : vector<9x96xf32>, vector<96x256xf32>, vector<9x256xf32> -> vector<9x256xf32>
    %c0_60 = arith.constant 0 : index
    %c0_61 = arith.constant 0 : index
    %91 = vector.load %arg5[%c0_60, %c0_61] : memref<9x1xf32, #tpu.memory_space<vmem>>, vector<9x1xf32>
    %92 = vector.broadcast %91 : vector<9x1xf32> to vector<9x256xf32>
    %93 = arith.addf %90, %92 : vector<9x256xf32>
    %94 = arith.index_cast %c0_i32 : i32 to index
    %c0_62 = arith.constant 0 : index
    %c0_63 = arith.constant 0 : index
    %95 = vector.load %arg7[%94, %c0_62, %c0_63] : memref<2x9x256xf32, #tpu.memory_space<vmem>>, vector<1x9x256xf32>
    %96 = vector.shape_cast %95 : vector<1x9x256xf32> to vector<9x256xf32>
    %97 = vector.shape_cast %93 : vector<9x256xf32> to vector<1x9x256xf32>
    tpu.vector_store %arg7[%94, %c0_62, %c0_63], %97 {strides = array<i32>} : memref<2x9x256xf32, #tpu.memory_space<vmem>>, vector<1x9x256xf32>,
    %c1_i32_64 = arith.constant 1 : i32
    %98 = arith.index_cast %c1_i32_64 : i32 to index
    %c0_65 = arith.constant 0 : index
    %c0_66 = arith.constant 0 : index
    %99 = vector.load %arg1[%98, %c0_65, %c0_66] : memref<2x32x256xf32, #tpu.memory_space<vmem>>, vector<1x32x256xf32>
    %100 = vector.shape_cast %99 : vector<1x32x256xf32> to vector<32x256xf32>
    %c4_67 = arith.constant 4 : index
    %c0_68 = arith.constant 0 : index
    %c0_69 = arith.constant 0 : index
    %101 = vector.load %arg2[%c4_67, %c0_68, %c0_69] : memref<9x96x32xf32, #tpu.memory_space<vmem>>, vector<1x96x32xf32>
    %102 = vector.shape_cast %101 : vector<1x96x32xf32> to vector<96x32xf32>
    %cst_70 = arith.constant dense<0.000000e+00> : vector<96x256xf32>
    %103 = tpu.matmul %102, %100, %cst_70 {dimension_numbers = #tpu.dot_dimension_numbers<[1], [0], [0], [1], [0, 0, 1, 1], [], []>} : vector<96x32xf32>, vector<32x256xf32>, vector<96x256xf32> -> vector<96x256xf32>
    %c17_i32_71 = arith.constant 17 : i32
    %104 = tpu.dynamic_rotate %100 by %c17_i32_71 dim 1 : vector<32x256xf32>, i32 -> vector<32x256xf32>
    %c0_72 = arith.constant 0 : index
    %c0_73 = arith.constant 0 : index
    %c0_74 = arith.constant 0 : index
    %105 = vector.load %arg6[%c0_72, %c0_73, %c0_74] : memref<9x1x256xf32, #tpu.memory_space<vmem>>, vector<1x1x256xf32>
    %106 = vector.shape_cast %105 : vector<1x1x256xf32> to vector<1x256xf32>
    %107 = vector.broadcast %106 : vector<1x256xf32> to vector<32x256xf32>
    %108 = arith.mulf %104, %107 : vector<32x256xf32>
    %c0_75 = arith.constant 0 : index
    %c0_76 = arith.constant 0 : index
    %c0_77 = arith.constant 0 : index
    %109 = vector.load %arg2[%c0_75, %c0_76, %c0_77] : memref<9x96x32xf32, #tpu.memory_space<vmem>>, vector<1x96x32xf32>
    %110 = vector.shape_cast %109 : vector<1x96x32xf32> to vector<96x32xf32>
    %cst_78 = arith.constant dense<0.000000e+00> : vector<96x256xf32>
    %111 = tpu.matmul %110, %108, %cst_78 {dimension_numbers = #tpu.dot_dimension_numbers<[1], [0], [0], [1], [0, 0, 1, 1], [], []>} : vector<96x32xf32>, vector<32x256xf32>, vector<96x256xf32> -> vector<96x256xf32>
    %112 = arith.addf %103, %111 : vector<96x256xf32>
    %c16_i32_79 = arith.constant 16 : i32
    %113 = tpu.dynamic_rotate %100 by %c16_i32_79 dim 1 : vector<32x256xf32>, i32 -> vector<32x256xf32>
    %c1_80 = arith.constant 1 : index
    %c0_81 = arith.constant 0 : index
    %c0_82 = arith.constant 0 : index
    %114 = vector.load %arg6[%c1_80, %c0_81, %c0_82] : memref<9x1x256xf32, #tpu.memory_space<vmem>>, vector<1x1x256xf32>
    %115 = vector.shape_cast %114 : vector<1x1x256xf32> to vector<1x256xf32>
    %116 = vector.broadcast %115 : vector<1x256xf32> to vector<32x256xf32>
    %117 = arith.mulf %113, %116 : vector<32x256xf32>
    %c1_83 = arith.constant 1 : index
    %c0_84 = arith.constant 0 : index
    %c0_85 = arith.constant 0 : index
    %118 = vector.load %arg2[%c1_83, %c0_84, %c0_85] : memref<9x96x32xf32, #tpu.memory_space<vmem>>, vector<1x96x32xf32>
    %119 = vector.shape_cast %118 : vector<1x96x32xf32> to vector<96x32xf32>
    %cst_86 = arith.constant dense<0.000000e+00> : vector<96x256xf32>
    %120 = tpu.matmul %119, %117, %cst_86 {dimension_numbers = #tpu.dot_dimension_numbers<[1], [0], [0], [1], [0, 0, 1, 1], [], []>} : vector<96x32xf32>, vector<32x256xf32>, vector<96x256xf32> -> vector<96x256xf32>
    %121 = arith.addf %112, %120 : vector<96x256xf32>
    %c15_i32_87 = arith.constant 15 : i32
    %122 = tpu.dynamic_rotate %100 by %c15_i32_87 dim 1 : vector<32x256xf32>, i32 -> vector<32x256xf32>
    %c2_88 = arith.constant 2 : index
    %c0_89 = arith.constant 0 : index
    %c0_90 = arith.constant 0 : index
    %123 = vector.load %arg6[%c2_88, %c0_89, %c0_90] : memref<9x1x256xf32, #tpu.memory_space<vmem>>, vector<1x1x256xf32>
    %124 = vector.shape_cast %123 : vector<1x1x256xf32> to vector<1x256xf32>
    %125 = vector.broadcast %124 : vector<1x256xf32> to vector<32x256xf32>
    %126 = arith.mulf %122, %125 : vector<32x256xf32>
    %c2_91 = arith.constant 2 : index
    %c0_92 = arith.constant 0 : index
    %c0_93 = arith.constant 0 : index
    %127 = vector.load %arg2[%c2_91, %c0_92, %c0_93] : memref<9x96x32xf32, #tpu.memory_space<vmem>>, vector<1x96x32xf32>
    %128 = vector.shape_cast %127 : vector<1x96x32xf32> to vector<96x32xf32>
    %cst_94 = arith.constant dense<0.000000e+00> : vector<96x256xf32>
    %129 = tpu.matmul %128, %126, %cst_94 {dimension_numbers = #tpu.dot_dimension_numbers<[1], [0], [0], [1], [0, 0, 1, 1], [], []>} : vector<96x32xf32>, vector<32x256xf32>, vector<96x256xf32> -> vector<96x256xf32>
    %130 = arith.addf %121, %129 : vector<96x256xf32>
    %c1_i32_95 = arith.constant 1 : i32
    %131 = tpu.dynamic_rotate %100 by %c1_i32_95 dim 1 : vector<32x256xf32>, i32 -> vector<32x256xf32>
    %c3_96 = arith.constant 3 : index
    %c0_97 = arith.constant 0 : index
    %c0_98 = arith.constant 0 : index
    %132 = vector.load %arg6[%c3_96, %c0_97, %c0_98] : memref<9x1x256xf32, #tpu.memory_space<vmem>>, vector<1x1x256xf32>
    %133 = vector.shape_cast %132 : vector<1x1x256xf32> to vector<1x256xf32>
    %134 = vector.broadcast %133 : vector<1x256xf32> to vector<32x256xf32>
    %135 = arith.mulf %131, %134 : vector<32x256xf32>
    %c3_99 = arith.constant 3 : index
    %c0_100 = arith.constant 0 : index
    %c0_101 = arith.constant 0 : index
    %136 = vector.load %arg2[%c3_99, %c0_100, %c0_101] : memref<9x96x32xf32, #tpu.memory_space<vmem>>, vector<1x96x32xf32>
    %137 = vector.shape_cast %136 : vector<1x96x32xf32> to vector<96x32xf32>
    %cst_102 = arith.constant dense<0.000000e+00> : vector<96x256xf32>
    %138 = tpu.matmul %137, %135, %cst_102 {dimension_numbers = #tpu.dot_dimension_numbers<[1], [0], [0], [1], [0, 0, 1, 1], [], []>} : vector<96x32xf32>, vector<32x256xf32>, vector<96x256xf32> -> vector<96x256xf32>
    %139 = arith.addf %130, %138 : vector<96x256xf32>
    %c255_i32_103 = arith.constant 255 : i32
    %140 = tpu.dynamic_rotate %100 by %c255_i32_103 dim 1 : vector<32x256xf32>, i32 -> vector<32x256xf32>
    %c5_104 = arith.constant 5 : index
    %c0_105 = arith.constant 0 : index
    %c0_106 = arith.constant 0 : index
    %141 = vector.load %arg6[%c5_104, %c0_105, %c0_106] : memref<9x1x256xf32, #tpu.memory_space<vmem>>, vector<1x1x256xf32>
    %142 = vector.shape_cast %141 : vector<1x1x256xf32> to vector<1x256xf32>
    %143 = vector.broadcast %142 : vector<1x256xf32> to vector<32x256xf32>
    %144 = arith.mulf %140, %143 : vector<32x256xf32>
    %c5_107 = arith.constant 5 : index
    %c0_108 = arith.constant 0 : index
    %c0_109 = arith.constant 0 : index
    %145 = vector.load %arg2[%c5_107, %c0_108, %c0_109] : memref<9x96x32xf32, #tpu.memory_space<vmem>>, vector<1x96x32xf32>
    %146 = vector.shape_cast %145 : vector<1x96x32xf32> to vector<96x32xf32>
    %cst_110 = arith.constant dense<0.000000e+00> : vector<96x256xf32>
    %147 = tpu.matmul %146, %144, %cst_110 {dimension_numbers = #tpu.dot_dimension_numbers<[1], [0], [0], [1], [0, 0, 1, 1], [], []>} : vector<96x32xf32>, vector<32x256xf32>, vector<96x256xf32> -> vector<96x256xf32>
    %148 = arith.addf %139, %147 : vector<96x256xf32>
    %c241_i32_111 = arith.constant 241 : i32
    %149 = tpu.dynamic_rotate %100 by %c241_i32_111 dim 1 : vector<32x256xf32>, i32 -> vector<32x256xf32>
    %c6_112 = arith.constant 6 : index
    %c0_113 = arith.constant 0 : index
    %c0_114 = arith.constant 0 : index
    %150 = vector.load %arg6[%c6_112, %c0_113, %c0_114] : memref<9x1x256xf32, #tpu.memory_space<vmem>>, vector<1x1x256xf32>
    %151 = vector.shape_cast %150 : vector<1x1x256xf32> to vector<1x256xf32>
    %152 = vector.broadcast %151 : vector<1x256xf32> to vector<32x256xf32>
    %153 = arith.mulf %149, %152 : vector<32x256xf32>
    %c6_115 = arith.constant 6 : index
    %c0_116 = arith.constant 0 : index
    %c0_117 = arith.constant 0 : index
    %154 = vector.load %arg2[%c6_115, %c0_116, %c0_117] : memref<9x96x32xf32, #tpu.memory_space<vmem>>, vector<1x96x32xf32>
    %155 = vector.shape_cast %154 : vector<1x96x32xf32> to vector<96x32xf32>
    %cst_118 = arith.constant dense<0.000000e+00> : vector<96x256xf32>
    %156 = tpu.matmul %155, %153, %cst_118 {dimension_numbers = #tpu.dot_dimension_numbers<[1], [0], [0], [1], [0, 0, 1, 1], [], []>} : vector<96x32xf32>, vector<32x256xf32>, vector<96x256xf32> -> vector<96x256xf32>
    %157 = arith.addf %148, %156 : vector<96x256xf32>
    %c240_i32_119 = arith.constant 240 : i32
    %158 = tpu.dynamic_rotate %100 by %c240_i32_119 dim 1 : vector<32x256xf32>, i32 -> vector<32x256xf32>
    %c7_120 = arith.constant 7 : index
    %c0_121 = arith.constant 0 : index
    %c0_122 = arith.constant 0 : index
    %159 = vector.load %arg6[%c7_120, %c0_121, %c0_122] : memref<9x1x256xf32, #tpu.memory_space<vmem>>, vector<1x1x256xf32>
    %160 = vector.shape_cast %159 : vector<1x1x256xf32> to vector<1x256xf32>
    %161 = vector.broadcast %160 : vector<1x256xf32> to vector<32x256xf32>
    %162 = arith.mulf %158, %161 : vector<32x256xf32>
    %c7_123 = arith.constant 7 : index
    %c0_124 = arith.constant 0 : index
    %c0_125 = arith.constant 0 : index
    %163 = vector.load %arg2[%c7_123, %c0_124, %c0_125] : memref<9x96x32xf32, #tpu.memory_space<vmem>>, vector<1x96x32xf32>
    %164 = vector.shape_cast %163 : vector<1x96x32xf32> to vector<96x32xf32>
    %cst_126 = arith.constant dense<0.000000e+00> : vector<96x256xf32>
    %165 = tpu.matmul %164, %162, %cst_126 {dimension_numbers = #tpu.dot_dimension_numbers<[1], [0], [0], [1], [0, 0, 1, 1], [], []>} : vector<96x32xf32>, vector<32x256xf32>, vector<96x256xf32> -> vector<96x256xf32>
    %166 = arith.addf %157, %165 : vector<96x256xf32>
    %c239_i32_127 = arith.constant 239 : i32
    %167 = tpu.dynamic_rotate %100 by %c239_i32_127 dim 1 : vector<32x256xf32>, i32 -> vector<32x256xf32>
    %c8_128 = arith.constant 8 : index
    %c0_129 = arith.constant 0 : index
    %c0_130 = arith.constant 0 : index
    %168 = vector.load %arg6[%c8_128, %c0_129, %c0_130] : memref<9x1x256xf32, #tpu.memory_space<vmem>>, vector<1x1x256xf32>
    %169 = vector.shape_cast %168 : vector<1x1x256xf32> to vector<1x256xf32>
    %170 = vector.broadcast %169 : vector<1x256xf32> to vector<32x256xf32>
    %171 = arith.mulf %167, %170 : vector<32x256xf32>
    %c8_131 = arith.constant 8 : index
    %c0_132 = arith.constant 0 : index
    %c0_133 = arith.constant 0 : index
    %172 = vector.load %arg2[%c8_131, %c0_132, %c0_133] : memref<9x96x32xf32, #tpu.memory_space<vmem>>, vector<1x96x32xf32>
    %173 = vector.shape_cast %172 : vector<1x96x32xf32> to vector<96x32xf32>
    %cst_134 = arith.constant dense<0.000000e+00> : vector<96x256xf32>
    %174 = tpu.matmul %173, %171, %cst_134 {dimension_numbers = #tpu.dot_dimension_numbers<[1], [0], [0], [1], [0, 0, 1, 1], [], []>} : vector<96x32xf32>, vector<32x256xf32>, vector<96x256xf32> -> vector<96x256xf32>
    %175 = arith.addf %166, %174 : vector<96x256xf32>
    %c0_135 = arith.constant 0 : index
    %c0_136 = arith.constant 0 : index
    %176 = vector.load %arg3[%c0_135, %c0_136] : memref<96x1xf32, #tpu.memory_space<vmem>>, vector<96x1xf32>
    %177 = vector.broadcast %176 : vector<96x1xf32> to vector<96x256xf32>
    %178 = arith.addf %175, %177 : vector<96x256xf32>
    %cst_137 = arith.constant 0.000000e+00 : f32
    %179 = vector.broadcast %cst_137 : f32 to vector<96x256xf32>
    %180 = arith.cmpf ogt, %178, %179 : vector<96x256xf32>
    %cst_138 = arith.constant 0.000000e+00 : f32
    %181 = vector.broadcast %cst_138 : f32 to vector<96x256xf32>
    %182 = arith.minimumf %178, %181 : vector<96x256xf32>
    %183 = math.exp %182 : vector<96x256xf32>
    %cst_139 = arith.constant 1.000000e+00 : f32
    %184 = vector.broadcast %cst_139 : f32 to vector<96x256xf32>
    %185 = arith.subf %183, %184 : vector<96x256xf32>
    %186 = arith.select %180, %178, %185 : vector<96x256xi1>, vector<96x256xf32>
    %c0_140 = arith.constant 0 : index
    %c0_141 = arith.constant 0 : index
    %187 = vector.load %arg4[%c0_140, %c0_141] : memref<9x96xf32, #tpu.memory_space<vmem>>, vector<9x96xf32>
    %cst_142 = arith.constant dense<0.000000e+00> : vector<9x256xf32>
    %188 = tpu.matmul %187, %186, %cst_142 {dimension_numbers = #tpu.dot_dimension_numbers<[1], [0], [0], [1], [0, 0, 1, 1], [], []>} : vector<9x96xf32>, vector<96x256xf32>, vector<9x256xf32> -> vector<9x256xf32>
    %c0_143 = arith.constant 0 : index
    %c0_144 = arith.constant 0 : index
    %189 = vector.load %arg5[%c0_143, %c0_144] : memref<9x1xf32, #tpu.memory_space<vmem>>, vector<9x1xf32>
    %190 = vector.broadcast %189 : vector<9x1xf32> to vector<9x256xf32>
    %191 = arith.addf %188, %190 : vector<9x256xf32>
    %192 = arith.index_cast %c1_i32_64 : i32 to index
    %c0_145 = arith.constant 0 : index
    %c0_146 = arith.constant 0 : index
    %193 = vector.load %arg7[%192, %c0_145, %c0_146] : memref<2x9x256xf32, #tpu.memory_space<vmem>>, vector<1x9x256xf32>
    %194 = vector.shape_cast %193 : vector<1x9x256xf32> to vector<9x256xf32>
    %195 = vector.shape_cast %191 : vector<9x256xf32> to vector<1x9x256xf32>
    tpu.vector_store %arg7[%192, %c0_145, %c0_146], %195 {strides = array<i32>} : memref<2x9x256xf32, #tpu.memory_space<vmem>>, vector<1x9x256xf32>,
    %c2_i32 = arith.constant 2 : i32
    return
  }
  func.func @transform_0(%arg0: i32) -> (i32, i32, i32) {
    %c0_i32 = arith.constant 0 : i32
    %c0_i32_0 = arith.constant 0 : i32
    %c0_i32_1 = arith.constant 0 : i32
    return %arg0, %c0_i32, %c0_i32_0 : i32, i32, i32
  }
  func.func @transform_1(%arg0: i32) -> (i32, i32, i32) {
    %c0_i32 = arith.constant 0 : i32
    %c0_i32_0 = arith.constant 0 : i32
    %c0_i32_1 = arith.constant 0 : i32
    %c0_i32_2 = arith.constant 0 : i32
    return %c0_i32, %c0_i32_0, %c0_i32_1 : i32, i32, i32
  }
  func.func @transform_2(%arg0: i32) -> (i32, i32) {
    %c0_i32 = arith.constant 0 : i32
    %c0_i32_0 = arith.constant 0 : i32
    %c0_i32_1 = arith.constant 0 : i32
    return %c0_i32, %c0_i32_0 : i32, i32
  }
  func.func @transform_3(%arg0: i32) -> (i32, i32) {
    %c0_i32 = arith.constant 0 : i32
    %c0_i32_0 = arith.constant 0 : i32
    %c0_i32_1 = arith.constant 0 : i32
    return %c0_i32, %c0_i32_0 : i32, i32
  }
  func.func @transform_4(%arg0: i32) -> (i32, i32) {
    %c0_i32 = arith.constant 0 : i32
    %c0_i32_0 = arith.constant 0 : i32
    %c0_i32_1 = arith.constant 0 : i32
    return %c0_i32, %c0_i32_0 : i32, i32
  }
  func.func @transform_5(%arg0: i32) -> (i32, i32, i32) {
    %c0_i32 = arith.constant 0 : i32
    %c0_i32_0 = arith.constant 0 : i32
    %c0_i32_1 = arith.constant 0 : i32
    %c0_i32_2 = arith.constant 0 : i32
    return %c0_i32, %c0_i32_0, %c0_i32_1 : i32, i32, i32
  }
  func.func @transform_6(%arg0: i32) -> (i32, i32, i32) {
    %c0_i32 = arith.constant 0 : i32
    %c0_i32_0 = arith.constant 0 : i32
    %c0_i32_1 = arith.constant 0 : i32
    return %arg0, %c0_i32, %c0_i32_0 : i32, i32, i32
  }
}

</mosaic_0001>

<bundles_post_ra>
// kernel: outnet_forward.1
= control target key start
LH: loop header
LB: loop body
LE: loop exit
PB: predicated region body
PF: predicated region fallthrough
CT: control target
= control target key end

     0   :  { %s6306_s25 = smov 17   ;;  %v9199_v6 = vmov 0.0   ;;  %s6308_s14 = smov 16   ;;  %v60_v9 = vlaneseq  ;;  %vm103_vm2 = vcmask 261120   ;;  %s9192_s0 = inlined_call_operand.vmem [shape: f32[2,32,256], index: 0, kind: input, shape index: {}]   ;;  %s9193_s5 = inlined_call_operand.vmem [shape: f32[9,1,256], index: 5, kind: input, shape index: {}]   ;;  %s9194_s1 = inlined_call_operand.vmem [shape: f32[9,96,32], index: 1, kind: input, shape index: {}]   ;;  %s9195_s2 = inlined_call_operand.vmem [shape: f32[96,1], index: 2, kind: input, shape index: {}]   ;;  %s9196_s4 = inlined_call_operand.vmem [shape: f32[9,1], index: 4, kind: input, shape index: {}]   ;;  %s9197_s3 = inlined_call_operand.vmem [shape: f32[9,96], index: 3, kind: input, shape index: {}]   ;;  %s9198_s6 = inlined_call_operand.vmem [shape: f32[2,9,256], index: 6, kind: output, shape index: {}]  }
   0x1   :  { %v6354_v0 = vld [vmem:[%s9192_s0 + $0x8] sm:$0xff]  ;;  %v6359_v1 = vld [vmem:[%s9192_s0] sm:$0xff]  ;;  %v6368_v2 = vld [vmem:[%s9192_s0 + $0x18] sm:$0xff]  ;;  %204 = vmatprep.mubr.f32.mxu0 %v9199_v6  ;;  %2567 = vmatprep.mubr.f32.mxu1 %v9199_v6  ;;  %s6309_s15 = smov 15   ;;  %s6310_s16 = smov 1  }
   0x2   :  { %52 = vrot.lane.b32.xlu1 %v6354_v0, %s6306_s25  ;;  %44 = vrot.lane.b32.xlu0 %v6359_v1, %s6306_s25  ;;  %v6373_v3 = vld [vmem:[%s9192_s0 + $0x10] sm:$0xff]  ;;  %v6387_v5 = vld [vmem:[%s9192_s0 + $0x20] sm:$0xff]  ;;  %s6311_s17 = smov 127   ;;  %v74_v10 = vshrl.u32 %v60_v9, 7  ;;  %v6473_v11 = vand.u32 127, %v60_v9  ;;  %s6312_s20 = smov 113   ;;  %v5618_v46 = vpack.c.bf16 %v6368_v2, %v6354_v0 }
   0x3   :  { %v6382_v4 = vld [vmem:[%s9192_s0 + $0x30] sm:$0xff]  ;;  %v6398_v7 = vld [vmem:[%s9192_s0 + $0x38] sm:$0xff]  ;;  %v6403_v8 = vld [vmem:[%s9192_s0 + $0x28] sm:$0xff]  ;;  %v5620_v51 = vpack.c.bf16 %v6373_v3, %v6359_v1  ;;  %s6313_s26 = smov 112   ;;  %s6314_s12 = smov 111  }
   0x4   :  { %v6475_v12 = vsub.s32 0, %v74_v10  ;;  %v6477_v13 = vsub.s32 1, %v74_v10  ;;  %v71_v14 = vld [vmem:[%s9193_s5] sm:$0x3]  ;;  %vm62_vm0 = vcmp.lt.s32.totalorder %v6473_v11, 17  ;;  %vm466_vm1 = vcmp.lt.s32.totalorder %v6473_v11, 16 }
   0x5   :  { %v6512_v43 = vld [vmem:[%s9193_s5 + $0x2] sm:$0x3]  ;;  %v5622_v52 = vpack.c.bf16 %v6398_v7, %v6403_v8  ;;  %v92_v59 = vld [vmem:[%s9194_s1 + $0x8] sm:$0xff]  ;;  %v5624_v60 = vpack.c.bf16 %v6382_v4, %v6387_v5  ;;  %v93_v62 = vld [vmem:[%s9194_s1 + $0x10] sm:$0xff]  ;;  %vm722_vm3 = vcmp.lt.s32.totalorder %v6473_v11, 15  ;;  %vm978_vm4 = vcmp.lt.s32.totalorder %v6473_v11, 1 }
   0x6   :  { %54 = vrot.lane.b32.xlu1 %v6368_v2, %s6306_s25  ;;  %46 = vrot.lane.b32.xlu0 %v6373_v3, %s6306_s25  ;;  %v80_v17 = vrot.slane %v71_v14, %v6477_v13  ;;  %v76_v18 = vrot.slane %v71_v14, %v6475_v12  ;;  %v6527_v49 = vrot.slane %v6512_v43, %v6477_v13  ;;  %v91_v50 = vld [vmem:[%s9194_s1] sm:$0xff]  ;;  %v94_v63 = vld [vmem:[%s9194_s1 + $0x18] sm:$0xff]  ;;  %vm1234_vm5 = vcmp.lt.s32.totalorder %v6473_v11, 127 }
   0x7   :  { %v95_v9 = vld [vmem:[%s9194_s1 + $0x20] sm:$0xff]  ;;  %v96_v10 = vld [vmem:[%s9194_s1 + $0x28] sm:$0xff]  ;;  %v97_v14 = vld [vmem:[%s9194_s1 + $0x30] sm:$0xff]  ;;  %vm1490_vm6 = vcmp.lt.s32.totalorder %v6473_v11, 113  ;;  %vm1746_vm7 = vcmp.lt.s32.totalorder %v6473_v11, 112  ;;  %vm2002_vm8 = vcmp.lt.s32.totalorder %v6473_v11, 111 }
   0xa   :  { %50 = vrot.lane.b32.xlu1 %v6382_v4, %s6306_s25  ;;  %48 = vrot.lane.b32.xlu0 %v6387_v5, %s6306_s25 }
   0xe   :  { %58 = vrot.lane.b32.xlu1 %v6398_v7, %s6306_s25  ;;  %56 = vrot.lane.b32.xlu0 %v6403_v8, %s6306_s25 }
  0x12   :  { %452 = vrot.lane.b32.xlu1 %v6373_v3, %s6308_s14  ;;  %450 = vrot.lane.b32.xlu0 %v6359_v1, %s6308_s14 }
  0x16   :  { %460 = vrot.lane.b32.xlu1 %v6368_v2, %s6308_s14  ;;  %458 = vrot.lane.b32.xlu0 %v6354_v0, %s6308_s14 }
  0x1a   :  { %456 = vrot.lane.b32.xlu1 %v6382_v4, %s6308_s14  ;;  %454 = vrot.lane.b32.xlu0 %v6387_v5, %s6308_s14 }
  0x1e   :  { %464 = vrot.lane.b32.xlu1 %v6398_v7, %s6308_s14  ;;  %462 = vrot.lane.b32.xlu0 %v6403_v8, %s6308_s14 }
  0x22   :  { %708 = vrot.lane.b32.xlu1 %v6373_v3, %s6309_s15  ;;  %706 = vrot.lane.b32.xlu0 %v6359_v1, %s6309_s15 }
  0x26   :  { %716 = vrot.lane.b32.xlu1 %v6368_v2, %s6309_s15  ;;  %714 = vrot.lane.b32.xlu0 %v6354_v0, %s6309_s15 }
  0x2a   :  { %712 = vrot.lane.b32.xlu1 %v6382_v4, %s6309_s15  ;;  %710 = vrot.lane.b32.xlu0 %v6387_v5, %s6309_s15 }
  0x2e   :  { %720 = vrot.lane.b32.xlu1 %v6398_v7, %s6309_s15  ;;  %718 = vrot.lane.b32.xlu0 %v6403_v8, %s6309_s15 }
  0x32   :  { %964 = vrot.lane.b32.xlu1 %v6373_v3, %s6310_s16  ;;  %962 = vrot.lane.b32.xlu0 %v6359_v1, %s6310_s16 }
  0x36   :  { %972 = vrot.lane.b32.xlu1 %v6368_v2, %s6310_s16  ;;  %970 = vrot.lane.b32.xlu0 %v6354_v0, %s6310_s16 }
  0x3a   :  { %968 = vrot.lane.b32.xlu1 %v6382_v4, %s6310_s16  ;;  %966 = vrot.lane.b32.xlu0 %v6387_v5, %s6310_s16 }
  0x3e   :  { %976 = vrot.lane.b32.xlu1 %v6398_v7, %s6310_s16  ;;  %974 = vrot.lane.b32.xlu0 %v6403_v8, %s6310_s16 }
  0x42   :  { %1220 = vrot.lane.b32.xlu1 %v6373_v3, %s6311_s17  ;;  %1218 = vrot.lane.b32.xlu0 %v6359_v1, %s6311_s17 }
  0x46   :  { %1228 = vrot.lane.b32.xlu1 %v6368_v2, %s6311_s17  ;;  %1226 = vrot.lane.b32.xlu0 %v6354_v0, %s6311_s17 }
  0x4a   :  { %1224 = vrot.lane.b32.xlu1 %v6382_v4, %s6311_s17  ;;  %1222 = vrot.lane.b32.xlu0 %v6387_v5, %s6311_s17 }
  0x4e   :  { %1232 = vrot.lane.b32.xlu1 %v6398_v7, %s6311_s17  ;;  %1230 = vrot.lane.b32.xlu0 %v6403_v8, %s6311_s17 }
  0x52   :  { %1476 = vrot.lane.b32.xlu1 %v6373_v3, %s6312_s20  ;;  %1474 = vrot.lane.b32.xlu0 %v6359_v1, %s6312_s20 }
  0x56   :  { %1484 = vrot.lane.b32.xlu1 %v6368_v2, %s6312_s20  ;;  %1482 = vrot.lane.b32.xlu0 %v6354_v0, %s6312_s20 }
  0x5a   :  { %1480 = vrot.lane.b32.xlu1 %v6382_v4, %s6312_s20  ;;  %1478 = vrot.lane.b32.xlu0 %v6387_v5, %s6312_s20 }
  0x5e   :  { %1488 = vrot.lane.b32.xlu1 %v6398_v7, %s6312_s20  ;;  %1486 = vrot.lane.b32.xlu0 %v6403_v8, %s6312_s20 }
  0x62   :  { %1732 = vrot.lane.b32.xlu1 %v6373_v3, %s6313_s26  ;;  %1730 = vrot.lane.b32.xlu0 %v6359_v1, %s6313_s26 }
  0x66   :  { %1740 = vrot.lane.b32.xlu1 %v6368_v2, %s6313_s26  ;;  %1738 = vrot.lane.b32.xlu0 %v6354_v0, %s6313_s26 }
  0x6a   :  { %1736 = vrot.lane.b32.xlu1 %v6382_v4, %s6313_s26  ;;  %1734 = vrot.lane.b32.xlu0 %v6387_v5, %s6313_s26 }
  0x6e   :  { %1744 = vrot.lane.b32.xlu1 %v6398_v7, %s6313_s26  ;;  %1742 = vrot.lane.b32.xlu0 %v6403_v8, %s6313_s26 }
  0x72   :  { %1988 = vrot.lane.b32.xlu1 %v6373_v3, %s6314_s12  ;;  %1986 = vrot.lane.b32.xlu0 %v6359_v1, %s6314_s12  ;;  %v6743_v3 = vld [vmem:[%s9193_s5 + $0x6] sm:$0x3] }
  0x74   :  { %v53_v15 = vpop.permute.xlu1 %52  ;;  %v45_v16 = vpop.permute.xlu0 %44 }
  0x75   :  { %v67_v19 = vsel %vm62_vm0, %v53_v15, %v45_v16  ;;  %v63_v20 = vsel %vm62_vm0, %v45_v16, %v53_v15 }
  0x76   :  { %v84_v25 = vmul.f32 %v80_v17, %v63_v20  ;;  %v83_v27 = vmul.f32 %v76_v18, %v67_v19  ;;  %1996 = vrot.lane.b32.xlu1 %v6368_v2, %s6314_s12  ;;  %1994 = vrot.lane.b32.xlu0 %v6354_v0, %s6314_s12  ;;  %v5135_v2 = vld [vmem:[%s9194_s1 + $0x1d8] sm:$0xff] }
  0x78   :  { %v55_v21 = vpop.permute.xlu1 %54  ;;  %v47_v22 = vpop.permute.xlu0 %46 }
  0x79   :  { %v68_v23 = vsel %vm62_vm0, %v55_v21, %v47_v22  ;;  %v64_v24 = vsel %vm62_vm0, %v47_v22, %v55_v21  ;;  %v100_v21 = vld [vmem:[%s9194_s1 + $0x48] sm:$0xff] }
  0x7a   :  { %v86_v26 = vmul.f32 %v80_v17, %v64_v24  ;;  %v85_v28 = vmul.f32 %v76_v18, %v68_v23  ;;  %v101_v24 = vld [vmem:[%s9194_s1 + $0x50] sm:$0xff]  ;;  %1992 = vrot.lane.b32.xlu1 %v6382_v4, %s6314_s12  ;;  %1990 = vrot.lane.b32.xlu0 %v6387_v5, %s6314_s12  ;;  %v5161_v4 = vld [vmem:[%s9194_s1 + $0x60] sm:$0xff] }
  0x7b   :  { %v5162_v5 = vld [vmem:[%s9194_s1 + $0x68] sm:$0xff] }
  0x7c   :  { %v51_v29 = vpop.permute.xlu1 %50  ;;  %v49_v30 = vpop.permute.xlu0 %48  ;;  %v5610_v31 = vpack.c.bf16 %v86_v26, %v84_v25  ;;  %v5612_v32 = vpack.c.bf16 %v85_v28, %v83_v27  ;;  %v481_v25 = vrot.slane %v6512_v43, %v6475_v12  ;;  %v6621_v28 = vld [vmem:[%s9193_s5 + $0x4] sm:$0x3] }
  0x7e   :  { %5611 = vmatprep.subr.bf16.mxu0 %v5610_v31  ;;  %2000 = vrot.lane.b32.xlu1 %v6398_v7, %s6314_s12  ;;  %v5163_v7 = vld [vmem:[%s9194_s1 + $0x70] sm:$0xff] }
  0x7f   :  { %5613 = vmatpush1.bf16.msra.mxu0 %v5612_v32  ;;  %1998 = vrot.lane.b32.xlu0 %v6403_v8, %s6314_s12  ;;  %v5164_v8 = vld [vmem:[%s9194_s1 + $0x78] sm:$0xff] }
  0x80   :  { %v59_v33 = vpop.permute.xlu1 %58  ;;  %v57_v34 = vpop.permute.xlu0 %56 }
  0x81   :  { %v66_v35 = vsel %vm62_vm0, %v51_v29, %v59_v33  ;;  %v70_v36 = vsel %vm62_vm0, %v59_v33, %v51_v29  ;;  %v65_v37 = vsel %vm62_vm0, %v49_v30, %v57_v34  ;;  %v69_v38 = vsel %vm62_vm0, %v57_v34, %v49_v30 }
  0x82   :  { %v89_v39 = vmul.f32 %v76_v18, %v70_v36  ;;  %v90_v40 = vmul.f32 %v80_v17, %v66_v35  ;;  %v87_v41 = vmul.f32 %v76_v18, %v69_v38  ;;  %v88_v42 = vmul.f32 %v80_v17, %v65_v37  ;;  %v98_v17 = vld [vmem:[%s9194_s1 + $0x38] sm:$0xff]  ;;  %v99_v18 = vld [vmem:[%s9194_s1 + $0x40] sm:$0xff] }
  0x83   :  { %v102_v35 = vld [vmem:[%s9194_s1 + $0x58] sm:$0xff]  ;;  %v6641_v36 = vrot.slane %v6621_v28, %v6477_v13 }
  0x84   :  { %v5614_v44 = vpack.c.bf16 %v90_v40, %v88_v42  ;;  %v5616_v45 = vpack.c.bf16 %v89_v39, %v87_v41  ;;  %v6518_v47 = vpop.permute.xlu1 %452  ;;  %v6520_v48 = vpop.permute.xlu0 %450 }
  0x86   :  { %5615 = vmatprep.subr.bf16.mxu0 %v5614_v44  ;;  %v5124_v44 = vld [vmem:[%s9194_s1 + $0x180] sm:$0xff] }
  0x87   :  { %5617 = vmatpush1.bf16.msra.mxu0 %v5616_v45 }
  0x88   :  { %5619 = vmatprep.subr.bf16.mxu0 %v5618_v46  ;;  %v461_v53 = vpop.permute.xlu1 %460  ;;  %v459_v54 = vpop.permute.xlu0 %458 }
  0x89   :  { %v468_v55 = vsel %vm466_vm1, %v6518_v47, %v461_v53  ;;  %v467_v56 = vsel %vm466_vm1, %v6520_v48, %v459_v54  ;;  %v472_v26 = vsel %vm466_vm1, %v461_v53, %v6518_v47  ;;  %v471_v27 = vsel %vm466_vm1, %v459_v54, %v6520_v48  ;;  %v5126_v53 = vld [vmem:[%s9194_s1 + $0x190] sm:$0xff]  ;;  %v5127_v54 = vld [vmem:[%s9194_s1 + $0x198] sm:$0xff] }
  0x8a   :  { %5136 = vmatmul.mubr.msk.f32.vlgmr.msra.gmra.mrb[0].mxu0 %vm103_vm2, %v91_v50  ;;  %v491_v57 = vmul.f32 %v6527_v49, %v468_v55  ;;  %v489_v58 = vmul.f32 %v6527_v49, %v467_v56  ;;  %v490_v33 = vmul.f32 %v481_v25, %v472_v26  ;;  %v488_v34 = vmul.f32 %v481_v25, %v471_v27  ;;  %v5125_v50 = vld [vmem:[%s9194_s1 + $0x188] sm:$0xff]  ;;  %v5128_v55 = vld [vmem:[%s9194_s1 + $0x1a0] sm:$0xff] }
  0x8b   :  { %210 = vmatprep.mubr.f32.mxu0 %v9199_v6  ;;  %5621 = vmatpush1.bf16.msra.mxu0 %v5620_v51  ;;  %v5129_v56 = vld [vmem:[%s9194_s1 + $0x1a8] sm:$0xff] }
  0x8c   :  { %5623 = vmatprep.subr.bf16.mxu0 %v5622_v52  ;;  %v5626_v61 = vpack.c.bf16 %v491_v57, %v489_v58  ;;  %v457_v15 = vpop.permute.xlu1 %456  ;;  %v455_v16 = vpop.permute.xlu0 %454  ;;  %v5628_v43 = vpack.c.bf16 %v490_v33, %v488_v34  ;;  %v5130_v57 = vld [vmem:[%s9194_s1 + $0x1b0] sm:$0xff] }
  0x8e   :  { %5137 = vmatmul.mubr.msk.f32.gmra.mrb[2].mxu0 %vm103_vm2, %v92_v59 }
  0x8f   :  { %216 = vmatprep.mubr.f32.mxu0 %v9199_v6  ;;  %5625 = vmatpush1.bf16.msra.mxu0 %v5624_v60  ;;  %v5131_v60 = vld [vmem:[%s9194_s1 + $0x1b8] sm:$0xff] }
  0x90   :  { %5627 = vmatprep.subr.bf16.mxu0 %v5626_v61  ;;  %v465_v19 = vpop.permute.xlu1 %464  ;;  %v463_v20 = vpop.permute.xlu0 %462  ;;  %v5132_v61 = vld [vmem:[%s9194_s1 + $0x1c0] sm:$0xff] }
  0x91   :  { %v470_v29 = vsel %vm466_vm1, %v457_v15, %v465_v19  ;;  %v469_v30 = vsel %vm466_vm1, %v455_v16, %v463_v20  ;;  %v474_v37 = vsel %vm466_vm1, %v465_v19, %v457_v15  ;;  %v473_v39 = vsel %vm466_vm1, %v463_v20, %v455_v16  ;;  %v5134_v15 = vld [vmem:[%s9194_s1 + $0x1d0] sm:$0xff] }
  0x92   :  { %5138 = vmatmul.mubr.msk.f32.gmra.mrb[4].mxu0 %vm103_vm2, %v93_v62  ;;  %v495_v38 = vmul.f32 %v6527_v49, %v470_v29  ;;  %v493_v40 = vmul.f32 %v6527_v49, %v469_v30  ;;  %v494_v45 = vmul.f32 %v481_v25, %v474_v37  ;;  %v492_v46 = vmul.f32 %v481_v25, %v473_v39  ;;  %v5166_v39 = vld [vmem:[%s9194_s1 + $0x88] sm:$0xff] }
  0x93   :  { %222 = vmatprep.mubr.f32.mxu0 %v9199_v6  ;;  %v737_v16 = vrot.slane %v6621_v28, %v6475_v12 }
  0x94   :  { %v6597_v22 = vpop.permute.xlu1 %708  ;;  %v6599_v23 = vpop.permute.xlu0 %706  ;;  %v5630_v47 = vpack.c.bf16 %v495_v38, %v493_v40  ;;  %v5632_v51 = vpack.c.bf16 %v494_v45, %v492_v46  ;;  %v5165_v38 = vld [vmem:[%s9194_s1 + $0x80] sm:$0xff]  ;;  %v5167_v40 = vld [vmem:[%s9194_s1 + $0x90] sm:$0xff] }
  0x96   :  { %5139 = vmatmul.mubr.msk.f32.gmra.mrb[6].mxu0 %vm103_vm2, %v94_v63 }
  0x97   :  { %228 = vmatprep.mubr.f32.mxu0 %v9199_v6 }
  0x98   :  { %v6631_v31 = vpop.permute.xlu1 %716  ;;  %v6633_v32 = vpop.permute.xlu0 %714 }
  0x99   :  { %v724_v41 = vsel %vm722_vm3, %v6597_v22, %v6631_v31  ;;  %v723_v42 = vsel %vm722_vm3, %v6599_v23, %v6633_v32  ;;  %v727_v1 = vsel %vm722_vm3, %v6633_v32, %v6599_v23 }
  0x9a   :  { %5140 = vmatmul.mubr.msk.f32.gmra.mrb[8].mxu0 %vm103_vm2, %v95_v9  ;;  %v747_v48 = vmul.f32 %v6641_v36, %v724_v41  ;;  %v745_v49 = vmul.f32 %v6641_v36, %v723_v42  ;;  %v5133_v9 = vld [vmem:[%s9194_s1 + $0x1c8] sm:$0xff]  ;;  %v744_v23 = vmul.f32 %v737_v16, %v727_v1  ;;  %v5186_v1 = vld [vmem:[%s9194_s1 + $0xc0] sm:$0xff] }
  0x9b   :  { %234 = vmatprep.mubr.f32.mxu0 %v9199_v6 }
  0x9c   :  { %v5634_v52 = vpack.c.bf16 %v747_v48, %v745_v49  ;;  %v713_v58 = vpop.permute.xlu1 %712  ;;  %v711_v59 = vpop.permute.xlu0 %710 }
  0x9e   :  { %5141 = vmatmul.mubr.msk.f32.gmra.mrb[10].mxu0 %vm103_vm2, %v96_v10 }
  0x9f   :  { %240 = vmatprep.mubr.f32.mxu0 %v9199_v6 }
  0xa0   :  { %v721_v62 = vpop.permute.xlu1 %720  ;;  %v719_v63 = vpop.permute.xlu0 %718 }
  0xa1   :  { %v725_v19 = vsel %vm722_vm3, %v711_v59, %v719_v63  ;;  %v730_v0 = vsel %vm722_vm3, %v721_v62, %v713_v58  ;;  %v729_v26 = vsel %vm722_vm3, %v719_v63, %v711_v59 }
  0xa2   :  { %5142 = vmatmul.mubr.msk.f32.gmra.mrb[12].mxu0 %vm103_vm2, %v97_v14  ;;  %v749_v27 = vmul.f32 %v6641_v36, %v725_v19  ;;  %v748_v32 = vmul.f32 %v737_v16, %v729_v26  ;;  %v5191_v26 = vld [vmem:[%s9194_s1 + $0xe8] sm:$0xff] }
  0xa3   :  { %246 = vmatprep.mubr.f32.mxu0 %v9199_v6 }
  0xa4   :  { %v6717_v10 = vpop.permute.xlu1 %964  ;;  %v6719_v14 = vpop.permute.xlu0 %962 }
  0xa6   :  { %5143 = vmatmul.mubr.msk.f32.gmra.mrb[14].mxu0 %vm103_vm2, %v98_v17  ;;  %v728_v17 = vsel %vm722_vm3, %v6631_v31, %v6597_v22  ;;  %v750_v31 = vmul.f32 %v737_v16, %v730_v0  ;;  %v5189_v0 = vld [vmem:[%s9194_s1 + $0xd8] sm:$0xff] }
  0xa7   :  { %252 = vmatprep.mubr.f32.mxu0 %v9199_v6  ;;  %v746_v22 = vmul.f32 %v737_v16, %v728_v17 }
  0xa8   :  { %v6755_v20 = vpop.permute.xlu1 %972 }
  0xa9   :  { %v980_v28 = vsel %vm978_vm4, %v6717_v10, %v6755_v20  ;;  %v5636_v30 = vpack.c.bf16 %v746_v22, %v744_v23  ;;  %v5187_v22 = vld [vmem:[%s9194_s1 + $0xc8] sm:$0xff] }
  0xaa   :  { %5144 = vmatmul.mubr.msk.f32.gmra.mrb[16].mxu0 %vm103_vm2, %v99_v18  ;;  %v726_v18 = vsel %vm722_vm3, %v713_v58, %v721_v62 }
  0xab   :  { %258 = vmatprep.mubr.f32.mxu0 %v9199_v6  ;;  %v751_v25 = vmul.f32 %v6641_v36, %v726_v18  ;;  %v5640_v36 = vpack.c.bf16 %v750_v31, %v748_v32 }
  0xac   :  { %v969_v41 = vpop.permute.xlu1 %968 }
  0xad   :  { %v5638_v33 = vpack.c.bf16 %v751_v25, %v749_v27  ;;  %v5190_v25 = vld [vmem:[%s9194_s1 + $0xe0] sm:$0xff]  ;;  %v5192_v27 = vld [vmem:[%s9194_s1 + $0xf0] sm:$0xff] }
  0xae   :  { %5145 = vmatmul.mubr.msk.f32.gmra.mrb[18].mxu0 %vm103_vm2, %v100_v21  ;;  %v6757_v21 = vpop.permute.xlu0 %970 }
  0xaf   :  { %264 = vmatprep.mubr.f32.mxu0 %v9199_v6  ;;  %v979_v29 = vsel %vm978_vm4, %v6719_v14, %v6757_v21 }
  0xb0   :  { %v977_v45 = vpop.permute.xlu1 %976 }
  0xb1   :  { %v986_v62 = vsel %vm978_vm4, %v977_v45, %v969_v41 }
  0xb2   :  { %5146 = vmatmul.mubr.msk.f32.gmra.mrb[20].mxu0 %vm103_vm2, %v101_v24  ;;  %v6765_v24 = vrot.slane %v6743_v3, %v6477_v13  ;;  %v967_v42 = vpop.permute.xlu0 %966 }
  0xb3   :  { %270 = vmatprep.mubr.f32.mxu0 %v9199_v6 }
  0xb4   :  { %v1003_v34 = vmul.f32 %v6765_v24, %v980_v28  ;;  %v6841_v48 = vpop.permute.xlu1 %1220 }
  0xb6   :  { %5147 = vmatmul.mubr.msk.f32.gmra.mrb[22].mxu0 %vm103_vm2, %v102_v35  ;;  %v1001_v35 = vmul.f32 %v6765_v24, %v979_v29  ;;  %v975_v46 = vpop.permute.xlu0 %974 }
  0xb7   :  { %377 = vmatprep.mubr.f32.mxu0 %v9199_v6 }
  0xb8   :  { %v5642_v37 = vpack.c.bf16 %v1003_v34, %v1001_v35 }
  0xba   :  { %5148 = vmatmul.mubr.msk.f32.vlgmr.msra.gmra.mrb[0].mxu0 %vm103_vm2, %v5124_v44  ;;  %v5169_v44 = vld [vmem:[%s9194_s1 + $0xa0] sm:$0xff]  ;;  %v6843_v49 = vpop.permute.xlu0 %1218 }
  0xbb   :  { %5629 = vmatpush1.bf16.msra.mxu0 %v5628_v43  ;;  %383 = vmatprep.mubr.f32.mxu0 %v9199_v6  ;;  %v5168_v43 = vld [vmem:[%s9194_s1 + $0x98] sm:$0xff] }
  0xbc   :  { %5631 = vmatprep.subr.bf16.mxu0 %v5630_v47  ;;  %v5170_v47 = vld [vmem:[%s9194_s1 + $0xa8] sm:$0xff] }
  0xbe   :  { %5149 = vmatmul.mubr.msk.f32.gmra.mrb[2].mxu0 %vm103_vm2, %v5125_v50  ;;  %v5171_v50 = vld [vmem:[%s9194_s1 + $0xb0] sm:$0xff]  ;;  %v6873_v58 = vpop.permute.xlu0 %1226 }
  0xbf   :  { %389 = vmatprep.mubr.f32.mxu0 %v9199_v6  ;;  %5633 = vmatpush1.bf16.msra.mxu0 %v5632_v51  ;;  %v993_v51 = vrot.slane %v6743_v3, %v6475_v12  ;;  %v1239_v16 = vsel %vm1234_vm5, %v6873_v58, %v6843_v49 }
  0xc0   :  { %5635 = vmatprep.subr.bf16.mxu0 %v5634_v52  ;;  %v984_v52 = vsel %vm978_vm4, %v6755_v20, %v6717_v10 }
  0xc1   :  { %v1002_v59 = vmul.f32 %v993_v51, %v984_v52  ;;  %v1006_v3 = vmul.f32 %v993_v51, %v986_v62 }
  0xc2   :  { %5150 = vmatmul.mubr.msk.f32.gmra.mrb[4].mxu0 %vm103_vm2, %v5126_v53  ;;  %v983_v53 = vsel %vm978_vm4, %v6757_v21, %v6719_v14  ;;  %v1223_v29 = vpop.permute.xlu0 %1222 }
  0xc3   :  { %395 = vmatprep.mubr.f32.mxu0 %v9199_v6 }
  0xc6   :  { %5151 = vmatmul.mubr.msk.f32.gmra.mrb[6].mxu0 %vm103_vm2, %v5127_v54  ;;  %v982_v54 = vsel %vm978_vm4, %v969_v41, %v977_v45  ;;  %v1231_v32 = vpop.permute.xlu0 %1230 }
  0xc7   :  { %401 = vmatprep.mubr.f32.mxu0 %v9199_v6  ;;  %v1007_v63 = vmul.f32 %v6765_v24, %v982_v54 }
  0xca   :  { %5152 = vmatmul.mubr.msk.f32.gmra.mrb[8].mxu0 %vm103_vm2, %v5128_v55  ;;  %v981_v55 = vsel %vm978_vm4, %v967_v42, %v975_v46  ;;  %v6951_v35 = vpop.permute.xlu0 %1474 }
  0xcb   :  { %407 = vmatprep.mubr.f32.mxu0 %v9199_v6  ;;  %v1005_v10 = vmul.f32 %v6765_v24, %v981_v55  ;;  %v5188_v24 = vld [vmem:[%s9194_s1 + $0xd0] sm:$0xff] }
  0xcc   :  { %v7021_v55 = vld [vmem:[%s9195_s2 + $0x10] sm:$0xff] }
  0xcd   :  { %v5646_v19 = vpack.c.bf16 %v1007_v63, %v1005_v10  ;;  %v7045_v10 = vld [vmem:[%s9195_s2 + $0x28] sm:$0xff] }
  0xce   :  { %5153 = vmatmul.mubr.msk.f32.gmra.mrb[10].mxu0 %vm103_vm2, %v5129_v56  ;;  %v6867_v56 = vld [vmem:[%s9193_s5 + $0xa] sm:$0x3] }
  0xcf   :  { %413 = vmatprep.mubr.f32.mxu0 %v9199_v6  ;;  %v6887_v14 = vrot.slane %v6867_v56, %v6477_v13 }
  0xd1   :  { %v1257_v21 = vmul.f32 %v6887_v14, %v1239_v16 }
  0xd2   :  { %5154 = vmatmul.mubr.msk.f32.gmra.mrb[12].mxu0 %vm103_vm2, %v5130_v57  ;;  %v6871_v57 = vpop.permute.xlu1 %1228 }
  0xd3   :  { %419 = vmatprep.mubr.f32.mxu0 %v9199_v6 }
  0xd6   :  { %5155 = vmatmul.mubr.msk.f32.gmra.mrb[14].mxu0 %vm103_vm2, %v5131_v60  ;;  %v1000_v60 = vmul.f32 %v993_v51, %v983_v53  ;;  %v1225_v28 = vpop.permute.xlu1 %1224 }
  0xd7   :  { %425 = vmatprep.mubr.f32.mxu0 %v9199_v6 }
  0xd8   :  { %v5644_v17 = vpack.c.bf16 %v1002_v59, %v1000_v60 }
  0xda   :  { %5156 = vmatmul.mubr.msk.f32.gmra.mrb[16].mxu0 %vm103_vm2, %v5132_v61  ;;  %v5172_v61 = vld [vmem:[%s9194_s1 + $0xb8] sm:$0xff]  ;;  %v1233_v31 = vpop.permute.xlu1 %1232 }
  0xdb   :  { %431 = vmatprep.mubr.f32.mxu0 %v9199_v6 }
  0xde   :  { %5157 = vmatmul.mubr.msk.f32.gmra.mrb[18].mxu0 %vm103_vm2, %v5133_v9  ;;  %v985_v9 = vsel %vm978_vm4, %v975_v46, %v967_v42  ;;  %v6949_v34 = vpop.permute.xlu1 %1476  ;;  %v6981_v42 = vpop.permute.xlu0 %1482 }
  0xdf   :  { %437 = vmatprep.mubr.f32.mxu0 %v9199_v6  ;;  %v1004_v18 = vmul.f32 %v993_v51, %v985_v9  ;;  %v1495_v54 = vsel %vm1490_vm6, %v6981_v42, %v6951_v35  ;;  %v7040_v9 = vld [vmem:[%s9195_s2 + $0x20] sm:$0xff] }
  0xe1   :  { %v5648_v23 = vpack.c.bf16 %v1006_v3, %v1004_v18  ;;  %v5213_v3 = vld [vmem:[%s9194_s1 + $0x130] sm:$0xff]  ;;  %v7074_v18 = vld [vmem:[%s9195_s2 + $0x40] sm:$0xff] }
  0xe2   :  { %5158 = vmatmul.mubr.msk.f32.gmra.mrb[20].mxu0 %vm103_vm2, %v5134_v15  ;;  %v1240_v15 = vsel %vm1234_vm5, %v6871_v57, %v6841_v48  ;;  %v6979_v41 = vpop.permute.xlu1 %1484 }
  0xe3   :  { %443 = vmatprep.mubr.f32.mxu0 %v9199_v6  ;;  %v1259_v20 = vmul.f32 %v6887_v14, %v1240_v15  ;;  %v1496_v53 = vsel %vm1490_vm6, %v6979_v41, %v6949_v34 }
  0xe6   :  { %5159 = vmatmul.mubr.msk.f32.gmra.mrb[22].mxu0 %vm103_vm2, %v5135_v2  ;;  %v5650_v2 = vpack.c.bf16 %v1259_v20, %v1257_v21  ;;  %v5214_v20 = vld [vmem:[%s9194_s1 + $0x138] sm:$0xff]  ;;  %v7091_v21 = vld [vmem:[%s9195_s2 + $0x50] sm:$0xff] }
  0xe7   :  { %609 = vmatprep.mubr.f32.mxu0 %v9199_v6 }
  0xea   :  { %5173 = vmatmul.mubr.msk.f32.vlgmr.msra.gmra.mrb[0].mxu0 %vm103_vm2, %v5161_v4  ;;  %v5194_v4 = vld [vmem:[%s9194_s1 + $0x100] sm:$0xff] }
  0xeb   :  { %5637 = vmatpush1.bf16.msra.mxu0 %v5636_v30  ;;  %615 = vmatprep.mubr.f32.mxu0 %v9199_v6  ;;  %v5193_v30 = vld [vmem:[%s9194_s1 + $0xf8] sm:$0xff] }
  0xec   :  { %5639 = vmatprep.subr.bf16.mxu0 %v5638_v33  ;;  %v5195_v33 = vld [vmem:[%s9194_s1 + $0x108] sm:$0xff] }
  0xee   :  { %5174 = vmatmul.mubr.msk.f32.gmra.mrb[2].mxu0 %vm103_vm2, %v5162_v5  ;;  %v5196_v5 = vld [vmem:[%s9194_s1 + $0x110] sm:$0xff] }
  0xef   :  { %621 = vmatprep.mubr.f32.mxu0 %v9199_v6  ;;  %5641 = vmatpush1.bf16.msra.mxu0 %v5640_v36  ;;  %v1249_v36 = vrot.slane %v6867_v56, %v6475_v12  ;;  %v7026_v56 = vld [vmem:[%s9195_s2 + $0x18] sm:$0xff] }
  0xf0   :  { %5643 = vmatprep.subr.bf16.mxu0 %v5642_v37  ;;  %v1236_v37 = vsel %vm1234_vm5, %v6841_v48, %v6871_v57  ;;  %v1238_v48 = vsel %vm1234_vm5, %v1225_v28, %v1233_v31 }
  0xf1   :  { %v1258_v45 = vmul.f32 %v1249_v36, %v1236_v37  ;;  %v1262_v59 = vmul.f32 %v1249_v36, %v1238_v48 }
  0xf2   :  { %5175 = vmatmul.mubr.msk.f32.gmra.mrb[4].mxu0 %vm103_vm2, %v5163_v7  ;;  %v1235_v7 = vsel %vm1234_vm5, %v6843_v49, %v6873_v58  ;;  %v5211_v58 = vld [vmem:[%s9194_s1 + $0x120] sm:$0xff] }
  0xf3   :  { %627 = vmatprep.mubr.f32.mxu0 %v9199_v6  ;;  %v1256_v46 = vmul.f32 %v1249_v36, %v1235_v7  ;;  %v5220_v7 = vld [vmem:[%s9194_s1 + $0x168] sm:$0xff] }
  0xf5   :  { %v5652_v57 = vpack.c.bf16 %v1258_v45, %v1256_v46  ;;  %v1492_v46 = vsel %vm1490_vm6, %v6949_v34, %v6979_v41 }
  0xf6   :  { %5176 = vmatmul.mubr.msk.f32.gmra.mrb[6].mxu0 %vm103_vm2, %v5164_v8  ;;  %v6315_v8 = vmov 0  }
  0xf7   :  { %633 = vmatprep.mubr.f32.mxu0 %v9199_v6  ;;  %6197 = vset.pattern.permute.xlu1 %v6315_v8 }
  0xf8   :  { %6196 = vset.pattern.permute.xlu0 %v6315_v8 }
  0xfa   :  { %5177 = vmatmul.mubr.msk.f32.gmra.mrb[8].mxu0 %vm103_vm2, %v5165_v38  ;;  %v1242_v38 = vsel %vm1234_vm5, %v1233_v31, %v1225_v28  ;;  %v1481_v28 = vpop.permute.xlu1 %1480  ;;  %v5218_v31 = vld [vmem:[%s9194_s1 + $0x158] sm:$0xff] }
  0xfb   :  { %639 = vmatprep.mubr.f32.mxu0 %v9199_v6  ;;  %v1263_v49 = vmul.f32 %v6887_v14, %v1242_v38 }
  0xfe   :  { %5178 = vmatmul.mubr.msk.f32.gmra.mrb[10].mxu0 %vm103_vm2, %v5166_v39  ;;  %v1241_v39 = vsel %vm1234_vm5, %v1231_v32, %v1223_v29 }
  0xff   :  { %645 = vmatprep.mubr.f32.mxu0 %v9199_v6  ;;  %v1261_v51 = vmul.f32 %v6887_v14, %v1241_v39  ;;  %v5212_v14 = vld [vmem:[%s9194_s1 + $0x128] sm:$0xff]  ;;  %v5221_v39 = vld [vmem:[%s9194_s1 + $0x170] sm:$0xff] }
 0x102   :  { %5179 = vmatmul.mubr.msk.f32.gmra.mrb[12].mxu0 %vm103_vm2, %v5167_v40  ;;  %v6975_v40 = vld [vmem:[%s9193_s5 + $0xc] sm:$0x3] }
 0x103   :  { %651 = vmatprep.mubr.f32.mxu0 %v9199_v6  ;;  %v7006_v52 = vrot.slane %v6975_v40, %v6477_v13  ;;  %v1505_v45 = vrot.slane %v6975_v40, %v6475_v12  ;;  %v7217_v40 = vld [vmem:[%s9193_s5 + $0xe] sm:$0x3] }
 0x105   :  { %v1515_v62 = vmul.f32 %v7006_v52, %v1496_v53  ;;  %v1513_v63 = vmul.f32 %v7006_v52, %v1495_v54  ;;  %v1514_v41 = vmul.f32 %v1505_v45, %v1492_v46  ;;  %v5245_v46 = vld [vmem:[%s9194_s1 + $0x228] sm:$0xff] }
 0x106   :  { %5180 = vmatmul.mubr.msk.f32.gmra.mrb[14].mxu0 %vm103_vm2, %v5168_v43  ;;  %v6986_v43 = vld [vmem:[%s9195_s2 + $0x8] sm:$0xff] }
 0x107   :  { %657 = vmatprep.mubr.f32.mxu0 %v9199_v6  ;;  %2261 = vperm.xlu1 %6197, %v6986_v43   ;;  %v5658_v16 = vpack.c.bf16 %v1515_v62, %v1513_v63 }
 0x10a   :  { %5181 = vmatmul.mubr.msk.f32.gmra.mrb[16].mxu0 %vm103_vm2, %v5169_v44  ;;  %v6991_v44 = vld [vmem:[%s9195_s2] sm:$0xff] }
 0x10b   :  { %663 = vmatprep.mubr.f32.mxu0 %v9199_v6  ;;  %2256 = vperm.xlu0 %6196, %v6991_v44  }
 0x10c   :  { %2266 = vperm.xlu1 %6197, %v7021_v55  }
 0x10e   :  { %5182 = vmatmul.mubr.msk.f32.gmra.mrb[18].mxu0 %vm103_vm2, %v5170_v47  ;;  %v5197_v47 = vld [vmem:[%s9194_s1 + $0x118] sm:$0xff] }
 0x10f   :  { %669 = vmatprep.mubr.f32.mxu0 %v9199_v6  ;;  %2271 = vperm.xlu0 %6196, %v7026_v56  }
 0x110   :  { %2276 = vperm.xlu1 %6197, %v7040_v9  }
 0x112   :  { %5183 = vmatmul.mubr.msk.f32.gmra.mrb[20].mxu0 %vm103_vm2, %v5171_v50  ;;  %v1237_v50 = vsel %vm1234_vm5, %v1223_v29, %v1231_v32  ;;  %v1479_v29 = vpop.permute.xlu0 %1478  ;;  %v7165_v32 = vld [vmem:[%s9192_s0 + $0x68] sm:$0xff] }
 0x113   :  { %675 = vmatprep.mubr.f32.mxu0 %v9199_v6  ;;  %v1260_v60 = vmul.f32 %v1249_v36, %v1237_v50  ;;  %2281 = vperm.xlu0 %6196, %v7045_v10   ;;  %v1489_v36 = vpop.permute.xlu1 %1488  ;;  %v5222_v50 = vld [vmem:[%s9194_s1 + $0x178] sm:$0xff] }
 0x114   :  { %v1498_v48 = vsel %vm1490_vm6, %v1489_v36, %v1481_v28 }
 0x115   :  { %v5656_v15 = vpack.c.bf16 %v1262_v59, %v1260_v60  ;;  %v1519_v53 = vmul.f32 %v7006_v52, %v1498_v48 }
 0x116   :  { %5184 = vmatmul.mubr.msk.f32.gmra.mrb[22].mxu0 %vm103_vm2, %v5172_v61  ;;  %v5654_v61 = vpack.c.bf16 %v1263_v49, %v1261_v51  ;;  %v1487_v37 = vpop.permute.xlu0 %1486  ;;  %v1494_v51 = vsel %vm1490_vm6, %v1481_v28, %v1489_v36  ;;  %v5240_v28 = vld [vmem:[%s9194_s1 + $0x200] sm:$0xff] }
 0x117   :  { %865 = vmatprep.mubr.f32.mxu0 %v9199_v6  ;;  %v7185_v8 = vpop.permute.xlu1 %1732  ;;  %v1497_v49 = vsel %vm1490_vm6, %v1487_v37, %v1479_v29  ;;  %v1493_v54 = vsel %vm1490_vm6, %v1479_v29, %v1487_v37  ;;  %v1518_v62 = vmul.f32 %v1505_v45, %v1494_v51  ;;  %v5241_v29 = vld [vmem:[%s9194_s1 + $0x208] sm:$0xff]  ;;  %v5243_v37 = vld [vmem:[%s9194_s1 + $0x218] sm:$0xff] }
 0x118   :  { %v1516_v63 = vmul.f32 %v1505_v45, %v1493_v54  ;;  %v5247_v54 = vld [vmem:[%s9194_s1 + $0x238] sm:$0xff] }
 0x11a   :  { %5198 = vmatmul.mubr.msk.f32.vlgmr.msra.gmra.mrb[0].mxu0 %vm103_vm2, %v5186_v1  ;;  %v7062_v1 = vld [vmem:[%s9195_s2 + $0x38] sm:$0xff]  ;;  %v7187_v38 = vpop.permute.xlu0 %1730 }
 0x11b   :  { %5645 = vmatpush1.bf16.msra.mxu0 %v5644_v17  ;;  %871 = vmatprep.mubr.f32.mxu0 %v9199_v6  ;;  %v7057_v17 = vld [vmem:[%s9195_s2 + $0x30] sm:$0xff]  ;;  %v7223_v34 = vpop.permute.xlu1 %1740 }
 0x11c   :  { %5647 = vmatprep.subr.bf16.mxu0 %v5646_v19  ;;  %2286 = vperm.xlu1 %6197, %v7057_v17   ;;  %v7079_v19 = vld [vmem:[%s9195_s2 + $0x48] sm:$0xff]  ;;  %v1752_v59 = vsel %vm1746_vm7, %v7223_v34, %v7185_v8 }
 0x11d   :  { %2291 = vperm.xlu0 %6196, %v7062_v1  }
 0x11e   :  { %5199 = vmatmul.mubr.msk.f32.gmra.mrb[2].mxu0 %vm103_vm2, %v5187_v22  ;;  %v7096_v22 = vld [vmem:[%s9195_s2 + $0x58] sm:$0xff] }
 0x11f   :  { %877 = vmatprep.mubr.f32.mxu0 %v9199_v6  ;;  %5649 = vmatpush1.bf16.msra.mxu0 %v5648_v23  ;;  %v5215_v23 = vld [vmem:[%s9194_s1 + $0x140] sm:$0xff] }
 0x120   :  { %5651 = vmatprep.subr.bf16.mxu0 %v5650_v2  ;;  %2296 = vperm.xlu1 %6197, %v7074_v18   ;;  %v7108_v2 = vld [vmem:[%s9192_s0 + $0x40] sm:$0xff] }
 0x121   :  { %2301 = vperm.xlu0 %6196, %v7079_v19  }
 0x122   :  { %5200 = vmatmul.mubr.msk.f32.gmra.mrb[4].mxu0 %vm103_vm2, %v5188_v24  ;;  %v7113_v24 = vld [vmem:[%s9192_s0 + $0x50] sm:$0xff] }
 0x123   :  { %883 = vmatprep.mubr.f32.mxu0 %v9199_v6 }
 0x124   :  { %2306 = vperm.xlu1 %6197, %v7091_v21  }
 0x125   :  { %2311 = vperm.xlu0 %6196, %v7096_v22  }
 0x126   :  { %5201 = vmatmul.mubr.msk.f32.gmra.mrb[6].mxu0 %vm103_vm2, %v5189_v0  ;;  %v5216_v0 = vld [vmem:[%s9194_s1 + $0x148] sm:$0xff] }
 0x127   :  { %889 = vmatprep.mubr.f32.mxu0 %v9199_v6 }
 0x128   :  { %2605 = vrot.lane.b32.xlu1 %v7108_v2, %s6306_s25 }
 0x129   :  { %2607 = vrot.lane.b32.xlu0 %v7113_v24, %s6306_s25 }
 0x12a   :  { %5202 = vmatmul.mubr.msk.f32.gmra.mrb[8].mxu0 %vm103_vm2, %v5190_v25  ;;  %v7127_v25 = vld [vmem:[%s9192_s0 + $0x48] sm:$0xff] }
 0x12b   :  { %895 = vmatprep.mubr.f32.mxu0 %v9199_v6 }
 0x12c   :  { %2613 = vrot.lane.b32.xlu1 %v7127_v25, %s6306_s25 }
 0x12e   :  { %5203 = vmatmul.mubr.msk.f32.gmra.mrb[10].mxu0 %vm103_vm2, %v5191_v26  ;;  %v7132_v26 = vld [vmem:[%s9192_s0 + $0x58] sm:$0xff] }
 0x12f   :  { %901 = vmatprep.mubr.f32.mxu0 %v9199_v6  ;;  %2615 = vrot.lane.b32.xlu0 %v7132_v26, %s6306_s25 }
 0x132   :  { %5204 = vmatmul.mubr.msk.f32.gmra.mrb[12].mxu0 %vm103_vm2, %v5192_v27  ;;  %v5217_v27 = vld [vmem:[%s9194_s1 + $0x150] sm:$0xff] }
 0x133   :  { %907 = vmatprep.mubr.f32.mxu0 %v9199_v6 }
 0x136   :  { %5205 = vmatmul.mubr.msk.f32.gmra.mrb[14].mxu0 %vm103_vm2, %v5193_v30  ;;  %v7146_v30 = vld [vmem:[%s9192_s0 + $0x60] sm:$0xff] }
 0x137   :  { %913 = vmatprep.mubr.f32.mxu0 %v9199_v6  ;;  %2609 = vrot.lane.b32.xlu1 %v7146_v30, %s6306_s25 }
 0x13a   :  { %5206 = vmatmul.mubr.msk.f32.gmra.mrb[16].mxu0 %vm103_vm2, %v5194_v4  ;;  %v7151_v4 = vld [vmem:[%s9192_s0 + $0x70] sm:$0xff] }
 0x13b   :  { %919 = vmatprep.mubr.f32.mxu0 %v9199_v6  ;;  %2611 = vrot.lane.b32.xlu0 %v7151_v4, %s6306_s25 }
 0x13c   :  { %2617 = vrot.lane.b32.xlu1 %v7165_v32, %s6306_s25 }
 0x13e   :  { %5207 = vmatmul.mubr.msk.f32.gmra.mrb[18].mxu0 %vm103_vm2, %v5195_v33  ;;  %v7170_v33 = vld [vmem:[%s9192_s0 + $0x78] sm:$0xff] }
 0x13f   :  { %925 = vmatprep.mubr.f32.mxu0 %v9199_v6  ;;  %2619 = vrot.lane.b32.xlu0 %v7170_v33, %s6306_s25 }
 0x140   :  { %3007 = vrot.lane.b32.xlu1 %v7108_v2, %s6308_s14 }
 0x142   :  { %5208 = vmatmul.mubr.msk.f32.gmra.mrb[20].mxu0 %vm103_vm2, %v5196_v5  ;;  %v5219_v5 = vld [vmem:[%s9194_s1 + $0x160] sm:$0xff] }
 0x143   :  { %931 = vmatprep.mubr.f32.mxu0 %v9199_v6  ;;  %3009 = vrot.lane.b32.xlu0 %v7113_v24, %s6308_s14 }
 0x144   :  { %3015 = vrot.lane.b32.xlu1 %v7127_v25, %s6308_s14 }
 0x146   :  { %5209 = vmatmul.mubr.msk.f32.gmra.mrb[22].mxu0 %vm103_vm2, %v5197_v47  ;;  %v1491_v47 = vsel %vm1490_vm6, %v6951_v35, %v6981_v42  ;;  %v7225_v35 = vpop.permute.xlu0 %1738 }
 0x147   :  { %1121 = vmatprep.mubr.f32.mxu0 %v9199_v6  ;;  %3017 = vrot.lane.b32.xlu0 %v7132_v26, %s6308_s14  ;;  %v1512_v42 = vmul.f32 %v1505_v45, %v1491_v47  ;;  %v1751_v60 = vsel %vm1746_vm7, %v7225_v35, %v7187_v38 }
 0x148   :  { %3011 = vrot.lane.b32.xlu1 %v7146_v30, %s6308_s14 }
 0x14a   :  { %5223 = vmatmul.mubr.msk.f32.vlgmr.msra.gmra.mrb[0].mxu0 %vm103_vm2, %v5211_v58  ;;  %v7239_v58 = vrot.slane %v7217_v40, %v6477_v13  ;;  %v1735_v36 = vpop.permute.xlu0 %1734 }
 0x14b   :  { %5653 = vmatpush1.bf16.msra.mxu0 %v5652_v57  ;;  %1127 = vmatprep.mubr.f32.mxu0 %v9199_v6  ;;  %v1517_v57 = vmul.f32 %v7006_v52, %v1497_v49  ;;  %v5660_v52 = vpack.c.bf16 %v1514_v41, %v1512_v42  ;;  %v5246_v49 = vld [vmem:[%s9194_s1 + $0x230] sm:$0xff]  ;;  %v1761_v41 = vrot.slane %v7217_v40, %v6475_v12 }
 0x14c   :  { %5655 = vmatprep.subr.bf16.mxu0 %v5654_v61  ;;  %3013 = vrot.lane.b32.xlu0 %v7151_v4, %s6308_s14  ;;  %v5236_v61 = vld [vmem:[%s9194_s1 + $0x1e0] sm:$0xff]  ;;  %v1748_v42 = vsel %vm1746_vm7, %v7185_v8, %v7223_v34  ;;  %v7373_v40 = vld [vmem:[%s9193_s5 + $0x10] sm:$0x3] }
 0x14d   :  { %3019 = vrot.lane.b32.xlu1 %v7165_v32, %s6308_s14  ;;  %v1770_v34 = vmul.f32 %v1761_v41, %v1748_v42 }
 0x14e   :  { %5224 = vmatmul.mubr.msk.f32.gmra.mrb[2].mxu0 %vm103_vm2, %v5212_v14  ;;  %v5662_v14 = vpack.c.bf16 %v1519_v53, %v1517_v57  ;;  %v1743_v45 = vpop.permute.xlu0 %1742 }
 0x14f   :  { %1133 = vmatprep.mubr.f32.mxu0 %v9199_v6  ;;  %5657 = vmatpush1.bf16.msra.mxu0 %v5656_v15  ;;  %v1771_v15 = vmul.f32 %v7239_v58, %v1752_v59  ;;  %v1753_v53 = vsel %vm1746_vm7, %v1743_v45, %v1735_v36 }
 0x150   :  { %5659 = vmatprep.subr.bf16.mxu0 %v5658_v16  ;;  %v1769_v16 = vmul.f32 %v7239_v58, %v1751_v60  ;;  %3021 = vrot.lane.b32.xlu0 %v7170_v33, %s6308_s14  ;;  %v1749_v60 = vsel %vm1746_vm7, %v1735_v36, %v1743_v45  ;;  %v5267_v45 = vld [vmem:[%s9194_s1 + $0x270] sm:$0xff] }
 0x151   :  { %3260 = vrot.lane.b32.xlu1 %v7108_v2, %s6309_s15 }
 0x152   :  { %5225 = vmatmul.mubr.msk.f32.gmra.mrb[4].mxu0 %vm103_vm2, %v5213_v3  ;;  %v5237_v3 = vld [vmem:[%s9194_s1 + $0x1e8] sm:$0xff]  ;;  %v7343_v48 = vpop.permute.xlu0 %1986 }
 0x153   :  { %1139 = vmatprep.mubr.f32.mxu0 %v9199_v6 }
 0x154   :  { %3262 = vrot.lane.b32.xlu0 %v7113_v24, %s6309_s15 }
 0x155   :  { %3268 = vrot.lane.b32.xlu1 %v7127_v25, %s6309_s15 }
 0x156   :  { %5226 = vmatmul.mubr.msk.f32.gmra.mrb[6].mxu0 %vm103_vm2, %v5214_v20  ;;  %v5664_v20 = vpack.c.bf16 %v1518_v62, %v1516_v63 }
 0x157   :  { %1145 = vmatprep.mubr.f32.mxu0 %v9199_v6 }
 0x158   :  { %3270 = vrot.lane.b32.xlu0 %v7132_v26, %s6309_s15 }
 0x159   :  { %3264 = vrot.lane.b32.xlu1 %v7146_v30, %s6309_s15 }
 0x15a   :  { %5227 = vmatmul.mubr.msk.f32.gmra.mrb[8].mxu0 %vm103_vm2, %v5215_v23  ;;  %v5666_v23 = vpack.c.bf16 %v1771_v15, %v1769_v16  ;;  %v1772_v16 = vmul.f32 %v1761_v41, %v1749_v60 }
 0x15b   :  { %1151 = vmatprep.mubr.f32.mxu0 %v9199_v6 }
 0x15c   :  { %3266 = vrot.lane.b32.xlu0 %v7151_v4, %s6309_s15 }
 0x15d   :  { %3272 = vrot.lane.b32.xlu1 %v7165_v32, %s6309_s15 }
 0x15e   :  { %5228 = vmatmul.mubr.msk.f32.gmra.mrb[10].mxu0 %vm103_vm2, %v5216_v0  ;;  %v5238_v0 = vld [vmem:[%s9194_s1 + $0x1f0] sm:$0xff] }
 0x15f   :  { %1157 = vmatprep.mubr.f32.mxu0 %v9199_v6 }
 0x160   :  { %3274 = vrot.lane.b32.xlu0 %v7170_v33, %s6309_s15 }
 0x161   :  { %3513 = vrot.lane.b32.xlu1 %v7108_v2, %s6310_s16 }
 0x162   :  { %5229 = vmatmul.mubr.msk.f32.gmra.mrb[12].mxu0 %vm103_vm2, %v5217_v27  ;;  %v5239_v27 = vld [vmem:[%s9194_s1 + $0x1f8] sm:$0xff] }
 0x163   :  { %1163 = vmatprep.mubr.f32.mxu0 %v9199_v6 }
 0x164   :  { %3515 = vrot.lane.b32.xlu0 %v7113_v24, %s6310_s16 }
 0x165   :  { %3521 = vrot.lane.b32.xlu1 %v7127_v25, %s6310_s16 }
 0x166   :  { %5230 = vmatmul.mubr.msk.f32.gmra.mrb[14].mxu0 %vm103_vm2, %v5218_v31  ;;  %v5242_v31 = vld [vmem:[%s9194_s1 + $0x210] sm:$0xff] }
 0x167   :  { %1169 = vmatprep.mubr.f32.mxu0 %v9199_v6 }
 0x168   :  { %3523 = vrot.lane.b32.xlu0 %v7132_v26, %s6310_s16 }
 0x169   :  { %3517 = vrot.lane.b32.xlu1 %v7146_v30, %s6310_s16 }
 0x16a   :  { %5231 = vmatmul.mubr.msk.f32.gmra.mrb[16].mxu0 %vm103_vm2, %v5219_v5  ;;  %v1737_v5 = vpop.permute.xlu1 %1736 }
 0x16b   :  { %1175 = vmatprep.mubr.f32.mxu0 %v9199_v6 }
 0x16c   :  { %3519 = vrot.lane.b32.xlu0 %v7151_v4, %s6310_s16 }
 0x16d   :  { %3525 = vrot.lane.b32.xlu1 %v7165_v32, %s6310_s16 }
 0x16e   :  { %5232 = vmatmul.mubr.msk.f32.gmra.mrb[18].mxu0 %vm103_vm2, %v5220_v7  ;;  %v5244_v7 = vld [vmem:[%s9194_s1 + $0x220] sm:$0xff] }
 0x16f   :  { %1181 = vmatprep.mubr.f32.mxu0 %v9199_v6 }
 0x170   :  { %3527 = vrot.lane.b32.xlu0 %v7170_v33, %s6310_s16 }
 0x171   :  { %3766 = vrot.lane.b32.xlu1 %v7108_v2, %s6311_s17 }
 0x172   :  { %5233 = vmatmul.mubr.msk.f32.gmra.mrb[20].mxu0 %vm103_vm2, %v5221_v39  ;;  %v1745_v39 = vpop.permute.xlu1 %1744 }
 0x173   :  { %1187 = vmatprep.mubr.f32.mxu0 %v9199_v6  ;;  %v1754_v51 = vsel %vm1746_vm7, %v1745_v39, %v1737_v5  ;;  %v1750_v57 = vsel %vm1746_vm7, %v1737_v5, %v1745_v39  ;;  %v5265_v5 = vld [vmem:[%s9194_s1 + $0x260] sm:$0xff] }
 0x174   :  { %3768 = vrot.lane.b32.xlu0 %v7113_v24, %s6311_s17  ;;  %v1775_v59 = vmul.f32 %v7239_v58, %v1754_v51  ;;  %v1774_v15 = vmul.f32 %v1761_v41, %v1750_v57  ;;  %v5269_v51 = vld [vmem:[%s9194_s1 + $0x280] sm:$0xff]  ;;  %v5271_v57 = vld [vmem:[%s9194_s1 + $0x290] sm:$0xff] }
 0x175   :  { %3774 = vrot.lane.b32.xlu1 %v7127_v25, %s6311_s17 }
 0x176   :  { %5234 = vmatmul.mubr.msk.f32.gmra.mrb[22].mxu0 %vm103_vm2, %v5222_v50  ;;  %v7341_v47 = vpop.permute.xlu1 %1988  ;;  %v1747_v50 = vsel %vm1746_vm7, %v7187_v38, %v7225_v35  ;;  %v7381_v38 = vpop.permute.xlu0 %1994 }
 0x177   :  { %1377 = vmatprep.mubr.f32.mxu0 %v9199_v6  ;;  %v1768_v35 = vmul.f32 %v1761_v41, %v1747_v50  ;;  %v2007_v63 = vsel %vm2002_vm8, %v7381_v38, %v7343_v48  ;;  %v5268_v41 = vld [vmem:[%s9194_s1 + $0x278] sm:$0xff] }
 0x178   :  { %3776 = vrot.lane.b32.xlu0 %v7132_v26, %s6311_s17 }
 0x179   :  { %3770 = vrot.lane.b32.xlu1 %v7146_v30, %s6311_s17 }
 0x17a   :  { %5248 = vmatmul.mubr.msk.f32.vlgmr.msra.gmra.mrb[0].mxu0 %vm103_vm2, %v5236_v61  ;;  %v7379_v8 = vpop.permute.xlu1 %1996  ;;  %v7395_v61 = vrot.slane %v7373_v40, %v6477_v13 }
 0x17b   :  { %5661 = vmatpush1.bf16.msra.mxu0 %v5660_v52  ;;  %1383 = vmatprep.mubr.f32.mxu0 %v9199_v6  ;;  %v1773_v52 = vmul.f32 %v7239_v58, %v1753_v53  ;;  %v2008_v62 = vsel %vm2002_vm8, %v7379_v8, %v7341_v47  ;;  %v5668_v58 = vpack.c.bf16 %v1770_v34, %v1768_v35  ;;  %v5270_v34 = vld [vmem:[%s9194_s1 + $0x288] sm:$0xff] }
 0x17c   :  { %5663 = vmatprep.subr.bf16.mxu0 %v5662_v14  ;;  %3772 = vrot.lane.b32.xlu0 %v7151_v4, %s6311_s17  ;;  %v5261_v14 = vld [vmem:[%s9194_s1 + $0x240] sm:$0xff] }
 0x17d   :  { %3778 = vrot.lane.b32.xlu1 %v7165_v32, %s6311_s17 }
 0x17e   :  { %5249 = vmatmul.mubr.msk.f32.gmra.mrb[2].mxu0 %vm103_vm2, %v5237_v3  ;;  %v5670_v3 = vpack.c.bf16 %v1775_v59, %v1773_v52  ;;  %v1993_v36 = vpop.permute.xlu1 %1992  ;;  %v2017_v59 = vrot.slane %v7373_v40, %v6475_v12 }
 0x17f   :  { %1389 = vmatprep.mubr.f32.mxu0 %v9199_v6  ;;  %5665 = vmatpush1.bf16.msra.mxu0 %v5664_v20  ;;  %v2027_v20 = vmul.f32 %v7395_v61, %v2008_v62 }
 0x180   :  { %5667 = vmatprep.subr.bf16.mxu0 %v5666_v23  ;;  %v2025_v23 = vmul.f32 %v7395_v61, %v2007_v63  ;;  %3780 = vrot.lane.b32.xlu0 %v7170_v33, %s6311_s17 }
 0x181   :  { %4019 = vrot.lane.b32.xlu1 %v7108_v2, %s6312_s20 }
 0x182   :  { %5250 = vmatmul.mubr.msk.f32.gmra.mrb[4].mxu0 %vm103_vm2, %v5238_v0  ;;  %v5262_v0 = vld [vmem:[%s9194_s1 + $0x248] sm:$0xff]  ;;  %v2001_v39 = vpop.permute.xlu1 %2000 }
 0x183   :  { %1395 = vmatprep.mubr.f32.mxu0 %v9199_v6  ;;  %v2010_v40 = vsel %vm2002_vm8, %v2001_v39, %v1993_v36 }
 0x184   :  { %4021 = vrot.lane.b32.xlu0 %v7113_v24, %s6312_s20  ;;  %v2031_v63 = vmul.f32 %v7395_v61, %v2010_v40  ;;  %v5297_v40 = vld [vmem:[%s9194_s1 + $0x2f8] sm:$0xff] }
 0x185   :  { %4027 = vrot.lane.b32.xlu1 %v7127_v25, %s6312_s20 }
 0x186   :  { %5251 = vmatmul.mubr.msk.f32.gmra.mrb[6].mxu0 %vm103_vm2, %v5239_v27  ;;  %v5672_v27 = vpack.c.bf16 %v1774_v15, %v1772_v16  ;;  %v5286_v16 = vld [vmem:[%s9194_s1 + $0x2a0] sm:$0xff] }
 0x187   :  { %1401 = vmatprep.mubr.f32.mxu0 %v9199_v6 }
 0x188   :  { %4029 = vrot.lane.b32.xlu0 %v7132_v26, %s6312_s20 }
 0x189   :  { %4023 = vrot.lane.b32.xlu1 %v7146_v30, %s6312_s20 }
 0x18a   :  { %5252 = vmatmul.mubr.msk.f32.gmra.mrb[8].mxu0 %vm103_vm2, %v5240_v28  ;;  %v5674_v28 = vpack.c.bf16 %v2027_v20, %v2025_v23 }
 0x18b   :  { %1407 = vmatprep.mubr.f32.mxu0 %v9199_v6 }
 0x18c   :  { %4025 = vrot.lane.b32.xlu0 %v7151_v4, %s6312_s20 }
 0x18d   :  { %4031 = vrot.lane.b32.xlu1 %v7165_v32, %s6312_s20 }
 0x18e   :  { %5253 = vmatmul.mubr.msk.f32.gmra.mrb[10].mxu0 %vm103_vm2, %v5241_v29  ;;  %v5263_v29 = vld [vmem:[%s9194_s1 + $0x250] sm:$0xff] }
 0x18f   :  { %1413 = vmatprep.mubr.f32.mxu0 %v9199_v6 }
 0x190   :  { %4033 = vrot.lane.b32.xlu0 %v7170_v33, %s6312_s20 }
 0x191   :  { %4272 = vrot.lane.b32.xlu1 %v7108_v2, %s6313_s26 }
 0x192   :  { %5254 = vmatmul.mubr.msk.f32.gmra.mrb[12].mxu0 %vm103_vm2, %v5242_v31  ;;  %v5264_v31 = vld [vmem:[%s9194_s1 + $0x258] sm:$0xff] }
 0x193   :  { %1419 = vmatprep.mubr.f32.mxu0 %v9199_v6 }
 0x194   :  { %4274 = vrot.lane.b32.xlu0 %v7113_v24, %s6313_s26 }
 0x195   :  { %4280 = vrot.lane.b32.xlu1 %v7127_v25, %s6313_s26 }
 0x196   :  { %5255 = vmatmul.mubr.msk.f32.gmra.mrb[14].mxu0 %vm103_vm2, %v5243_v37  ;;  %v1991_v37 = vpop.permute.xlu0 %1990 }
 0x197   :  { %1425 = vmatprep.mubr.f32.mxu0 %v9199_v6 }
 0x198   :  { %4282 = vrot.lane.b32.xlu0 %v7132_v26, %s6313_s26 }
 0x199   :  { %4276 = vrot.lane.b32.xlu1 %v7146_v30, %s6313_s26 }
 0x19a   :  { %5256 = vmatmul.mubr.msk.f32.gmra.mrb[16].mxu0 %vm103_vm2, %v5244_v7  ;;  %v5266_v7 = vld [vmem:[%s9194_s1 + $0x268] sm:$0xff] }
 0x19b   :  { %1431 = vmatprep.mubr.f32.mxu0 %v9199_v6 }
 0x19c   :  { %4278 = vrot.lane.b32.xlu0 %v7151_v4, %s6313_s26 }
 0x19d   :  { %4284 = vrot.lane.b32.xlu1 %v7165_v32, %s6313_s26 }
 0x19e   :  { %5257 = vmatmul.mubr.msk.f32.gmra.mrb[18].mxu0 %vm103_vm2, %v5245_v46  ;;  %v1999_v46 = vpop.permute.xlu0 %1998 }
 0x19f   :  { %1437 = vmatprep.mubr.f32.mxu0 %v9199_v6  ;;  %v2009_v62 = vsel %vm2002_vm8, %v1999_v46, %v1991_v37 }
 0x1a0   :  { %4286 = vrot.lane.b32.xlu0 %v7170_v33, %s6313_s26 }
 0x1a1   :  { %4525 = vrot.lane.b32.xlu1 %v7108_v2, %s6314_s12  ;;  %v2004_v2 = vsel %vm2002_vm8, %v7341_v47, %v7379_v8 }
 0x1a2   :  { %5258 = vmatmul.mubr.msk.f32.gmra.mrb[20].mxu0 %vm103_vm2, %v5246_v49  ;;  %v7475_v49 = vpop.permute.xlu1 %2261  ;;  %v7481_v42 = vpop.permute.xlu0 %2256  ;;  %v2026_v47 = vmul.f32 %v2017_v59, %v2004_v2 }
 0x1a3   :  { %1443 = vmatprep.mubr.f32.mxu0 %v9199_v6 }
 0x1a4   :  { %4527 = vrot.lane.b32.xlu0 %v7113_v24, %s6314_s12  ;;  %v2003_v24 = vsel %vm2002_vm8, %v7343_v48, %v7381_v38  ;;  %v5272_v48 = vld [vmem:[%s9194_s1 + $0x298] sm:$0xff]  ;;  %v2006_v38 = vsel %vm2002_vm8, %v1993_v36, %v2001_v39 }
 0x1a5   :  { %4533 = vrot.lane.b32.xlu1 %v7127_v25, %s6314_s12  ;;  %v2024_v8 = vmul.f32 %v2017_v59, %v2003_v24 }
 0x1a6   :  { %5259 = vmatmul.mubr.msk.f32.gmra.mrb[22].mxu0 %vm103_vm2, %v5247_v54  ;;  %v7488_v50 = vpop.permute.xlu1 %2266  ;;  %v7494_v53 = vpop.permute.xlu0 %2271 }
 0x1a7   :  { %1633 = vmatprep.mubr.f32.mxu0 %v9199_v6  ;;  %v5676_v15 = vpack.c.bf16 %v2026_v47, %v2024_v8  ;;  %v5311_v8 = vld [vmem:[%s9194_s1 + $0x300] sm:$0xff] }
 0x1a8   :  { %4535 = vrot.lane.b32.xlu0 %v7132_v26, %s6314_s12  ;;  %v2005_v26 = vsel %vm2002_vm8, %v1991_v37, %v1999_v46 }
 0x1a9   :  { %4529 = vrot.lane.b32.xlu1 %v7146_v30, %s6314_s12  ;;  %v2028_v20 = vmul.f32 %v2017_v59, %v2005_v26  ;;  %v5287_v30 = vld [vmem:[%s9194_s1 + $0x2a8] sm:$0xff] }
 0x1aa   :  { %5273 = vmatmul.mubr.msk.f32.vlgmr.msra.gmra.mrb[0].mxu0 %vm103_vm2, %v5261_v14  ;;  %v7505_v35 = vpop.permute.xlu1 %2276  ;;  %v7507_v54 = vpop.permute.xlu0 %2281 }
 0x1ab   :  { %5669 = vmatpush1.bf16.msra.mxu0 %v5668_v58  ;;  %1639 = vmatprep.mubr.f32.mxu0 %v9199_v6  ;;  %v2029_v58 = vmul.f32 %v7395_v61, %v2009_v62 }
 0x1ac   :  { %5671 = vmatprep.subr.bf16.mxu0 %v5670_v3  ;;  %4531 = vrot.lane.b32.xlu0 %v7151_v4, %s6314_s12  ;;  %v2030_v3 = vmul.f32 %v2017_v59, %v2006_v38  ;;  %v5296_v59 = vld [vmem:[%s9194_s1 + $0x2f0] sm:$0xff] }
 0x1ad   :  { %v5678_v23 = vpack.c.bf16 %v2031_v63, %v2029_v58  ;;  %4537 = vrot.lane.b32.xlu1 %v7165_v32, %s6314_s12  ;;  %v5288_v32 = vld [vmem:[%s9194_s1 + $0x2b0] sm:$0xff]  ;;  %v5312_v63 = vld [vmem:[%s9194_s1 + $0x308] sm:$0xff] }
 0x1ae   :  { %5274 = vmatmul.mubr.msk.f32.gmra.mrb[2].mxu0 %vm103_vm2, %v5262_v0  ;;  %v7520_v60 = vpop.permute.xlu1 %2286  ;;  %v7530_v52 = vpop.permute.xlu0 %2291  ;;  %v5680_v4 = vpack.c.bf16 %v2030_v3, %v2028_v20  ;;  %v5314_v20 = vld [vmem:[%s9194_s1 + $0x318] sm:$0xff] }
 0x1af   :  { %1645 = vmatprep.mubr.f32.mxu0 %v9199_v6  ;;  %5673 = vmatpush1.bf16.msra.mxu0 %v5672_v27 }
 0x1b0   :  { %5675 = vmatprep.subr.bf16.mxu0 %v5674_v28  ;;  %4539 = vrot.lane.b32.xlu0 %v7170_v33, %s6314_s12 }
 0x1b1   :  { %4792 = vperm.xlu1 %6197, %v6991_v44  }
 0x1b2   :  { %5275 = vmatmul.mubr.msk.f32.gmra.mrb[4].mxu0 %vm103_vm2, %v5263_v29  ;;  %v7545_v25 = vpop.permute.xlu1 %2296  ;;  %v7553_v14 = vpop.permute.xlu0 %2301 }
 0x1b3   :  { %1651 = vmatprep.mubr.f32.mxu0 %v9199_v6 }
 0x1b4   :  { %4797 = vperm.xlu0 %6196, %v6986_v43   ;;  %v5289_v43 = vld [vmem:[%s9194_s1 + $0x2b8] sm:$0xff] }
 0x1b5   :  { %4802 = vperm.xlu1 %6197, %v7021_v55   ;;  %v5290_v55 = vld [vmem:[%s9194_s1 + $0x2c0] sm:$0xff] }
 0x1b6   :  { %5276 = vmatmul.mubr.msk.f32.gmra.mrb[6].mxu0 %vm103_vm2, %v5264_v31  ;;  %v7564_v61 = vpop.permute.xlu1 %2306  ;;  %v7566_v0 = vpop.permute.xlu0 %2311 }
 0x1b7   :  { %1657 = vmatprep.mubr.f32.mxu0 %v9199_v6 }
 0x1b8   :  { %4807 = vperm.xlu0 %6196, %v7026_v56  }
 0x1b9   :  { %4812 = vperm.xlu1 %6197, %v7040_v9   ;;  %v5291_v9 = vld [vmem:[%s9194_s1 + $0x2c8] sm:$0xff] }
 0x1ba   :  { %5277 = vmatmul.mubr.msk.f32.gmra.mrb[8].mxu0 %vm103_vm2, %v5265_v5  ;;  %v7577_v27 = vpop.permute.xlu1 %2605  ;;  %v7579_v28 = vpop.permute.xlu0 %2607 }
 0x1bb   :  { %1663 = vmatprep.mubr.f32.mxu0 %v9199_v6 }
 0x1bc   :  { %4817 = vperm.xlu0 %6196, %v7045_v10  }
 0x1bd   :  { %4822 = vperm.xlu1 %6197, %v7057_v17   ;;  %v5292_v17 = vld [vmem:[%s9194_s1 + $0x2d0] sm:$0xff] }
 0x1be   :  { %5278 = vmatmul.mubr.msk.f32.gmra.mrb[10].mxu0 %vm103_vm2, %v5266_v7  ;;  %v7588_v33 = vpop.permute.xlu1 %2613  ;;  %v7590_v29 = vpop.permute.xlu0 %2615  ;;  %v5293_v7 = vld [vmem:[%s9194_s1 + $0x2d8] sm:$0xff] }
 0x1bf   :  { %1669 = vmatprep.mubr.f32.mxu0 %v9199_v6 }
 0x1c0   :  { %4827 = vperm.xlu0 %6196, %v7062_v1  }
 0x1c1   :  { %4832 = vperm.xlu1 %6197, %v7074_v18   ;;  %v2484_v18 = vld [vmem:[%s9196_s4] sm:$0xff] }
 0x1c2   :  { %5279 = vmatmul.mubr.msk.f32.gmra.mrb[12].mxu0 %vm103_vm2, %v5267_v45  ;;  %v7599_v44 = vpop.permute.xlu1 %2609  ;;  %v7601_v31 = vpop.permute.xlu0 %2611  ;;  %v5294_v45 = vld [vmem:[%s9194_s1 + $0x2e0] sm:$0xff] }
 0x1c3   :  { %1675 = vmatprep.mubr.f32.mxu0 %v9199_v6 }
 0x1c4   :  { %4837 = vperm.xlu0 %6196, %v7079_v19   ;;  %v2485_v19 = vld [vmem:[%s9196_s4 + $0x8] sm:$0x1] }
 0x1c5   :  { %4842 = vperm.xlu1 %6197, %v7091_v21  }
 0x1c6   :  { %5280 = vmatmul.mubr.msk.f32.gmra.mrb[14].mxu0 %vm103_vm2, %v5268_v41  ;;  %v7610_v56 = vpop.permute.xlu1 %2617  ;;  %v7612_v5 = vpop.permute.xlu0 %2619 }
 0x1c7   :  { %1681 = vmatprep.mubr.f32.mxu0 %v9199_v6 }
 0x1c8   :  { %4847 = vperm.xlu0 %6196, %v7096_v22   ;;  %v5021_v22 = vld [vmem:[%s9196_s4 + $0x8] sm:$0x1] }
 0x1c9   :  { %2488 = vperm.xlu1 %6197, %v2484_v18  }
 0x1ca   :  { %5281 = vmatmul.mubr.msk.f32.gmra.mrb[16].mxu0 %vm103_vm2, %v5269_v51  ;;  %v7621_v10 = vpop.permute.xlu1 %3007  ;;  %v7623_v36 = vpop.permute.xlu0 %3009  ;;  %v5295_v51 = vld [vmem:[%s9194_s1 + $0x2e8] sm:$0xff] }
 0x1cb   :  { %1687 = vmatprep.mubr.f32.mxu0 %v9199_v6 }
 0x1cc   :  { %2493 = vperm.xlu0 %6196, %v2485_v19  }
 0x1cd   :  { %5024 = vperm.xlu1 %6197, %v2484_v18  }
 0x1ce   :  { %5282 = vmatmul.mubr.msk.f32.gmra.mrb[18].mxu0 %vm103_vm2, %v5270_v34  ;;  %v7632_v1 = vpop.permute.xlu1 %3015  ;;  %v7634_v37 = vpop.permute.xlu0 %3017 }
 0x1cf   :  { %1693 = vmatprep.mubr.f32.mxu0 %v9199_v6 }
 0x1d0   :  { %5029 = vperm.xlu0 %6196, %v5021_v22  }
 0x1d2   :  { %5283 = vmatmul.mubr.msk.f32.gmra.mrb[20].mxu0 %vm103_vm2, %v5271_v57  ;;  %v7649_v39 = vpop.permute.xlu1 %3011  ;;  %v7651_v21 = vpop.permute.xlu0 %3013 }
 0x1d3   :  { %1699 = vmatprep.mubr.f32.mxu0 %v9199_v6 }
 0x1d6   :  { %5284 = vmatmul.mubr.msk.f32.gmra.mrb[22].mxu0 %vm103_vm2, %v5272_v48  ;;  %v7661_v46 = vpop.permute.xlu1 %3019  ;;  %v7663_v41 = vpop.permute.xlu0 %3021 }
 0x1d7   :  { %1889 = vmatprep.mubr.f32.mxu0 %v9199_v6 }
 0x1da   :  { %5298 = vmatmul.mubr.msk.f32.vlgmr.msra.gmra.mrb[0].mxu0 %vm103_vm2, %v5286_v16  ;;  %v7670_v34 = vpop.permute.xlu1 %3260  ;;  %v7672_v57 = vpop.permute.xlu0 %3262 }
 0x1db   :  { %5677 = vmatpush1.bf16.msra.mxu0 %v5676_v15  ;;  %1895 = vmatprep.mubr.f32.mxu0 %v9199_v6  ;;  %v5313_v15 = vld [vmem:[%s9194_s1 + $0x310] sm:$0xff] }
 0x1dc   :  { %5679 = vmatprep.subr.bf16.mxu0 %v5678_v23 }
 0x1de   :  { %5299 = vmatmul.mubr.msk.f32.gmra.mrb[2].mxu0 %vm103_vm2, %v5287_v30  ;;  %v7679_v2 = vpop.permute.xlu1 %3268  ;;  %v7681_v24 = vpop.permute.xlu0 %3270 }
 0x1df   :  { %1901 = vmatprep.mubr.f32.mxu0 %v9199_v6  ;;  %5681 = vmatpush1.bf16.msra.mxu0 %v5680_v4  ;;  %v5315_v4 = vld [vmem:[%s9194_s1 + $0x320] sm:$0xff] }
 0x1e2   :  { %5300 = vmatmul.mubr.msk.f32.gmra.mrb[4].mxu0 %vm103_vm2, %v5288_v32  ;;  %v7688_v62 = vpop.permute.xlu1 %3264  ;;  %v7690_v47 = vpop.permute.xlu0 %3266 }
 0x1e3   :  { %1907 = vmatprep.mubr.f32.mxu0 %v9199_v6  ;;  %9238 = vst [vmem:[#allocation2_spill] sm:$0xff] %v7690_v47 }
 0x1e6   :  { %5301 = vmatmul.mubr.msk.f32.gmra.mrb[6].mxu0 %vm103_vm2, %v5289_v43  ;;  %v7697_v48 = vpop.permute.xlu1 %3272  ;;  %v7699_v38 = vpop.permute.xlu0 %3274 }
 0x1e7   :  { %1913 = vmatprep.mubr.f32.mxu0 %v9199_v6 }
 0x1ea   :  { %5302 = vmatmul.mubr.msk.f32.gmra.mrb[8].mxu0 %vm103_vm2, %v5290_v55  ;;  %v7706_v26 = vpop.permute.xlu1 %3513  ;;  %v7708_v58 = vpop.permute.xlu0 %3515  ;;  %v5480_v55 = vld [vmem:[%s9193_s5 + $0xa] sm:$0x3] }
 0x1eb   :  { %1919 = vmatprep.mubr.f32.mxu0 %v9199_v6  ;;  %9239 = vst [vmem:[#allocation3_spill] sm:$0xff] %v7706_v26  ;;  %9240 = vst [vmem:[#allocation4_spill] sm:$0xff] %v7708_v58  ;;  %v3795_v19 = vrot.slane %v5480_v55, %v6475_v12  ;;  %v5319_v55 = vld [vmem:[%s9194_s1 + $0x340] sm:$0xff] }
 0x1ee   :  { %5303 = vmatmul.mubr.msk.f32.gmra.mrb[10].mxu0 %vm103_vm2, %v5291_v9  ;;  %v7715_v16 = vpop.permute.xlu1 %3521  ;;  %v7717_v3 = vpop.permute.xlu0 %3523  ;;  %v5316_v9 = vld [vmem:[%s9194_s1 + $0x328] sm:$0xff] }
 0x1ef   :  { %1925 = vmatprep.mubr.f32.mxu0 %v9199_v6  ;;  %9241 = vst [vmem:[#allocation5_spill] sm:$0xff] %v7715_v16  ;;  %9242 = vst [vmem:[#allocation6_spill] sm:$0xff] %v7717_v3 }
 0x1f2   :  { %5304 = vmatmul.mubr.msk.f32.gmra.mrb[12].mxu0 %vm103_vm2, %v5292_v17  ;;  %v7724_v23 = vpop.permute.xlu1 %3517  ;;  %v7726_v30 = vpop.permute.xlu0 %3519 }
 0x1f3   :  { %1931 = vmatprep.mubr.f32.mxu0 %v9199_v6  ;;  %9243 = vst [vmem:[#allocation7_spill] sm:$0xff] %v7724_v23  ;;  %9244 = vst [vmem:[#allocation8_spill] sm:$0xff] %v7726_v30 }
 0x1f6   :  { %5305 = vmatmul.mubr.msk.f32.gmra.mrb[14].mxu0 %vm103_vm2, %v5293_v7  ;;  %v7733_v32 = vpop.permute.xlu1 %3525  ;;  %v7735_v43 = vpop.permute.xlu0 %3527  ;;  %v5317_v7 = vld [vmem:[%s9194_s1 + $0x330] sm:$0xff] }
 0x1f7   :  { %1937 = vmatprep.mubr.f32.mxu0 %v9199_v6  ;;  %9245 = vst [vmem:[#allocation9_spill] sm:$0xff] %v7733_v32  ;;  %9246 = vst [vmem:[#allocation10_spill] sm:$0xff] %v7735_v43 }
 0x1fa   :  { %5306 = vmatmul.mubr.msk.f32.gmra.mrb[16].mxu0 %vm103_vm2, %v5294_v45  ;;  %v7745_v17 = vpop.permute.xlu1 %3766  ;;  %v7747_v18 = vpop.permute.xlu0 %3768 }
 0x1fb   :  { %1943 = vmatprep.mubr.f32.mxu0 %v9199_v6  ;;  %9247 = vst [vmem:[#allocation11_spill] sm:$0xff] %v7745_v17  ;;  %9248 = vst [vmem:[#allocation12_spill] sm:$0xff] %v7747_v18 }
 0x1fe   :  { %5307 = vmatmul.mubr.msk.f32.gmra.mrb[18].mxu0 %vm103_vm2, %v5295_v51  ;;  %v7755_v22 = vpop.permute.xlu1 %3774  ;;  %v7761_v51 = vpop.permute.xlu0 %3776 }
 0x1ff   :  { %1949 = vmatprep.mubr.f32.mxu0 %v9199_v6  ;;  %9249 = vst [vmem:[#allocation13_spill] sm:$0xff] %v7755_v22  ;;  %v3782_v45 = vsel %vm1234_vm5, %v7745_v17, %v7755_v22  ;;  %9250 = vst [vmem:[#allocation14_spill] sm:$0xff] %v7761_v51 }
 0x202   :  { %5308 = vmatmul.mubr.msk.f32.gmra.mrb[20].mxu0 %vm103_vm2, %v5296_v59  ;;  %v7763_v59 = vmul.f32 %v3795_v19, %v3782_v45 }
 0x203   :  { %1955 = vmatprep.mubr.f32.mxu0 %v9199_v6 }
 0x204   :  { %9251 = vst [vmem:[#allocation15_spill] sm:$0xff] %v7763_v59  ;;  %v9259_v59 = vmov 0.0  }
 0x206   :  { %5309 = vmatmul.mubr.msk.f32.gmra.mrb[22].mxu0 %vm103_vm2, %v5297_v40  ;;  %v3783_v40 = vsel %vm1234_vm5, %v7747_v18, %v7761_v51 }
 0x207   :  { %2145 = vmatprep.mubr.f32.mxu0 %v9199_v6 }
 0x20a   :  { %5323 = vmatmul.mubr.msk.f32.vlgmr.msra.gmra.mrb[0].mxu0 %vm103_vm2, %v5311_v8  ;;  %v7770_v8 = vmul.f32 %v3795_v19, %v3783_v40 }
 0x20b   :  { %2151 = vmatprep.mubr.f32.mxu0 %v9199_v6 }
 0x20c   :  { %9252 = vst [vmem:[#allocation16_spill] sm:$0xff] %v7770_v8 }
 0x20e   :  { %5324 = vmatmul.mubr.msk.f32.gmra.mrb[2].mxu0 %vm103_vm2, %v5312_v63  ;;  %v5318_v63 = vld [vmem:[%s9194_s1 + $0x338] sm:$0xff] }
 0x20f   :  { %2157 = vmatprep.mubr.f32.mxu0 %v9199_v6 }
 0x212   :  { %5325 = vmatmul.mubr.msk.f32.gmra.mrb[4].mxu0 %vm103_vm2, %v5313_v15  ;;  %v7776_v15 = vpop.permute.xlu1 %3770 }
 0x213   :  { %2163 = vmatprep.mubr.f32.mxu0 %v9199_v6  ;;  %9253 = vst [vmem:[#allocation17_spill] sm:$0xff] %v7776_v15  ;;  %v9313_v11 = vld [vmem:[#allocation16_spill] sm:$0xff] }
 0x216   :  { %5326 = vmatmul.mubr.msk.f32.gmra.mrb[6].mxu0 %vm103_vm2, %v5314_v20 }
 0x217   :  { %2169 = vmatprep.mubr.f32.mxu0 %v9199_v6 }
 0x21a   :  { %5327 = vmatmul.mubr.msk.f32.gmra.mrb[8].mxu0 %vm103_vm2, %v5315_v4  ;;  %v7780_v4 = vpop.permute.xlu0 %3772 }
 0x21b   :  { %2175 = vmatprep.mubr.f32.mxu0 %v9199_v6  ;;  %9254 = vst [vmem:[#allocation18_spill] sm:$0xff] %v7780_v4 }
 0x21e   :  { %5328 = vmatmul.mubr.msk.f32.gmra.mrb[10].mxu0 %vm103_vm2, %v5316_v9  ;;  %v7787_v9 = vpop.permute.xlu1 %3778  ;;  %v7793_v45 = vpop.permute.xlu0 %3780 }
 0x21f   :  { %2181 = vmatprep.mubr.f32.mxu0 %v9199_v6  ;;  %9255 = vst [vmem:[#allocation19_spill] sm:$0xff] %v7787_v9  ;;  %9256 = vst [vmem:[#allocation20_spill] sm:$0xff] %v7793_v45 }
 0x222   :  { %5329 = vmatmul.mubr.msk.f32.gmra.mrb[12].mxu0 %vm103_vm2, %v5317_v7  ;;  %v3784_v7 = vsel %vm1234_vm5, %v7776_v15, %v7787_v9  ;;  %v7811_v8 = vpop.permute.xlu1 %4019 }
 0x223   :  { %2187 = vmatprep.mubr.f32.mxu0 %v9199_v6  ;;  %v7795_v40 = vmul.f32 %v3795_v19, %v3784_v7  ;;  %v5320_v7 = vld [vmem:[%s9194_s1 + $0x348] sm:$0xff]  ;;  %9260 = vst [vmem:[#allocation23_spill] sm:$0xff] %v7811_v8 }
 0x225   :  { %9257 = vst [vmem:[#allocation21_spill] sm:$0xff] %v7795_v40 }
 0x226   :  { %5330 = vmatmul.mubr.msk.f32.gmra.mrb[14].mxu0 %vm103_vm2, %v5318_v63  ;;  %v3785_v63 = vsel %vm1234_vm5, %v7780_v4, %v7793_v45  ;;  %v7815_v45 = vpop.permute.xlu0 %4021 }
 0x227   :  { %2193 = vmatprep.mubr.f32.mxu0 %v9199_v6  ;;  %v7802_v20 = vmul.f32 %v3795_v19, %v3785_v63  ;;  %v5505_v6 = vld [vmem:[%s9193_s5 + $0xc] sm:$0x3]  ;;  %9261 = vst [vmem:[#allocation24_spill] sm:$0xff] %v7815_v45  ;;  %v7823_v63 = vpop.permute.xlu1 %4027 }
 0x228   :  { %v4048_v19 = vrot.slane %v5505_v6, %v6475_v12  ;;  %9262 = vst [vmem:[#allocation25_spill] sm:$0xff] %v7823_v63  ;;  %v4035_v4 = vsel %vm1490_vm6, %v7811_v8, %v7823_v63 }
 0x229   :  { %9258 = vst [vmem:[#allocation22_spill] sm:$0xff] %v7802_v20  ;;  %v5322_v20 = vld [vmem:[%s9194_s1 + $0x358] sm:$0xff] }
 0x22a   :  { %5331 = vmatmul.mubr.msk.f32.gmra.mrb[16].mxu0 %vm103_vm2, %v5319_v55  ;;  %v5321_v55 = vld [vmem:[%s9194_s1 + $0x350] sm:$0xff]  ;;  %v7829_v9 = vpop.permute.xlu0 %4029  ;;  %v7831_v40 = vmul.f32 %v4048_v19, %v4035_v4 }
 0x22b   :  { %2199 = vmatprep.mubr.f32.mxu0 %v9259_v59  ;;  %9263 = vst [vmem:[#allocation26_spill] sm:$0xff] %v7829_v9  ;;  %v4036_v6 = vsel %vm1490_vm6, %v7815_v45, %v7829_v9  ;;  %v4024_v63 = vpop.permute.xlu1 %4023 }
 0x22c   :  { %9264 = vst [vmem:[#allocation27_spill] sm:$0xff] %v7831_v40  ;;  %v5530_v40 = vld [vmem:[%s9193_s5 + $0xe] sm:$0x3] }
 0x22e   :  { %5332 = vmatmul.mubr.msk.f32.gmra.mrb[18].mxu0 %vm103_vm2, %v5320_v7  ;;  %v7838_v7 = vmul.f32 %v4048_v19, %v4036_v6  ;;  %v4026_v8 = vpop.permute.xlu0 %4025 }
 0x22f   :  { %2205 = vmatprep.mubr.f32.mxu0 %v9259_v59  ;;  %v4032_v15 = vpop.permute.xlu1 %4031 }
 0x230   :  { %9265 = vst [vmem:[#allocation28_spill] sm:$0xff] %v7838_v7  ;;  %v7852_v6 = vsel %vm1490_vm6, %v4032_v15, %v4024_v63 }
 0x231   :  { %9266 = vst [vmem:[#allocation29_spill] sm:$0xff] %v7852_v6 }
 0x232   :  { %5333 = vmatmul.mubr.msk.f32.gmra.mrb[20].mxu0 %vm103_vm2, %v5321_v55  ;;  %v4037_v55 = vsel %vm1490_vm6, %v4024_v63, %v4032_v15  ;;  %v4034_v9 = vpop.permute.xlu0 %4033 }
 0x233   :  { %2211 = vmatprep.mubr.f32.mxu0 %v9259_v59  ;;  %v7854_v45 = vmul.f32 %v4048_v19, %v4037_v55  ;;  %v4038_v51 = vsel %vm1490_vm6, %v4026_v8, %v4034_v9  ;;  %v7860_v4 = vsel %vm1490_vm6, %v4034_v9, %v4026_v8  ;;  %v4273_v7 = vpop.permute.xlu1 %4272  ;;  %v4301_v55 = vrot.slane %v5530_v40, %v6475_v12 }
 0x234   :  { %9268 = vst [vmem:[#allocation31_spill] sm:$0xff] %v7860_v4 }
 0x235   :  { %9267 = vst [vmem:[#allocation30_spill] sm:$0xff] %v7854_v45 }
 0x236   :  { %5334 = vmatmul.mubr.msk.f32.gmra.mrb[22].mxu0 %vm103_vm2, %v5322_v20  ;;  %v7862_v20 = vmul.f32 %v4048_v19, %v4038_v51  ;;  %v4275_v63 = vpop.permute.xlu0 %4274 }
 0x237   :  { %5102 = vmatprep.mubr.f32.mxu0 %v9259_v59  ;;  %v4281_v18 = vpop.permute.xlu1 %4280 }
 0x238   :  { %9269 = vst [vmem:[#allocation32_spill] sm:$0xff] %v7862_v20  ;;  %v4288_v22 = vsel %vm1746_vm7, %v4273_v7, %v4281_v18  ;;  %v7874_v8 = vsel %vm1746_vm7, %v4281_v18, %v4273_v7  ;;  %v5555_v20 = vld [vmem:[%s9193_s5 + $0x10] sm:$0x3] }
 0x239   :  { %9270 = vst [vmem:[#allocation33_spill] sm:$0xff] %v7874_v8  ;;  %v7876_v9 = vmul.f32 %v4301_v55, %v4288_v22 }
 0x23a   :  { %v4283_v51 = vpop.permute.xlu0 %4282 }
 0x23b   :  { %9271 = vst [vmem:[#allocation34_spill] sm:$0xff] %v7876_v9  ;;  %v4289_v19 = vsel %vm1746_vm7, %v4275_v63, %v4283_v51  ;;  %v7882_v15 = vsel %vm1746_vm7, %v4283_v51, %v4275_v63  ;;  %v4277_v40 = vpop.permute.xlu1 %4276 }
 0x23c   :  { %9272 = vst [vmem:[#allocation35_spill] sm:$0xff] %v7882_v15  ;;  %v7884_v45 = vmul.f32 %v4301_v55, %v4289_v19 }
 0x23e   :  { %9273 = vst [vmem:[#allocation36_spill] sm:$0xff] %v7884_v45  ;;  %v4279_v17 = vpop.permute.xlu0 %4278 }
 0x23f   :  { %v4285_v30 = vpop.permute.xlu1 %4284 }
 0x240   :  { %v4290_v18 = vsel %vm1746_vm7, %v4277_v40, %v4285_v30  ;;  %v7892_v22 = vsel %vm1746_vm7, %v4285_v30, %v4277_v40 }
 0x241   :  { %9274 = vst [vmem:[#allocation37_spill] sm:$0xff] %v7892_v22  ;;  %v7894_v8 = vmul.f32 %v4301_v55, %v4290_v18  ;;  %v4554_v18 = vrot.slane %v5555_v20, %v6475_v12 }
 0x242   :  { %v4287_v7 = vpop.permute.xlu0 %4286 }
 0x243   :  { %9275 = vst [vmem:[#allocation38_spill] sm:$0xff] %v7894_v8  ;;  %v4291_v63 = vsel %vm1746_vm7, %v4279_v17, %v4287_v7  ;;  %v7900_v51 = vsel %vm1746_vm7, %v4287_v7, %v4279_v17  ;;  %v4526_v9 = vpop.permute.xlu1 %4525 }
 0x244   :  { %9276 = vst [vmem:[#allocation39_spill] sm:$0xff] %v7900_v51  ;;  %v7902_v19 = vmul.f32 %v4301_v55, %v4291_v63 }
 0x246   :  { %9277 = vst [vmem:[#allocation40_spill] sm:$0xff] %v7902_v19  ;;  %v4528_v40 = vpop.permute.xlu0 %4527 }
 0x247   :  { %v4534_v45 = vpop.permute.xlu1 %4533 }
 0x248   :  { %v4541_v22 = vsel %vm2002_vm8, %v4526_v9, %v4534_v45  ;;  %v7914_v17 = vsel %vm2002_vm8, %v4534_v45, %v4526_v9 }
 0x249   :  { %9278 = vst [vmem:[#allocation41_spill] sm:$0xff] %v7914_v17  ;;  %v7916_v7 = vmul.f32 %v4554_v18, %v4541_v22 }
 0x24a   :  { %v4536_v55 = vpop.permute.xlu0 %4535 }
 0x24b   :  { %9279 = vst [vmem:[#allocation42_spill] sm:$0xff] %v7916_v7  ;;  %v4542_v63 = vsel %vm2002_vm8, %v4528_v40, %v4536_v55  ;;  %v7922_v30 = vsel %vm2002_vm8, %v4536_v55, %v4528_v40  ;;  %v4530_v20 = vpop.permute.xlu1 %4529 }
 0x24c   :  { %9280 = vst [vmem:[#allocation43_spill] sm:$0xff] %v7922_v30  ;;  %v7924_v8 = vmul.f32 %v4554_v18, %v4542_v63 }
 0x24e   :  { %9281 = vst [vmem:[#allocation44_spill] sm:$0xff] %v7924_v8  ;;  %v4532_v51 = vpop.permute.xlu0 %4531 }
 0x24f   :  { %v4538_v15 = vpop.permute.xlu1 %4537 }
 0x250   :  { %v4543_v45 = vsel %vm2002_vm8, %v4530_v20, %v4538_v15  ;;  %v7932_v9 = vsel %vm2002_vm8, %v4538_v15, %v4530_v20 }
 0x251   :  { %9282 = vst [vmem:[#allocation45_spill] sm:$0xff] %v7932_v9  ;;  %v7934_v17 = vmul.f32 %v4554_v18, %v4543_v45 }
 0x252   :  { %v4540_v22 = vpop.permute.xlu0 %4539 }
 0x253   :  { %9283 = vst [vmem:[#allocation46_spill] sm:$0xff] %v7934_v17  ;;  %v4544_v40 = vsel %vm2002_vm8, %v4532_v51, %v4540_v22  ;;  %v7940_v55 = vsel %vm2002_vm8, %v4540_v22, %v4532_v51 }
 0x254   :  { %9284 = vst [vmem:[#allocation47_spill] sm:$0xff] %v7940_v55  ;;  %v7942_v63 = vmul.f32 %v4554_v18, %v4544_v40 }
 0x256   :  { %9285 = vst [vmem:[#allocation48_spill] sm:$0xff] %v7942_v63 }
 0x2dd   :  { %v2147_v7 = vpop.f32.mrb[0].mxu0 }
 0x2de   :  { %v7947_v8 = vadd.f32 %v7481_v42, %v2147_v7  ;;  %v2149_v15 = vpop.f32.mrb[1].mxu0 }
 0x2df   :  { %v7950_v20 = vadd.f32 %v7481_v42, %v2149_v15 }
 0x2e0   :  { %v2362_v45 = vmin.f32 %v7947_v8, 0.0  ;;  %vm2338_vm9 = vcmp.gt.f32.partialorder %v7947_v8, 0.0 }
 0x2e1   :  { %v2363_v9 = vmin.f32 %v7950_v20, 0.0  ;;  %v2153_v30 = vpop.f32.mrb[2].mxu0  ;;  %vm2339_vm10 = vcmp.gt.f32.partialorder %v7950_v20, 0.0 }
 0x2e2   :  { %v2386_v51 = vmul.f32 1.442695, %v2362_v45  ;;  %v7955_v18 = vadd.f32 %v7475_v49, %v2153_v30  ;;  %v2155_v22 = vpop.f32.mrb[3].mxu0 }
 0x2e3   :  { %v2388_v40 = vmul.f32 1.442695, %v2363_v9  ;;  %v7958_v19 = vadd.f32 %v7475_v49, %v2155_v22 }
 0x2e4   :  { %6198 = vpow2.f32 %v2386_v51  ;;  %v2364_v7 = vmin.f32 %v7955_v18, 0.0  ;;  %vm2340_vm11 = vcmp.gt.f32.partialorder %v7955_v18, 0.0 }
 0x2e5   :  { %6200 = vpow2.f32 %v2388_v40  ;;  %v2365_v42 = vmin.f32 %v7958_v19, 0.0  ;;  %v2159_v15 = vpop.f32.mrb[4].mxu0  ;;  %vm2341_vm12 = vcmp.gt.f32.partialorder %v7958_v19, 0.0 }
 0x2e6   :  { %v2390_v17 = vmul.f32 1.442695, %v2364_v7  ;;  %v7963_v63 = vadd.f32 %v7488_v50, %v2159_v15  ;;  %v2161_v45 = vpop.f32.mrb[5].mxu0 }
 0x2e7   :  { %v2392_v55 = vmul.f32 1.442695, %v2365_v42  ;;  %v7966_v30 = vadd.f32 %v7488_v50, %v2161_v45 }
 0x2e8   :  { %6202 = vpow2.f32 %v2390_v17  ;;  %v2366_v49 = vmin.f32 %v7963_v63, 0.0  ;;  %vm2342_vm13 = vcmp.gt.f32.partialorder %v7963_v63, 0.0 }
 0x2e9   :  { %6204 = vpow2.f32 %v2392_v55  ;;  %v2367_v9 = vmin.f32 %v7966_v30, 0.0  ;;  %v2165_v51 = vpop.f32.mrb[6].mxu0  ;;  %vm2343_vm14 = vcmp.gt.f32.partialorder %v7966_v30, 0.0 }
 0x2ea   :  { %v2394_v22 = vmul.f32 1.442695, %v2366_v49  ;;  %v7971_v40 = vadd.f32 %v7494_v53, %v2165_v51  ;;  %v2167_v7 = vpop.f32.mrb[7].mxu0 }
 0x2eb   :  { %v2396_v43 = vmul.f32 1.442695, %v2367_v9  ;;  %v7974_v15 = vadd.f32 %v7494_v53, %v2167_v7 }
 0x2ec   :  { %6206 = vpow2.f32 %v2394_v22  ;;  %v2368_v50 = vmin.f32 %v7971_v40, 0.0  ;;  %vm2344_vm15 = vcmp.gt.f32.partialorder %v7971_v40, 0.0 }
 0x2ed   :  { %6208 = vpow2.f32 %v2396_v43  ;;  %v2369_v17 = vmin.f32 %v7974_v15, 0.0  ;;  %v2171_v42 = vpop.f32.mrb[8].mxu0  ;;  %vm2345_vm7 = vcmp.gt.f32.partialorder %v7974_v15, 0.0 }
 0x2ee   :  { %v6199_v55 = vpop.eup %6198  ;;  %v2398_v45 = vmul.f32 1.442695, %v2368_v50  ;;  %v7979_v23 = vadd.f32 %v7505_v35, %v2171_v42  ;;  %v2173_v49 = vpop.f32.mrb[9].mxu0 }
 0x2ef   :  { %v6201_v51 = vpop.eup %6200  ;;  %v2400_v32 = vmul.f32 1.442695, %v2369_v17  ;;  %v7982_v9 = vadd.f32 %v7505_v35, %v2173_v49  ;;  %v5335_v22 = vadd.f32 -1.0, %v6199_v55 }
 0x2f0   :  { %6210 = vpow2.f32 %v2398_v45  ;;  %v2370_v53 = vmin.f32 %v7979_v23, 0.0  ;;  %v5336_v4 = vadd.f32 -1.0, %v6201_v51  ;;  %vm2346_vm8 = vcmp.gt.f32.partialorder %v7979_v23, 0.0 }
 0x2f1   :  { %6212 = vpow2.f32 %v2400_v32  ;;  %v2371_v43 = vmin.f32 %v7982_v9, 0.0  ;;  %v2177_v7 = vpop.f32.mrb[10].mxu0 }
 0x2f2   :  { %v6203_v50 = vpop.eup %6202  ;;  %v2402_v42 = vmul.f32 1.442695, %v2370_v53  ;;  %v7988_v6 = vadd.f32 %v7507_v54, %v2177_v7  ;;  %v2179_v17 = vpop.f32.mrb[11].mxu0  ;;  %v2458_v53 = vsel %vm2338_vm9, %v7947_v8, %v5335_v22  ;;  %v2459_v3 = vsel %vm2339_vm10, %v7950_v20, %v5336_v4 }
 0x2f3   :  { %v6205_v35 = vpop.eup %6204  ;;  %v2404_v45 = vmul.f32 1.442695, %v2371_v43  ;;  %v7993_v32 = vadd.f32 %v7507_v54, %v2179_v17  ;;  %v5337_v55 = vadd.f32 -1.0, %v6203_v50  ;;  %vm2347_vm9 = vcmp.gt.f32.partialorder %v7982_v9, 0.0 }
 0x2f4   :  { %6214 = vpow2.f32 %v2402_v42  ;;  %v2372_v49 = vmin.f32 %v7988_v6, 0.0  ;;  %v5338_v51 = vadd.f32 -1.0, %v6205_v35  ;;  %vm2348_vm10 = vcmp.gt.f32.partialorder %v7988_v6, 0.0 }
 0x2f5   :  { %6216 = vpow2.f32 %v2404_v45  ;;  %v2373_v7 = vmin.f32 %v7993_v32, 0.0  ;;  %v2183_v58 = vpop.f32.mrb[12].mxu0  ;;  %v2460_v43 = vsel %vm2340_vm11, %v7955_v18, %v5337_v55  ;;  %vm2349_vm11 = vcmp.gt.f32.partialorder %v7993_v32, 0.0 }
 0x2f6   :  { %v6207_v26 = vpop.eup %6206  ;;  %v2406_v54 = vmul.f32 1.442695, %v2372_v49  ;;  %v8002_v17 = vadd.f32 %v7520_v60, %v2183_v58  ;;  %v2185_v50 = vpop.f32.mrb[13].mxu0  ;;  %v2461_v42 = vsel %vm2341_vm12, %v7958_v19, %v5338_v51  ;;  %v5684_v16 = vpack.c.bf16 %v2460_v43, %v2458_v53 }
 0x2f7   :  { %v6209_v35 = vpop.eup %6208  ;;  %v2408_v47 = vmul.f32 1.442695, %v2373_v7  ;;  %v8006_v8 = vadd.f32 %v7520_v60, %v2185_v50  ;;  %v5682_v22 = vpack.c.bf16 %v2461_v42, %v2459_v3  ;;  %v5339_v45 = vadd.f32 -1.0, %v6207_v26 }
 0x2f8   :  { %6218 = vpow2.f32 %v2406_v54  ;;  %v2374_v4 = vmin.f32 %v8002_v17, 0.0  ;;  %v5340_v20 = vadd.f32 -1.0, %v6209_v35  ;;  %vm2350_vm12 = vcmp.gt.f32.partialorder %v8002_v17, 0.0 }
 0x2f9   :  { %6220 = vpow2.f32 %v2408_v47  ;;  %v2375_v58 = vmin.f32 %v8006_v8, 0.0  ;;  %v2189_v18 = vpop.f32.mrb[14].mxu0  ;;  %5683 = vmatprep.subr.bf16.mxu1 %v5682_v22  ;;  %v2462_v43 = vsel %vm2342_vm13, %v7963_v63, %v5339_v45  ;;  %vm2351_vm13 = vcmp.gt.f32.partialorder %v8006_v8, 0.0 }
 0x2fa   :  { %v6211_v19 = vpop.eup %6210  ;;  %v2410_v60 = vmul.f32 1.442695, %v2374_v4  ;;  %v8014_v3 = vadd.f32 %v7530_v52, %v2189_v18  ;;  %v2191_v26 = vpop.f32.mrb[15].mxu0  ;;  %5685 = vmatpush1.bf16.msra.mxu1 %v5684_v16  ;;  %v2463_v50 = vsel %vm2343_vm14, %v7966_v30, %v5340_v20 }
 0x2fb   :  { %v6213_v55 = vpop.eup %6212  ;;  %v5341_v49 = vadd.f32 -1.0, %v6211_v19  ;;  %v2412_v47 = vmul.f32 1.442695, %v2375_v58  ;;  %v8018_v51 = vadd.f32 %v7530_v52, %v2191_v26 }
 0x2fc   :  { %v5342_v53 = vadd.f32 -1.0, %v6213_v55  ;;  %6222 = vpow2.f32 %v2410_v60  ;;  %v2376_v7 = vmin.f32 %v8014_v3, 0.0  ;;  %vm2352_vm14 = vcmp.gt.f32.partialorder %v8014_v3, 0.0 }
 0x2fd   :  { %6224 = vpow2.f32 %v2412_v47  ;;  %v2377_v54 = vmin.f32 %v8018_v51, 0.0  ;;  %v2195_v16 = vpop.f32.mrb[16].mxu0  ;;  %v2464_v52 = vsel %vm2344_vm15, %v7971_v40, %v5341_v49  ;;  %vm2353_vm15 = vcmp.gt.f32.partialorder %v8018_v51, 0.0 }
 0x2fe   :  { %v6215_v42 = vpop.eup %6214  ;;  %v2414_v35 = vmul.f32 1.442695, %v2376_v7  ;;  %v8032_v22 = vadd.f32 %v7545_v25, %v2195_v16  ;;  %v2197_v4 = vpop.f32.mrb[17].mxu0  ;;  %v2465_v63 = vsel %vm2345_vm7, %v7974_v15, %v5342_v53  ;;  %v5688_v45 = vpack.c.bf16 %v2464_v52, %v2462_v43 }
 0x2ff   :  { %v6217_v58 = vpop.eup %6216  ;;  %v2416_v18 = vmul.f32 1.442695, %v2377_v54  ;;  %v8038_v19 = vadd.f32 %v7545_v25, %v2197_v4  ;;  %v5686_v30 = vpack.c.bf16 %v2465_v63, %v2463_v50  ;;  %v5343_v20 = vadd.f32 -1.0, %v6215_v42 }
 0x300   :  { %6226 = vpow2.f32 %v2414_v35  ;;  %v2378_v40 = vmin.f32 %v8032_v22, 0.0  ;;  %v5344_v60 = vadd.f32 -1.0, %v6217_v58  ;;  %vm2354_vm7 = vcmp.gt.f32.partialorder %v8032_v22, 0.0 }
 0x301   :  { %6228 = vpow2.f32 %v2416_v18  ;;  %v2379_v26 = vmin.f32 %v8038_v19, 0.0  ;;  %v2201_v55 = vpop.f32.mrb[18].mxu0  ;;  %5687 = vmatprep.subr.bf16.mxu1 %v5686_v30  ;;  %v2466_v52 = vsel %vm2346_vm8, %v7979_v23, %v5343_v20 }
 0x302   :  { %v6219_v15 = vpop.eup %6218  ;;  %v2418_v25 = vmul.f32 1.442695, %v2378_v40  ;;  %v8046_v49 = vadd.f32 %v7553_v14, %v2201_v55  ;;  %v2203_v47 = vpop.f32.mrb[19].mxu0  ;;  %5689 = vmatpush1.bf16.msra.mxu1 %v5688_v45  ;;  %v2467_v4 = vsel %vm2347_vm9, %v7982_v9, %v5344_v60  ;;  %vm2355_vm9 = vcmp.gt.f32.partialorder %v8038_v19, 0.0 }
 0x303   :  { %v6221_v53 = vpop.eup %6220  ;;  %v5345_v7 = vadd.f32 -1.0, %v6219_v15  ;;  %v2420_v43 = vmul.f32 1.442695, %v2379_v26  ;;  %v8050_v54 = vadd.f32 %v7553_v14, %v2203_v47 }
 0x304   :  { %v5346_v16 = vadd.f32 -1.0, %v6221_v53  ;;  %6230 = vpow2.f32 %v2418_v25  ;;  %v2380_v50 = vmin.f32 %v8046_v49, 0.0  ;;  %vm2356_vm8 = vcmp.gt.f32.partialorder %v8046_v49, 0.0 }
 0x305   :  { %6232 = vpow2.f32 %v2420_v43  ;;  %v2381_v42 = vmin.f32 %v8050_v54, 0.0  ;;  %v2207_v35 = vpop.f32.mrb[20].mxu0  ;;  %v2468_v14 = vsel %vm2348_vm10, %v7988_v6, %v5345_v7  ;;  %vm2357_vm10 = vcmp.gt.f32.partialorder %v8050_v54, 0.0 }
 0x306   :  { %v6223_v63 = vpop.eup %6222  ;;  %v2422_v45 = vmul.f32 1.442695, %v2380_v50  ;;  %v8064_v58 = vadd.f32 %v7564_v61, %v2207_v35  ;;  %v2209_v18 = vpop.f32.mrb[21].mxu0  ;;  %v2469_v23 = vsel %vm2349_vm11, %v7993_v32, %v5346_v16  ;;  %v5692_v30 = vpack.c.bf16 %v2468_v14, %v2466_v52 }
 0x307   :  { %v6225_v20 = vpop.eup %6224  ;;  %v2424_v40 = vmul.f32 1.442695, %v2381_v42  ;;  %v8070_v26 = vadd.f32 %v7564_v61, %v2209_v18  ;;  %v5690_v9 = vpack.c.bf16 %v2469_v23, %v2467_v4  ;;  %v5347_v60 = vadd.f32 -1.0, %v6223_v63 }
 0x308   :  { %6234 = vpow2.f32 %v2422_v45  ;;  %v2382_v6 = vmin.f32 %v8064_v58, 0.0  ;;  %v5348_v32 = vadd.f32 -1.0, %v6225_v20  ;;  %vm2358_vm11 = vcmp.gt.f32.partialorder %v8064_v58, 0.0 }
 0x309   :  { %6236 = vpow2.f32 %v2424_v40  ;;  %v2383_v55 = vmin.f32 %v8070_v26, 0.0  ;;  %v2213_v15 = vpop.f32.mrb[22].mxu0  ;;  %5691 = vmatprep.subr.bf16.mxu1 %v5690_v9  ;;  %v2470_v4 = vsel %vm2350_vm12, %v8002_v17, %v5347_v60 }
 0x30a   :  { %v6227_v25 = vpop.eup %6226  ;;  %v2426_v47 = vmul.f32 1.442695, %v2382_v6  ;;  %v8077_v61 = vadd.f32 %v7566_v0, %v2213_v15  ;;  %v2215_v53 = vpop.f32.mrb[23].mxu0  ;;  %5693 = vmatpush1.bf16.msra.mxu1 %v5692_v30 }
 0x30b   :  { %v6229_v7 = vpop.eup %6228  ;;  %v5349_v43 = vadd.f32 -1.0, %v6227_v25  ;;  %v2428_v16 = vmul.f32 1.442695, %v2383_v55  ;;  %v8081_v50 = vadd.f32 %v7566_v0, %v2215_v53  ;;  %v2471_v0 = vsel %vm2351_vm13, %v8006_v8, %v5348_v32  ;;  %v2629_v55 = vld [vmem:[%s9193_s5] sm:$0x3] }
 0x30c   :  { %v5350_v52 = vadd.f32 -1.0, %v6229_v7  ;;  %6238 = vpow2.f32 %v2426_v47  ;;  %v2384_v42 = vmin.f32 %v8077_v61, 0.0  ;;  %vm2360_vm12 = vcmp.gt.f32.partialorder %v8077_v61, 0.0 }
 0x30d   :  { %6240 = vpow2.f32 %v2428_v16  ;;  %v2385_v35 = vmin.f32 %v8081_v50, 0.0  ;;  %v2472_v14 = vsel %vm2352_vm14, %v8014_v3, %v5349_v43  ;;  %v2638_v43 = vrot.slane %v2629_v55, %v6477_v13 }
 0x30e   :  { %v6231_v63 = vpop.eup %6230  ;;  %v2430_v45 = vmul.f32 1.442695, %v2384_v42  ;;  %v2473_v18 = vsel %vm2353_vm15, %v8018_v51, %v5350_v52  ;;  %v5696_v23 = vpack.c.bf16 %v2472_v14, %v2470_v4  ;;  %v2621_v52 = vsel %vm62_vm0, %v7577_v27, %v7588_v33 }
 0x30f   :  { %v6233_v30 = vpop.eup %6232  ;;  %v2432_v20 = vmul.f32 1.442695, %v2385_v35  ;;  %v5694_v40 = vpack.c.bf16 %v2473_v18, %v2471_v0  ;;  %v5351_v9 = vadd.f32 -1.0, %v6231_v63  ;;  %v2625_v42 = vsel %vm62_vm0, %v7588_v33, %v7577_v27 }
 0x310   :  { %6242 = vpow2.f32 %v2430_v45  ;;  %v5352_v17 = vadd.f32 -1.0, %v6233_v30  ;;  %v2642_v14 = vmul.f32 %v2638_v43, %v2621_v52  ;;  %v2626_v63 = vsel %vm62_vm0, %v7590_v29, %v7579_v28 }
 0x311   :  { %6244 = vpow2.f32 %v2432_v20  ;;  %5695 = vmatprep.subr.bf16.mxu1 %v5694_v40  ;;  %v2474_v51 = vsel %vm2354_vm7, %v8032_v22, %v5351_v9  ;;  %v2622_v22 = vsel %vm62_vm0, %v7579_v28, %v7590_v29  ;;  %v2623_v18 = vsel %vm62_vm0, %v7599_v44, %v7610_v56 }
 0x312   :  { %v6235_v6 = vpop.eup %6234  ;;  %5697 = vmatpush1.bf16.msra.mxu1 %v5696_v23  ;;  %v2475_v32 = vsel %vm2355_vm9, %v8038_v19, %v5352_v17  ;;  %v2644_v45 = vmul.f32 %v2638_v43, %v2622_v22  ;;  %vm2359_vm13 = vcmp.gt.f32.partialorder %v8070_v26, 0.0  ;;  %vm2361_vm14 = vcmp.gt.f32.partialorder %v8081_v50, 0.0 }
 0x313   :  { %v6237_v3 = vpop.eup %6236  ;;  %v5353_v60 = vadd.f32 -1.0, %v6235_v6  ;;  %v2624_v29 = vsel %vm62_vm0, %v7601_v31, %v7612_v5  ;;  %v2646_v17 = vmul.f32 %v2638_v43, %v2623_v18  ;;  %vm2496_vm15 = vcmask 785408   ;;  %v2652_v18 = vld [vmem:[%s9194_s1 + $0x18] sm:$0xff] }
 0x314   :  { %v5354_v8 = vadd.f32 -1.0, %v6237_v3  ;;  %v2648_v3 = vmul.f32 %v2638_v43, %v2624_v29  ;;  %v6296_v43 = vld [vmem:[%s9192_s0 + $0x40] sm:$0xff]  ;;  %v2656_v29 = vld [vmem:[%s9194_s1 + $0x38] sm:$0xff] }
 0x315   :  { %v2476_v15 = vsel %vm2356_vm8, %v8046_v49, %v5353_v60 }
 0x316   :  { %v6239_v25 = vpop.eup %6238  ;;  %v2477_v47 = vsel %vm2357_vm10, %v8050_v54, %v5354_v8  ;;  %v5700_v53 = vpack.c.bf16 %v2476_v15, %v2474_v51  ;;  %v2634_v54 = vrot.slane %v2629_v55, %v6475_v12  ;;  %v6294_v51 = vld [vmem:[%s9192_s0 + $0x48] sm:$0xff]  ;;  %v6295_v15 = vld [vmem:[%s9192_s0 + $0x58] sm:$0xff] }
 0x317   :  { %v6241_v7 = vpop.eup %6240  ;;  %v5698_v16 = vpack.c.bf16 %v2477_v47, %v2475_v32  ;;  %v5355_v49 = vadd.f32 -1.0, %v6239_v25  ;;  %v5714_v25 = vpack.c.bf16 %v6295_v15, %v6294_v51  ;;  %v3023_v47 = vsel %vm466_vm1, %v7621_v10, %v7632_v1  ;;  %v5370_v51 = vld [vmem:[%s9194_s1 + $0x188] sm:$0xff] }
 0x318   :  { %v5356_v35 = vadd.f32 -1.0, %v6241_v7  ;;  %v2641_v9 = vmul.f32 %v2634_v54, %v2625_v42  ;;  %v2643_v6 = vmul.f32 %v2634_v54, %v2626_v63  ;;  %v2649_v7 = vld [vmem:[%s9194_s1] sm:$0xff] }
 0x319   :  { %5699 = vmatprep.subr.bf16.mxu1 %v5698_v16  ;;  %v2478_v33 = vsel %vm2358_vm11, %v8064_v58, %v5355_v49  ;;  %v2627_v58 = vsel %vm62_vm0, %v7610_v56, %v7599_v44  ;;  %v8153_v44 = vld [vmem:[%s9193_s5 + $0x2] sm:$0x3]  ;;  %v2483_v56 = vld [vmem:[%s9197_s3 + $0x8] sm:$0x1]  ;;  %v6297_v16 = vld [vmem:[%s9192_s0 + $0x50] sm:$0xff] }
 0x31a   :  { %v6243_v19 = vpop.eup %6242  ;;  %5701 = vmatpush1.bf16.msra.mxu1 %v5700_v53  ;;  %v2479_v23 = vsel %vm2359_vm13, %v8070_v26, %v5356_v35  ;;  %v5706_v26 = vpack.c.bf16 %v2644_v45, %v2642_v14  ;;  %v5708_v60 = vpack.c.bf16 %v2643_v6, %v2641_v9  ;;  %v2645_v55 = vmul.f32 %v2634_v54, %v2627_v58  ;;  %v2650_v35 = vld [vmem:[%s9194_s1 + $0x8] sm:$0xff]  ;;  %v6301_v14 = vld [vmem:[%s9192_s0 + $0x70] sm:$0xff]  ;;  %v5430_v58 = vld [vmem:[%s9193_s5 + $0x4] sm:$0x3] }
 0x31b   :  { %v6245_v4 = vpop.eup %6244  ;;  %v5357_v0 = vadd.f32 -1.0, %v6243_v19  ;;  %v3024_v53 = vsel %vm466_vm1, %v7623_v36, %v7634_v37  ;;  %v5716_v52 = vpack.c.bf16 %v6297_v16, %v6296_v43  ;;  %v6298_v19 = vld [vmem:[%s9192_s0 + $0x68] sm:$0xff]  ;;  %v3027_v9 = vsel %vm466_vm1, %v7632_v1, %v7621_v10  ;;  %v5376_v43 = vld [vmem:[%s9194_s1 + $0x1b8] sm:$0xff]  ;;  %v5377_v16 = vld [vmem:[%s9194_s1 + $0x1c0] sm:$0xff] }
 0x31c   :  { %v5358_v27 = vadd.f32 -1.0, %v6245_v4  ;;  %v6300_v4 = vld [vmem:[%s9192_s0 + $0x60] sm:$0xff]  ;;  %v3028_v6 = vsel %vm466_vm1, %v7634_v37, %v7623_v36  ;;  %v8276_v36 = vrot.slane %v5430_v58, %v6477_v13  ;;  %v2660_v37 = vld [vmem:[%s9194_s1 + $0x58] sm:$0xff] }
 0x31d   :  { %v2480_v28 = vsel %vm2360_vm12, %v8077_v61, %v5357_v0  ;;  %v2628_v61 = vsel %vm62_vm0, %v7612_v5, %v7601_v31  ;;  %v5710_v31 = vpack.c.bf16 %v2648_v3, %v2646_v17  ;;  %v8162_v5 = vrot.slane %v8153_v44, %v6477_v13  ;;  %v2651_v0 = vld [vmem:[%s9194_s1 + $0x10] sm:$0xff] }
 0x31e   :  { %v2481_v30 = vsel %vm2361_vm14, %v8081_v50, %v5358_v27  ;;  %v5704_v20 = vpack.c.bf16 %v2480_v28, %v2478_v33  ;;  %v2482_v50 = vld [vmem:[%s9197_s3] sm:$0xff]  ;;  %v2647_v8 = vmul.f32 %v2634_v54, %v2628_v61  ;;  %v6299_v54 = vld [vmem:[%s9192_s0 + $0x78] sm:$0xff]  ;;  %v5720_v63 = vpack.c.bf16 %v6301_v14, %v6300_v4  ;;  %v2654_v33 = vld [vmem:[%s9194_s1 + $0x28] sm:$0xff] }
 0x31f   :  { %v5702_v40 = vpack.c.bf16 %v2481_v30, %v2479_v23  ;;  %v3044_v22 = vmul.f32 %v8162_v5, %v3023_v47  ;;  %v3046_v49 = vmul.f32 %v8162_v5, %v3024_v53  ;;  %v5718_v42 = vpack.c.bf16 %v6299_v54, %v6298_v19  ;;  %v2653_v27 = vld [vmem:[%s9194_s1 + $0x20] sm:$0xff]  ;;  %v2655_v28 = vld [vmem:[%s9194_s1 + $0x30] sm:$0xff]  ;;  %v2658_v30 = vld [vmem:[%s9194_s1 + $0x48] sm:$0xff] }
 0x320   :  { %v5712_v32 = vpack.c.bf16 %v2647_v8, %v2645_v55  ;;  %v2657_v23 = vld [vmem:[%s9194_s1 + $0x40] sm:$0xff]  ;;  %v3025_v17 = vsel %vm466_vm1, %v7649_v39, %v7661_v46  ;;  %v3026_v61 = vsel %vm466_vm1, %v7651_v21, %v7663_v41  ;;  %v3029_v3 = vsel %vm466_vm1, %v7661_v46, %v7649_v39  ;;  %v5374_v53 = vld [vmem:[%s9194_s1 + $0x1a8] sm:$0xff] }
 0x321   :  { %5703 = vmatprep.subr.bf16.mxu1 %v5702_v40  ;;  %v5722_v45 = vpack.c.bf16 %v3046_v49, %v3044_v22  ;;  %v2659_v40 = vld [vmem:[%s9194_s1 + $0x50] sm:$0xff]  ;;  %v3276_v55 = vsel %vm722_vm3, %v7670_v34, %v7679_v2  ;;  %v3277_v8 = vsel %vm722_vm3, %v7672_v57, %v7681_v24  ;;  %v5373_v47 = vld [vmem:[%s9194_s1 + $0x1a0] sm:$0xff]  ;;  %v3289_v22 = vrot.slane %v5430_v58, %v6475_v12 }
 0x322   :  { %5705 = vmatpush1.bf16.msra.mxu1 %v5704_v20  ;;  %v3036_v20 = vrot.slane %v8153_v44, %v6475_v12  ;;  %v5379_v49 = vld [vmem:[%s9194_s1 + $0x1d0] sm:$0xff]  ;;  %v3280_v19 = vsel %vm722_vm3, %v7679_v2, %v7670_v34  ;;  %v3281_v54 = vsel %vm722_vm3, %v7681_v24, %v7672_v57  ;;  %v9286_v4 = vld [vmem:[#allocation2_spill] sm:$0xff]  ;;  %v5380_v24 = vld [vmem:[%s9194_s1 + $0x1d8] sm:$0xff] }
 0x323   :  { %5707 = vmatprep.subr.bf16.mxu1 %v5706_v26  ;;  %v3048_v26 = vmul.f32 %v8162_v5, %v3025_v17  ;;  %v3279_v14 = vsel %vm722_vm3, %v9286_v4, %v7699_v38  ;;  %v3296_v34 = vmul.f32 %v3289_v22, %v3280_v19  ;;  %v3298_v2 = vmul.f32 %v3289_v22, %v3281_v54  ;;  %v5407_v17 = vld [vmem:[%s9194_s1 + $0x68] sm:$0xff] }
 0x324   :  { %v3043_v10 = vmul.f32 %v3036_v20, %v3027_v9  ;;  %v3045_v1 = vmul.f32 %v3036_v20, %v3028_v6  ;;  %v3047_v46 = vmul.f32 %v3036_v20, %v3029_v3  ;;  %v5412_v3 = vld [vmem:[%s9194_s1 + $0x90] sm:$0xff] }
 0x325   :  { %5359 = vmatmul.mubr.msk.f32.vlgmr.msra.gmra.mrb[0].mxu1 %vm2496_vm15, %v2482_v50  ;;  %v3030_v50 = vsel %vm466_vm1, %v7663_v41, %v7651_v21  ;;  %v5369_v21 = vld [vmem:[%s9194_s1 + $0x180] sm:$0xff]  ;;  %v3297_v41 = vmul.f32 %v8276_v36, %v3276_v55 }
 0x326   :  { %5709 = vmatpush1.bf16.msra.mxu1 %v5708_v60  ;;  %2573 = vmatprep.mubr.f32.mxu1 %v9259_v59  ;;  %v3050_v60 = vmul.f32 %v8162_v5, %v3026_v61  ;;  %v5724_v39 = vpack.c.bf16 %v3045_v1, %v3043_v10  ;;  %v3049_v44 = vmul.f32 %v3036_v20, %v3030_v50  ;;  %v5408_v10 = vld [vmem:[%s9194_s1 + $0x70] sm:$0xff]  ;;  %v5409_v1 = vld [vmem:[%s9194_s1 + $0x78] sm:$0xff]  ;;  %v5414_v50 = vld [vmem:[%s9194_s1 + $0xa0] sm:$0xff] }
 0x327   :  { %5711 = vmatprep.subr.bf16.mxu1 %v5710_v31  ;;  %v3299_v31 = vmul.f32 %v8276_v36, %v3277_v8  ;;  %v9291_v8 = vld [vmem:[#allocation29_spill] sm:$0xff] }
 0x328   :  { %v5728_v5 = vpack.c.bf16 %v3049_v44, %v3047_v46  ;;  %v9292_v46 = vld [vmem:[#allocation31_spill] sm:$0xff] }
 0x329   :  { %5360 = vmatmul.mubr.msk.f32.gmra.mrb[2].mxu1 %vm2496_vm15, %v2483_v56  ;;  %v5726_v56 = vpack.c.bf16 %v3050_v60, %v3048_v26  ;;  %v5730_v15 = vpack.c.bf16 %v3299_v31, %v3297_v41  ;;  %v5413_v26 = vld [vmem:[%s9194_s1 + $0x98] sm:$0xff]  ;;  %v6302_v60 = vld [vmem:[%s9193_s5 + $0xc] sm:$0x3]  ;;  %v5416_v31 = vld [vmem:[%s9194_s1 + $0xb0] sm:$0xff] }
 0x32a   :  { %5713 = vmatpush1.bf16.msra.mxu1 %v5712_v32  ;;  %2761 = vmatprep.mubr.f32.mxu1 %v9259_v59  ;;  %v5372_v32 = vld [vmem:[%s9194_s1 + $0x198] sm:$0xff]  ;;  %v8454_v55 = vrot.slane %v6302_v60, %v6477_v13 }
 0x32b   :  { %5715 = vmatprep.subr.bf16.mxu1 %v5714_v25  ;;  %v5371_v25 = vld [vmem:[%s9194_s1 + $0x190] sm:$0xff] }
 0x32c   :  { %v8463_v44 = vmul.f32 %v8454_v55, %v9292_v46 }
 0x32d   :  { %5381 = vmatmul.mubr.msk.f32.vlgmr.msra.gmra.mrb[4].mxu1 %vm103_vm2, %v2649_v7  ;;  %v5375_v7 = vld [vmem:[%s9194_s1 + $0x1b0] sm:$0xff] }
 0x32e   :  { %2767 = vmatprep.mubr.f32.mxu1 %v9259_v59  ;;  %5717 = vmatpush1.bf16.msra.mxu1 %v5716_v52  ;;  %v5378_v52 = vld [vmem:[%s9194_s1 + $0x1c8] sm:$0xff] }
 0x32f   :  { %5719 = vmatprep.subr.bf16.mxu1 %v5718_v42  ;;  %v5455_v42 = vld [vmem:[%s9193_s5 + $0x6] sm:$0x3] }
 0x330   :  { %v8379_v57 = vrot.slane %v5455_v42, %v6477_v13  ;;  %v3542_v41 = vrot.slane %v5455_v42, %v6475_v12  ;;  %v9293_v12 = vld [vmem:[#allocation9_spill] sm:$0xff] }
 0x331   :  { %5382 = vmatmul.mubr.msk.f32.gmra.mrb[6].mxu1 %vm103_vm2, %v2650_v35  ;;  %v3278_v35 = vsel %vm722_vm3, %v7688_v62, %v7697_v48 }
 0x332   :  { %2773 = vmatprep.mubr.f32.mxu1 %v9259_v59  ;;  %5721 = vmatpush1.bf16.msra.mxu1 %v5720_v63  ;;  %v3282_v63 = vsel %vm722_vm3, %v7697_v48, %v7688_v62  ;;  %v5732_v62 = vpack.c.bf16 %v3298_v2, %v3296_v34  ;;  %v9299_v34 = vld [vmem:[#allocation12_spill] sm:$0xff]  ;;  %v9300_v2 = vld [vmem:[#allocation14_spill] sm:$0xff] }
 0x333   :  { %5723 = vmatprep.subr.bf16.mxu1 %v5722_v45  ;;  %v3301_v45 = vmul.f32 %v8276_v36, %v3278_v35  ;;  %v3300_v48 = vmul.f32 %v3289_v22, %v3282_v63  ;;  %v9297_v35 = vld [vmem:[#allocation11_spill] sm:$0xff] }
 0x335   :  { %5383 = vmatmul.mubr.msk.f32.gmra.mrb[8].mxu1 %vm103_vm2, %v2651_v0  ;;  %v3283_v0 = vsel %vm722_vm3, %v7699_v38, %v9286_v4  ;;  %v5406_v38 = vld [vmem:[%s9194_s1 + $0x60] sm:$0xff]  ;;  %v9298_v4 = vld [vmem:[#allocation13_spill] sm:$0xff] }
 0x336   :  { %2779 = vmatprep.mubr.f32.mxu1 %v9259_v59  ;;  %v3302_v20 = vmul.f32 %v3289_v22, %v3283_v0  ;;  %v5417_v22 = vld [vmem:[%s9194_s1 + $0xb8] sm:$0xff] }
 0x338   :  { %v5736_v58 = vpack.c.bf16 %v3302_v20, %v3300_v48  ;;  %v5433_v48 = vld [vmem:[%s9194_s1 + $0xd0] sm:$0xff]  ;;  %v9301_v20 = vld [vmem:[#allocation33_spill] sm:$0xff] }
 0x339   :  { %5384 = vmatmul.mubr.msk.f32.gmra.mrb[10].mxu1 %vm103_vm2, %v2652_v18  ;;  %v3303_v18 = vmul.f32 %v8276_v36, %v3279_v14  ;;  %v5410_v36 = vld [vmem:[%s9194_s1 + $0x80] sm:$0xff]  ;;  %v3786_v14 = vsel %vm1234_vm5, %v9298_v4, %v9297_v35  ;;  %v9311_v35 = vld [vmem:[#allocation24_spill] sm:$0xff] }
 0x33a   :  { %2785 = vmatprep.mubr.f32.mxu1 %v9259_v59  ;;  %v9312_v4 = vld [vmem:[#allocation26_spill] sm:$0xff] }
 0x33b   :  { %v5734_v6 = vpack.c.bf16 %v3303_v18, %v3301_v45 }
 0x33d   :  { %5385 = vmatmul.mubr.msk.f32.gmra.mrb[12].mxu1 %vm103_vm2, %v2653_v27  ;;  %v9287_v27 = vld [vmem:[#allocation5_spill] sm:$0xff] }
 0x33e   :  { %2791 = vmatprep.mubr.f32.mxu1 %v9259_v59 }
 0x341   :  { %5386 = vmatmul.mubr.msk.f32.gmra.mrb[14].mxu1 %vm103_vm2, %v2654_v33  ;;  %v9288_v33 = vld [vmem:[#allocation3_spill] sm:$0xff] }
 0x342   :  { %2797 = vmatprep.mubr.f32.mxu1 %v9259_v59 }
 0x345   :  { %5387 = vmatmul.mubr.msk.f32.gmra.mrb[16].mxu1 %vm103_vm2, %v2655_v28  ;;  %v3529_v28 = vsel %vm978_vm4, %v9288_v33, %v9287_v27 }
 0x346   :  { %2803 = vmatprep.mubr.f32.mxu1 %v9259_v59 }
 0x349   :  { %5388 = vmatmul.mubr.msk.f32.gmra.mrb[18].mxu1 %vm103_vm2, %v2656_v29  ;;  %v9289_v29 = vld [vmem:[#allocation6_spill] sm:$0xff] }
 0x34a   :  { %2809 = vmatprep.mubr.f32.mxu1 %v9259_v59 }
 0x34d   :  { %5389 = vmatmul.mubr.msk.f32.gmra.mrb[20].mxu1 %vm103_vm2, %v2657_v23  ;;  %v9290_v23 = vld [vmem:[#allocation4_spill] sm:$0xff] }
 0x34e   :  { %2815 = vmatprep.mubr.f32.mxu1 %v9259_v59 }
 0x351   :  { %5390 = vmatmul.mubr.msk.f32.gmra.mrb[22].mxu1 %vm103_vm2, %v2658_v30  ;;  %v3530_v30 = vsel %vm978_vm4, %v9290_v23, %v9289_v29 }
 0x352   :  { %2821 = vmatprep.mubr.f32.mxu1 %v9259_v59  ;;  %v3552_v9 = vmul.f32 %v8379_v57, %v3530_v30  ;;  %v6304_v30 = vld [vmem:[%s9193_s5 + $0xe] sm:$0x3] }
 0x355   :  { %5391 = vmatmul.mubr.msk.f32.gmra.mrb[24].mxu1 %vm103_vm2, %v2659_v40  ;;  %v3550_v40 = vmul.f32 %v8379_v57, %v3529_v28 }
 0x356   :  { %2827 = vmatprep.mubr.f32.mxu1 %v9259_v59 }
 0x357   :  { %v5738_v61 = vpack.c.bf16 %v3552_v9, %v3550_v40  ;;  %v9302_v40 = vld [vmem:[#allocation35_spill] sm:$0xff] }
 0x359   :  { %5392 = vmatmul.mubr.msk.f32.gmra.mrb[26].mxu1 %vm103_vm2, %v2660_v37  ;;  %v5411_v37 = vld [vmem:[%s9194_s1 + $0x88] sm:$0xff] }
 0x35a   :  { %2934 = vmatprep.mubr.f32.mxu1 %v9259_v59 }
 0x35d   :  { %5393 = vmatmul.mubr.msk.f32.vlgmr.msra.gmra.mrb[4].mxu1 %vm103_vm2, %v5369_v21  ;;  %v5415_v21 = vld [vmem:[%s9194_s1 + $0xa8] sm:$0xff] }
 0x35e   :  { %5725 = vmatpush1.bf16.msra.mxu1 %v5724_v39  ;;  %2940 = vmatprep.mubr.f32.mxu1 %v9259_v59  ;;  %v8459_v39 = vmul.f32 %v8454_v55, %v9291_v8  ;;  %v9304_v8 = vld [vmem:[#allocation39_spill] sm:$0xff] }
 0x35f   :  { %5727 = vmatprep.subr.bf16.mxu1 %v5726_v56 }
 0x360   :  { %v5758_v56 = vpack.c.bf16 %v8463_v44, %v8459_v39  ;;  %v5484_v39 = vld [vmem:[%s9194_s1 + $0x1f8] sm:$0xff]  ;;  %v5485_v44 = vld [vmem:[%s9194_s1 + $0x200] sm:$0xff] }
 0x361   :  { %5394 = vmatmul.mubr.msk.f32.gmra.mrb[6].mxu1 %vm103_vm2, %v5370_v51  ;;  %v3534_v51 = vsel %vm978_vm4, %v9289_v29, %v9290_v23  ;;  %v5432_v29 = vld [vmem:[%s9194_s1 + $0xc8] sm:$0xff] }
 0x362   :  { %2946 = vmatprep.mubr.f32.mxu1 %v9259_v59  ;;  %5729 = vmatpush1.bf16.msra.mxu1 %v5728_v5  ;;  %v3533_v5 = vsel %vm978_vm4, %v9287_v27, %v9288_v33 }
 0x363   :  { %5731 = vmatprep.subr.bf16.mxu1 %v5730_v15  ;;  %v9294_v15 = vld [vmem:[#allocation7_spill] sm:$0xff] }
 0x365   :  { %5395 = vmatmul.mubr.msk.f32.gmra.mrb[8].mxu1 %vm103_vm2, %v5371_v25  ;;  %v3531_v25 = vsel %vm978_vm4, %v9294_v15, %v9293_v12 }
 0x366   :  { %2952 = vmatprep.mubr.f32.mxu1 %v9259_v59  ;;  %v3554_v19 = vmul.f32 %v8379_v57, %v3531_v25 }
 0x369   :  { %5396 = vmatmul.mubr.msk.f32.gmra.mrb[10].mxu1 %vm103_vm2, %v5372_v32  ;;  %v9295_v32 = vld [vmem:[#allocation10_spill] sm:$0xff] }
 0x36a   :  { %2958 = vmatprep.mubr.f32.mxu1 %v9259_v59 }
 0x36d   :  { %5397 = vmatmul.mubr.msk.f32.gmra.mrb[12].mxu1 %vm103_vm2, %v5373_v47  ;;  %v9296_v47 = vld [vmem:[#allocation8_spill] sm:$0xff] }
 0x36e   :  { %2964 = vmatprep.mubr.f32.mxu1 %v9259_v59  ;;  %v3536_v54 = vsel %vm978_vm4, %v9295_v32, %v9296_v47 }
 0x36f   :  { %v3555_v0 = vmul.f32 %v3542_v41, %v3536_v54  ;;  %v9310_v54 = vld [vmem:[#allocation25_spill] sm:$0xff] }
 0x371   :  { %5398 = vmatmul.mubr.msk.f32.gmra.mrb[14].mxu1 %vm103_vm2, %v5374_v53  ;;  %v3532_v53 = vsel %vm978_vm4, %v9296_v47, %v9295_v32  ;;  %v9307_v32 = vld [vmem:[#allocation18_spill] sm:$0xff]  ;;  %v9308_v47 = vld [vmem:[#allocation20_spill] sm:$0xff] }
 0x372   :  { %2970 = vmatprep.mubr.f32.mxu1 %v9259_v59  ;;  %v3556_v42 = vmul.f32 %v8379_v57, %v3532_v53  ;;  %v5431_v57 = vld [vmem:[%s9194_s1 + $0xc0] sm:$0xff]  ;;  %v3789_v53 = vsel %vm1234_vm5, %v9308_v47, %v9307_v32 }
 0x374   :  { %v5742_v33 = vpack.c.bf16 %v3556_v42, %v3554_v19  ;;  %v9309_v19 = vld [vmem:[#allocation23_spill] sm:$0xff] }
 0x375   :  { %5399 = vmatmul.mubr.msk.f32.gmra.mrb[16].mxu1 %vm103_vm2, %v5375_v7  ;;  %v3549_v7 = vmul.f32 %v3542_v41, %v3533_v5  ;;  %v5441_v5 = vld [vmem:[%s9194_s1 + $0x110] sm:$0xff]  ;;  %v4039_v42 = vsel %vm1490_vm6, %v9310_v54, %v9309_v19  ;;  %v9321_v19 = vld [vmem:[#allocation45_spill] sm:$0xff] }
 0x376   :  { %2976 = vmatprep.mubr.f32.mxu1 %v9259_v59 }
 0x379   :  { %5400 = vmatmul.mubr.msk.f32.gmra.mrb[18].mxu1 %vm103_vm2, %v5376_v43  ;;  %v3551_v43 = vmul.f32 %v3542_v41, %v3534_v51 }
 0x37a   :  { %2982 = vmatprep.mubr.f32.mxu1 %v9259_v59 }
 0x37b   :  { %v5740_v63 = vpack.c.bf16 %v3551_v43, %v3549_v7 }
 0x37d   :  { %5401 = vmatmul.mubr.msk.f32.gmra.mrb[20].mxu1 %vm103_vm2, %v5377_v16  ;;  %v6303_v16 = vld [vmem:[%s9193_s5 + $0xa] sm:$0x3] }
 0x37e   :  { %2988 = vmatprep.mubr.f32.mxu1 %v9259_v59 }
 0x381   :  { %5402 = vmatmul.mubr.msk.f32.gmra.mrb[22].mxu1 %vm103_vm2, %v5378_v52  ;;  %v8498_v52 = vrot.slane %v6303_v16, %v6477_v13  ;;  %v5442_v16 = vld [vmem:[%s9194_s1 + $0x118] sm:$0xff] }
 0x382   :  { %2994 = vmatprep.mubr.f32.mxu1 %v9259_v59 }
 0x383   :  { %v3803_v18 = vmul.f32 %v8498_v52, %v3786_v14  ;;  %v4040_v14 = vsel %vm1490_vm6, %v9312_v4, %v9311_v35  ;;  %v5465_v4 = vld [vmem:[%s9194_s1 + $0x168] sm:$0xff] }
 0x385   :  { %5403 = vmatmul.mubr.msk.f32.gmra.mrb[24].mxu1 %vm103_vm2, %v5379_v49  ;;  %v3535_v49 = vsel %vm978_vm4, %v9293_v12, %v9294_v15  ;;  %v9305_v12 = vld [vmem:[#allocation17_spill] sm:$0xff]  ;;  %v9306_v15 = vld [vmem:[#allocation19_spill] sm:$0xff] }
 0x386   :  { %3000 = vmatprep.mubr.f32.mxu1 %v9259_v59  ;;  %v3553_v45 = vmul.f32 %v3542_v41, %v3535_v49  ;;  %v5440_v41 = vld [vmem:[%s9194_s1 + $0x108] sm:$0xff]  ;;  %v3788_v25 = vsel %vm1234_vm5, %v9306_v15, %v9305_v12  ;;  %v3809_v49 = vmul.f32 %v8498_v52, %v3789_v53 }
 0x387   :  { %v5461_v53 = vld [vmem:[%s9194_s1 + $0x148] sm:$0xff] }
 0x388   :  { %v5744_v28 = vpack.c.bf16 %v3555_v0, %v3553_v45  ;;  %v9314_v0 = vld [vmem:[#allocation15_spill] sm:$0xff] }
 0x389   :  { %5404 = vmatmul.mubr.msk.f32.gmra.mrb[26].mxu1 %vm103_vm2, %v5380_v24  ;;  %v3787_v24 = vsel %vm1234_vm5, %v9300_v2, %v9299_v34  ;;  %v4056_v2 = vmul.f32 %v8454_v55, %v4039_v42  ;;  %v9322_v42 = vld [vmem:[#allocation47_spill] sm:$0xff] }
 0x38a   :  { %3163 = vmatprep.mubr.f32.mxu1 %v9259_v59  ;;  %v3805_v27 = vmul.f32 %v8498_v52, %v3787_v24  ;;  %v4058_v24 = vmul.f32 %v8454_v55, %v4040_v14  ;;  %v6305_v55 = vld [vmem:[%s9193_s5 + $0x10] sm:$0x3] }
 0x38b   :  { %v5466_v14 = vld [vmem:[%s9194_s1 + $0x170] sm:$0xff] }
 0x38c   :  { %v5746_v23 = vpack.c.bf16 %v3805_v27, %v3803_v18  ;;  %v5457_v18 = vld [vmem:[%s9194_s1 + $0x128] sm:$0xff]  ;;  %v5754_v27 = vpack.c.bf16 %v4058_v24, %v4056_v2  ;;  %v5467_v2 = vld [vmem:[%s9194_s1 + $0x178] sm:$0xff]  ;;  %v5481_v24 = vld [vmem:[%s9194_s1 + $0x1e0] sm:$0xff] }
 0x38d   :  { %5418 = vmatmul.mubr.msk.f32.vlgmr.msra.gmra.mrb[4].mxu1 %vm103_vm2, %v5406_v38 }
 0x38e   :  { %5733 = vmatpush1.bf16.msra.mxu1 %v5732_v62  ;;  %3169 = vmatprep.mubr.f32.mxu1 %v9259_v59  ;;  %v4305_v62 = vrot.slane %v6304_v30, %v6477_v13  ;;  %v9316_v30 = vld [vmem:[#allocation22_spill] sm:$0xff] }
 0x38f   :  { %5735 = vmatprep.subr.bf16.mxu1 %v5734_v6  ;;  %v5434_v6 = vld [vmem:[%s9194_s1 + $0xd8] sm:$0xff] }
 0x390   :  { %v8545_v38 = vmul.f32 %v4305_v62, %v9301_v20  ;;  %v8548_v9 = vmul.f32 %v4305_v62, %v9302_v40  ;;  %v8592_v46 = vmul.f32 %v4305_v62, %v9304_v8  ;;  %v9319_v20 = vld [vmem:[#allocation41_spill] sm:$0xff] }
 0x391   :  { %5419 = vmatmul.mubr.msk.f32.gmra.mrb[6].mxu1 %vm103_vm2, %v5407_v17 }
 0x392   :  { %3175 = vmatprep.mubr.f32.mxu1 %v9259_v59  ;;  %5737 = vmatpush1.bf16.msra.mxu1 %v5736_v58  ;;  %v5435_v58 = vld [vmem:[%s9194_s1 + $0xe0] sm:$0xff]  ;;  %v5762_v17 = vpack.c.bf16 %v8548_v9, %v8545_v38  ;;  %v5487_v38 = vld [vmem:[%s9194_s1 + $0x210] sm:$0xff]  ;;  %v5488_v9 = vld [vmem:[%s9194_s1 + $0x218] sm:$0xff] }
 0x393   :  { %5739 = vmatprep.subr.bf16.mxu1 %v5738_v61  ;;  %v5436_v61 = vld [vmem:[%s9194_s1 + $0xe8] sm:$0xff] }
 0x395   :  { %5420 = vmatmul.mubr.msk.f32.gmra.mrb[8].mxu1 %vm103_vm2, %v5408_v10  ;;  %v5437_v10 = vld [vmem:[%s9194_s1 + $0xf0] sm:$0xff] }
 0x396   :  { %3181 = vmatprep.mubr.f32.mxu1 %v9259_v59 }
 0x399   :  { %5421 = vmatmul.mubr.msk.f32.gmra.mrb[10].mxu1 %vm103_vm2, %v5409_v1  ;;  %v8571_v1 = vpop.permute.xlu1 %4792 }
 0x39a   :  { %3187 = vmatprep.mubr.f32.mxu1 %v9259_v59 }
 0x39d   :  { %5422 = vmatmul.mubr.msk.f32.gmra.mrb[12].mxu1 %vm103_vm2, %v5410_v36  ;;  %v5438_v36 = vld [vmem:[%s9194_s1 + $0xf8] sm:$0xff] }
 0x39e   :  { %3193 = vmatprep.mubr.f32.mxu1 %v9259_v59 }
 0x3a1   :  { %5423 = vmatmul.mubr.msk.f32.gmra.mrb[14].mxu1 %vm103_vm2, %v5411_v37  ;;  %v8578_v37 = vpop.permute.xlu0 %4797 }
 0x3a2   :  { %3199 = vmatprep.mubr.f32.mxu1 %v9259_v59 }
 0x3a5   :  { %5424 = vmatmul.mubr.msk.f32.gmra.mrb[16].mxu1 %vm103_vm2, %v5412_v3  ;;  %v8581_v3 = vpop.permute.xlu1 %4802 }
 0x3a6   :  { %3205 = vmatprep.mubr.f32.mxu1 %v9259_v59 }
 0x3a9   :  { %5425 = vmatmul.mubr.msk.f32.gmra.mrb[18].mxu1 %vm103_vm2, %v5413_v26  ;;  %v5439_v26 = vld [vmem:[%s9194_s1 + $0x100] sm:$0xff] }
 0x3aa   :  { %3211 = vmatprep.mubr.f32.mxu1 %v9259_v59 }
 0x3ad   :  { %5426 = vmatmul.mubr.msk.f32.gmra.mrb[20].mxu1 %vm103_vm2, %v5414_v50  ;;  %v9303_v50 = vld [vmem:[#allocation37_spill] sm:$0xff] }
 0x3ae   :  { %3217 = vmatprep.mubr.f32.mxu1 %v9259_v59  ;;  %v8589_v60 = vmul.f32 %v4305_v62, %v9303_v50  ;;  %v9317_v62 = vld [vmem:[#allocation21_spill] sm:$0xff] }
 0x3b0   :  { %v5766_v51 = vpack.c.bf16 %v8592_v46, %v8589_v60  ;;  %v5509_v60 = vld [vmem:[%s9194_s1 + $0x258] sm:$0xff]  ;;  %v5510_v46 = vld [vmem:[%s9194_s1 + $0x260] sm:$0xff] }
 0x3b1   :  { %5427 = vmatmul.mubr.msk.f32.gmra.mrb[22].mxu1 %vm103_vm2, %v5415_v21  ;;  %v8594_v21 = vpop.permute.xlu0 %4807 }
 0x3b2   :  { %3223 = vmatprep.mubr.f32.mxu1 %v9259_v59 }
 0x3b5   :  { %5428 = vmatmul.mubr.msk.f32.gmra.mrb[24].mxu1 %vm103_vm2, %v5416_v31  ;;  %v8600_v31 = vpop.permute.xlu1 %4812  ;;  %v8617_v7 = vpop.permute.xlu0 %4817 }
 0x3b6   :  { %3229 = vmatprep.mubr.f32.mxu1 %v9259_v59 }
 0x3b9   :  { %5429 = vmatmul.mubr.msk.f32.gmra.mrb[26].mxu1 %vm103_vm2, %v5417_v22  ;;  %v8620_v43 = vpop.permute.xlu1 %4822  ;;  %v3807_v22 = vmul.f32 %v8498_v52, %v3788_v25  ;;  %v8637_v34 = vpop.permute.xlu0 %4827  ;;  %v5456_v52 = vld [vmem:[%s9194_s1 + $0x120] sm:$0xff] }
 0x3ba   :  { %3416 = vmatprep.mubr.f32.mxu1 %v9259_v59 }
 0x3bd   :  { %5443 = vmatmul.mubr.msk.f32.vlgmr.msra.gmra.mrb[4].mxu1 %vm103_vm2, %v5431_v57  ;;  %v8645_v45 = vpop.permute.xlu1 %4832  ;;  %v9315_v57 = vpack.c.bf16 %v9313_v11, %v9314_v0  ;;  %v9324_v11 = vld [vmem:[#allocation27_spill] sm:$0xff] }
 0x3be   :  { %5741 = vmatpush1.bf16.msra.mxu1 %v5740_v63  ;;  %3422 = vmatprep.mubr.f32.mxu1 %v9259_v59  ;;  %v5750_v63 = vpack.c.bf16 %v3809_v49, %v3807_v22  ;;  %v5463_v22 = vld [vmem:[%s9194_s1 + $0x158] sm:$0xff]  ;;  %v5464_v49 = vld [vmem:[%s9194_s1 + $0x160] sm:$0xff] }
 0x3bf   :  { %5743 = vmatprep.subr.bf16.mxu1 %v5742_v33  ;;  %v8655_v33 = vpop.permute.xlu0 %4837 }
 0x3c1   :  { %5444 = vmatmul.mubr.msk.f32.gmra.mrb[6].mxu1 %vm103_vm2, %v5432_v29  ;;  %v8662_v29 = vpop.permute.xlu1 %4842 }
 0x3c2   :  { %3428 = vmatprep.mubr.f32.mxu1 %v9259_v59  ;;  %5745 = vmatpush1.bf16.msra.mxu1 %v5744_v28  ;;  %v4558_v28 = vrot.slane %v6305_v55, %v6477_v13  ;;  %v9327_v55 = vld [vmem:[#allocation30_spill] sm:$0xff] }
 0x3c3   :  { %5747 = vmatprep.subr.bf16.mxu1 %v5746_v23  ;;  %v5458_v23 = vld [vmem:[%s9194_s1 + $0x130] sm:$0xff] }
 0x3c4   :  { %v8673_v40 = vmul.f32 %v4558_v28, %v9319_v20  ;;  %v8725_v54 = vmul.f32 %v4558_v28, %v9321_v19  ;;  %v8728_v35 = vmul.f32 %v4558_v28, %v9322_v42  ;;  %v9329_v20 = vld [vmem:[#allocation36_spill] sm:$0xff]  ;;  %v9339_v19 = vld [vmem:[#allocation46_spill] sm:$0xff] }
 0x3c5   :  { %5445 = vmatmul.mubr.msk.f32.gmra.mrb[8].mxu1 %vm103_vm2, %v5433_v48  ;;  %v9318_v48 = vpack.c.bf16 %v9316_v30, %v9317_v62  ;;  %v5491_v30 = vld [vmem:[%s9194_s1 + $0x230] sm:$0xff]  ;;  %v5492_v62 = vld [vmem:[%s9194_s1 + $0x238] sm:$0xff] }
 0x3c6   :  { %3434 = vmatprep.mubr.f32.mxu1 %v9259_v59 }
 0x3c9   :  { %5446 = vmatmul.mubr.msk.f32.gmra.mrb[10].mxu1 %vm103_vm2, %v5434_v6  ;;  %v9320_v6 = vld [vmem:[#allocation43_spill] sm:$0xff] }
 0x3ca   :  { %3440 = vmatprep.mubr.f32.mxu1 %v9259_v59  ;;  %v8676_v13 = vmul.f32 %v4558_v28, %v9320_v6  ;;  %v9330_v6 = vld [vmem:[#allocation34_spill] sm:$0xff] }
 0x3cd   :  { %5447 = vmatmul.mubr.msk.f32.gmra.mrb[12].mxu1 %vm103_vm2, %v5435_v58  ;;  %v8678_v58 = vpop.permute.xlu0 %4847 }
 0x3ce   :  { %3446 = vmatprep.mubr.f32.mxu1 %v9259_v59 }
 0x3d1   :  { %5448 = vmatmul.mubr.msk.f32.gmra.mrb[14].mxu1 %vm103_vm2, %v5436_v61  ;;  %v5459_v61 = vld [vmem:[%s9194_s1 + $0x138] sm:$0xff]  ;;  %v2494_v12 = vpop.permute.xlu0 %2493 }
 0x3d2   :  { %3452 = vmatprep.mubr.f32.mxu1 %v9259_v59 }
 0x3d5   :  { %5449 = vmatmul.mubr.msk.f32.gmra.mrb[16].mxu1 %vm103_vm2, %v5437_v10  ;;  %v2489_v10 = vpop.permute.xlu1 %2488 }
 0x3d6   :  { %3458 = vmatprep.mubr.f32.mxu1 %v9259_v59 }
 0x3d9   :  { %5450 = vmatmul.mubr.msk.f32.gmra.mrb[18].mxu1 %vm103_vm2, %v5438_v36 }
 0x3da   :  { %3464 = vmatprep.mubr.f32.mxu1 %v9259_v59 }
 0x3dd   :  { %5451 = vmatmul.mubr.msk.f32.gmra.mrb[20].mxu1 %vm103_vm2, %v5439_v26 }
 0x3de   :  { %3470 = vmatprep.mubr.f32.mxu1 %v9259_v59 }
 0x3e1   :  { %5452 = vmatmul.mubr.msk.f32.gmra.mrb[22].mxu1 %vm103_vm2, %v5440_v41  ;;  %v5460_v41 = vld [vmem:[%s9194_s1 + $0x140] sm:$0xff] }
 0x3e2   :  { %3476 = vmatprep.mubr.f32.mxu1 %v9259_v59 }
 0x3e5   :  { %5453 = vmatmul.mubr.msk.f32.gmra.mrb[24].mxu1 %vm103_vm2, %v5441_v5  ;;  %v5770_v5 = vpack.c.bf16 %v8676_v13, %v8673_v40  ;;  %v5512_v40 = vld [vmem:[%s9194_s1 + $0x270] sm:$0xff]  ;;  %v5513_v13 = vld [vmem:[%s9194_s1 + $0x278] sm:$0xff] }
 0x3e6   :  { %3482 = vmatprep.mubr.f32.mxu1 %v9259_v59 }
 0x3e9   :  { %5454 = vmatmul.mubr.msk.f32.gmra.mrb[26].mxu1 %vm103_vm2, %v5442_v16  ;;  %v5462_v16 = vld [vmem:[%s9194_s1 + $0x150] sm:$0xff] }
 0x3ea   :  { %3669 = vmatprep.mubr.f32.mxu1 %v9259_v59 }
 0x3ed   :  { %5468 = vmatmul.mubr.msk.f32.vlgmr.msra.gmra.mrb[4].mxu1 %vm103_vm2, %v5456_v52  ;;  %v5774_v52 = vpack.c.bf16 %v8728_v35, %v8725_v54  ;;  %v5534_v54 = vld [vmem:[%s9194_s1 + $0x2b8] sm:$0xff]  ;;  %v5535_v35 = vld [vmem:[%s9194_s1 + $0x2c0] sm:$0xff] }
 0x3ee   :  { %5749 = vmatpush1.bf16.msra.mxu1 %v9315_v57  ;;  %3675 = vmatprep.mubr.f32.mxu1 %v9259_v59  ;;  %v5482_v57 = vld [vmem:[%s9194_s1 + $0x1e8] sm:$0xff] }
 0x3ef   :  { %5751 = vmatprep.subr.bf16.mxu1 %v5750_v63  ;;  %v9323_v63 = vld [vmem:[#allocation28_spill] sm:$0xff] }
 0x3f0   :  { %v9325_v0 = vpack.c.bf16 %v9323_v63, %v9324_v11  ;;  %v5541_v63 = vld [vmem:[%s9194_s1 + $0x2f0] sm:$0xff]  ;;  %v5542_v11 = vld [vmem:[%s9194_s1 + $0x2f8] sm:$0xff] }
 0x3f1   :  { %5469 = vmatmul.mubr.msk.f32.gmra.mrb[6].mxu1 %vm103_vm2, %v5457_v18  ;;  %v5483_v18 = vld [vmem:[%s9194_s1 + $0x1f0] sm:$0xff] }
 0x3f2   :  { %3681 = vmatprep.mubr.f32.mxu1 %v9259_v59  ;;  %5753 = vmatpush1.bf16.msra.mxu1 %v9318_v48  ;;  %v5506_v48 = vld [vmem:[%s9194_s1 + $0x240] sm:$0xff] }
 0x3f3   :  { %5755 = vmatprep.subr.bf16.mxu1 %v5754_v27  ;;  %v9326_v27 = vld [vmem:[#allocation32_spill] sm:$0xff] }
 0x3f4   :  { %v9328_v28 = vpack.c.bf16 %v9326_v27, %v9327_v55  ;;  %v5559_v27 = vld [vmem:[%s9194_s1 + $0x318] sm:$0xff]  ;;  %v5560_v55 = vld [vmem:[%s9194_s1 + $0x320] sm:$0xff] }
 0x3f5   :  { %5470 = vmatmul.mubr.msk.f32.gmra.mrb[8].mxu1 %vm103_vm2, %v5458_v23  ;;  %v5490_v23 = vld [vmem:[%s9194_s1 + $0x228] sm:$0xff] }
 0x3f6   :  { %3687 = vmatprep.mubr.f32.mxu1 %v9259_v59 }
 0x3f8   :  { %v2569_v36 = vpop.f32.mrb[0].mxu1 }
 0x3f9   :  { %v2570_v26 = vadd.f32 %v2569_v36, %v2489_v10  ;;  %v2571_v50 = vpop.f32.mrb[1].mxu1  ;;  %5471 = vmatmul.mubr.msk.f32.gmra.mrb[10].mxu1 %vm103_vm2, %v5459_v61  ;;  %v9331_v61 = vpack.c.bf16 %v9329_v20, %v9330_v6  ;;  %v5508_v36 = vld [vmem:[%s9194_s1 + $0x250] sm:$0xff] }
 0x3fa   :  { %v2572_v8 = vadd.f32 %v2571_v50, %v2489_v10  ;;  %3693 = vmatprep.mubr.f32.mxu1 %v9259_v59  ;;  %v5507_v10 = vld [vmem:[%s9194_s1 + $0x248] sm:$0xff]  ;;  %v9333_v50 = vld [vmem:[#allocation38_spill] sm:$0xff] }
 0x3fb   :  { %2580 = vst [vmem:[%s9198_s6] sm:$0xff] %v2570_v26  ;;  %v9332_v26 = vld [vmem:[#allocation40_spill] sm:$0xff] }
 0x3fc   :  { %2581 = vst [vmem:[%s9198_s6 + $0x8] sm:$0xff] %v2572_v8  ;;  %v2575_v15 = vpop.f32.mrb[2].mxu1  ;;  %v9334_v8 = vpack.c.bf16 %v9332_v26, %v9333_v50 }
 0x3fd   :  { %v2576_v25 = vadd.f32 %v2575_v15, %v2494_v12  ;;  %v2577_v32 = vpop.f32.mrb[3].mxu1  ;;  %5472 = vmatmul.mubr.msk.f32.gmra.mrb[12].mxu1 %vm103_vm2, %v5460_v41  ;;  %v5514_v41 = vld [vmem:[%s9194_s1 + $0x280] sm:$0xff]  ;;  %v5517_v15 = vld [vmem:[%s9194_s1 + $0x298] sm:$0xff] }
 0x3fe   :  { %v2578_v47 = vadd.f32 %v2577_v32, %v2494_v12  ;;  %3699 = vmatprep.mubr.f32.mxu1 %v9259_v59  ;;  %v5516_v12 = vld [vmem:[%s9194_s1 + $0x290] sm:$0xff] }
 0x3ff   :  { %2582 = vst [vmem:[%s9198_s6 + $0x10] sm:$0x1] %v2576_v25  ;;  %v5531_v25 = vld [vmem:[%s9194_s1 + $0x2a0] sm:$0xff]  ;;  %v9335_v32 = vld [vmem:[#allocation44_spill] sm:$0xff] }
 0x400   :  { %2583 = vst [vmem:[%s9198_s6 + $0x18] sm:$0x1] %v2578_v47  ;;  %v9336_v47 = vld [vmem:[#allocation42_spill] sm:$0xff] }
 0x401   :  { %5473 = vmatmul.mubr.msk.f32.gmra.mrb[14].mxu1 %vm103_vm2, %v5461_v53  ;;  %v9337_v53 = vpack.c.bf16 %v9335_v32, %v9336_v47 }
 0x402   :  { %3705 = vmatprep.mubr.f32.mxu1 %v9259_v59 }
 0x405   :  { %5474 = vmatmul.mubr.msk.f32.gmra.mrb[16].mxu1 %vm103_vm2, %v5462_v16  ;;  %v5532_v16 = vld [vmem:[%s9194_s1 + $0x2a8] sm:$0xff] }
 0x406   :  { %3711 = vmatprep.mubr.f32.mxu1 %v9259_v59 }
 0x409   :  { %5475 = vmatmul.mubr.msk.f32.gmra.mrb[18].mxu1 %vm103_vm2, %v5463_v22  ;;  %v5533_v22 = vld [vmem:[%s9194_s1 + $0x2b0] sm:$0xff] }
 0x40a   :  { %3717 = vmatprep.mubr.f32.mxu1 %v9259_v59 }
 0x40d   :  { %5476 = vmatmul.mubr.msk.f32.gmra.mrb[20].mxu1 %vm103_vm2, %v5464_v49  ;;  %v9338_v49 = vld [vmem:[#allocation48_spill] sm:$0xff] }
 0x40e   :  { %3723 = vmatprep.mubr.f32.mxu1 %v9259_v59  ;;  %v9340_v42 = vpack.c.bf16 %v9338_v49, %v9339_v19 }
 0x411   :  { %5477 = vmatmul.mubr.msk.f32.gmra.mrb[22].mxu1 %vm103_vm2, %v5465_v4  ;;  %v5536_v4 = vld [vmem:[%s9194_s1 + $0x2c8] sm:$0xff] }
 0x412   :  { %3729 = vmatprep.mubr.f32.mxu1 %v9259_v59 }
 0x415   :  { %5478 = vmatmul.mubr.msk.f32.gmra.mrb[24].mxu1 %vm103_vm2, %v5466_v14  ;;  %v5537_v14 = vld [vmem:[%s9194_s1 + $0x2d0] sm:$0xff] }
 0x416   :  { %3735 = vmatprep.mubr.f32.mxu1 %v9259_v59 }
 0x419   :  { %5479 = vmatmul.mubr.msk.f32.gmra.mrb[26].mxu1 %vm103_vm2, %v5467_v2  ;;  %v5539_v2 = vld [vmem:[%s9194_s1 + $0x2e0] sm:$0xff] }
 0x41a   :  { %3922 = vmatprep.mubr.f32.mxu1 %v9259_v59 }
 0x41d   :  { %5493 = vmatmul.mubr.msk.f32.vlgmr.msra.gmra.mrb[4].mxu1 %vm103_vm2, %v5481_v24  ;;  %v5540_v24 = vld [vmem:[%s9194_s1 + $0x2e8] sm:$0xff] }
 0x41e   :  { %5757 = vmatpush1.bf16.msra.mxu1 %v9325_v0  ;;  %3928 = vmatprep.mubr.f32.mxu1 %v9259_v59  ;;  %v5556_v0 = vld [vmem:[%s9194_s1 + $0x300] sm:$0xff] }
 0x41f   :  { %5759 = vmatprep.subr.bf16.mxu1 %v5758_v56  ;;  %v5486_v56 = vld [vmem:[%s9194_s1 + $0x208] sm:$0xff] }
 0x421   :  { %5494 = vmatmul.mubr.msk.f32.gmra.mrb[6].mxu1 %vm103_vm2, %v5482_v57  ;;  %v5557_v57 = vld [vmem:[%s9194_s1 + $0x308] sm:$0xff] }
 0x422   :  { %3934 = vmatprep.mubr.f32.mxu1 %v9259_v59  ;;  %5761 = vmatpush1.bf16.msra.mxu1 %v9328_v28  ;;  %v5561_v28 = vld [vmem:[%s9194_s1 + $0x328] sm:$0xff] }
 0x423   :  { %5763 = vmatprep.subr.bf16.mxu1 %v5762_v17  ;;  %v5489_v17 = vld [vmem:[%s9194_s1 + $0x220] sm:$0xff] }
 0x425   :  { %5495 = vmatmul.mubr.msk.f32.gmra.mrb[8].mxu1 %vm103_vm2, %v5483_v18  ;;  %v5558_v18 = vld [vmem:[%s9194_s1 + $0x310] sm:$0xff] }
 0x426   :  { %3940 = vmatprep.mubr.f32.mxu1 %v9259_v59 }
 0x429   :  { %5496 = vmatmul.mubr.msk.f32.gmra.mrb[10].mxu1 %vm103_vm2, %v5484_v39  ;;  %v5562_v39 = vld [vmem:[%s9194_s1 + $0x330] sm:$0xff] }
 0x42a   :  { %3946 = vmatprep.mubr.f32.mxu1 %v9259_v59 }
 0x42d   :  { %5497 = vmatmul.mubr.msk.f32.gmra.mrb[12].mxu1 %vm103_vm2, %v5485_v44  ;;  %v5563_v44 = vld [vmem:[%s9194_s1 + $0x338] sm:$0xff] }
 0x42e   :  { %3952 = vmatprep.mubr.f32.mxu1 %v9259_v59 }
 0x431   :  { %5498 = vmatmul.mubr.msk.f32.gmra.mrb[14].mxu1 %vm103_vm2, %v5486_v56  ;;  %v5564_v56 = vld [vmem:[%s9194_s1 + $0x340] sm:$0xff] }
 0x432   :  { %3958 = vmatprep.mubr.f32.mxu1 %v9259_v59 }
 0x435   :  { %5499 = vmatmul.mubr.msk.f32.gmra.mrb[16].mxu1 %vm103_vm2, %v5487_v38  ;;  %v5565_v38 = vld [vmem:[%s9194_s1 + $0x348] sm:$0xff] }
 0x436   :  { %3964 = vmatprep.mubr.f32.mxu1 %v9259_v59 }
 0x439   :  { %5500 = vmatmul.mubr.msk.f32.gmra.mrb[18].mxu1 %vm103_vm2, %v5488_v9  ;;  %v5566_v9 = vld [vmem:[%s9194_s1 + $0x350] sm:$0xff] }
 0x43a   :  { %3970 = vmatprep.mubr.f32.mxu1 %v9259_v59 }
 0x43d   :  { %5501 = vmatmul.mubr.msk.f32.gmra.mrb[20].mxu1 %vm103_vm2, %v5489_v17  ;;  %v5567_v17 = vld [vmem:[%s9194_s1 + $0x358] sm:$0xff] }
 0x43e   :  { %3976 = vmatprep.mubr.f32.mxu1 %v9259_v59 }
 0x441   :  { %5502 = vmatmul.mubr.msk.f32.gmra.mrb[22].mxu1 %vm103_vm2, %v5490_v23 }
 0x442   :  { %3982 = vmatprep.mubr.f32.mxu1 %v9259_v59 }
 0x445   :  { %5503 = vmatmul.mubr.msk.f32.gmra.mrb[24].mxu1 %vm103_vm2, %v5491_v30 }
 0x446   :  { %3988 = vmatprep.mubr.f32.mxu1 %v9259_v59 }
 0x449   :  { %5504 = vmatmul.mubr.msk.f32.gmra.mrb[26].mxu1 %vm103_vm2, %v5492_v62 }
 0x44a   :  { %4175 = vmatprep.mubr.f32.mxu1 %v9259_v59 }
 0x44d   :  { %5518 = vmatmul.mubr.msk.f32.vlgmr.msra.gmra.mrb[4].mxu1 %vm103_vm2, %v5506_v48 }
 0x44e   :  { %5765 = vmatpush1.bf16.msra.mxu1 %v9331_v61  ;;  %4181 = vmatprep.mubr.f32.mxu1 %v9259_v59 }
 0x44f   :  { %5767 = vmatprep.subr.bf16.mxu1 %v5766_v51  ;;  %v5511_v51 = vld [vmem:[%s9194_s1 + $0x268] sm:$0xff] }
 0x451   :  { %5519 = vmatmul.mubr.msk.f32.gmra.mrb[6].mxu1 %vm103_vm2, %v5507_v10 }
 0x452   :  { %4187 = vmatprep.mubr.f32.mxu1 %v9259_v59  ;;  %5769 = vmatpush1.bf16.msra.mxu1 %v9334_v8 }
 0x453   :  { %5771 = vmatprep.subr.bf16.mxu1 %v5770_v5  ;;  %v5515_v5 = vld [vmem:[%s9194_s1 + $0x288] sm:$0xff] }
 0x455   :  { %5520 = vmatmul.mubr.msk.f32.gmra.mrb[8].mxu1 %vm103_vm2, %v5508_v36 }
 0x456   :  { %4193 = vmatprep.mubr.f32.mxu1 %v9259_v59 }
 0x459   :  { %5521 = vmatmul.mubr.msk.f32.gmra.mrb[10].mxu1 %vm103_vm2, %v5509_v60 }
 0x45a   :  { %4199 = vmatprep.mubr.f32.mxu1 %v9259_v59 }
 0x45d   :  { %5522 = vmatmul.mubr.msk.f32.gmra.mrb[12].mxu1 %vm103_vm2, %v5510_v46 }
 0x45e   :  { %4205 = vmatprep.mubr.f32.mxu1 %v9259_v59 }
 0x461   :  { %5523 = vmatmul.mubr.msk.f32.gmra.mrb[14].mxu1 %vm103_vm2, %v5511_v51 }
 0x462   :  { %4211 = vmatprep.mubr.f32.mxu1 %v9259_v59 }
 0x465   :  { %5524 = vmatmul.mubr.msk.f32.gmra.mrb[16].mxu1 %vm103_vm2, %v5512_v40 }
 0x466   :  { %4217 = vmatprep.mubr.f32.mxu1 %v9259_v59 }
 0x469   :  { %5525 = vmatmul.mubr.msk.f32.gmra.mrb[18].mxu1 %vm103_vm2, %v5513_v13 }
 0x46a   :  { %4223 = vmatprep.mubr.f32.mxu1 %v9259_v59 }
 0x46d   :  { %5526 = vmatmul.mubr.msk.f32.gmra.mrb[20].mxu1 %vm103_vm2, %v5514_v41 }
 0x46e   :  { %4229 = vmatprep.mubr.f32.mxu1 %v9259_v59 }
 0x471   :  { %5527 = vmatmul.mubr.msk.f32.gmra.mrb[22].mxu1 %vm103_vm2, %v5515_v5 }
 0x472   :  { %4235 = vmatprep.mubr.f32.mxu1 %v9259_v59 }
 0x475   :  { %5528 = vmatmul.mubr.msk.f32.gmra.mrb[24].mxu1 %vm103_vm2, %v5516_v12 }
 0x476   :  { %4241 = vmatprep.mubr.f32.mxu1 %v9259_v59 }
 0x479   :  { %5529 = vmatmul.mubr.msk.f32.gmra.mrb[26].mxu1 %vm103_vm2, %v5517_v15 }
 0x47a   :  { %4428 = vmatprep.mubr.f32.mxu1 %v9259_v59 }
 0x47d   :  { %5543 = vmatmul.mubr.msk.f32.vlgmr.msra.gmra.mrb[4].mxu1 %vm103_vm2, %v5531_v25 }
 0x47e   :  { %5773 = vmatpush1.bf16.msra.mxu1 %v9337_v53  ;;  %4434 = vmatprep.mubr.f32.mxu1 %v9259_v59 }
 0x47f   :  { %5775 = vmatprep.subr.bf16.mxu1 %v5774_v52  ;;  %v5538_v52 = vld [vmem:[%s9194_s1 + $0x2d8] sm:$0xff] }
 0x481   :  { %5544 = vmatmul.mubr.msk.f32.gmra.mrb[6].mxu1 %vm103_vm2, %v5532_v16 }
 0x482   :  { %4440 = vmatprep.mubr.f32.mxu1 %v9259_v59  ;;  %5777 = vmatpush1.bf16.msra.mxu1 %v9340_v42 }
 0x485   :  { %5545 = vmatmul.mubr.msk.f32.gmra.mrb[8].mxu1 %vm103_vm2, %v5533_v22 }
 0x486   :  { %4446 = vmatprep.mubr.f32.mxu1 %v9259_v59 }
 0x489   :  { %5546 = vmatmul.mubr.msk.f32.gmra.mrb[10].mxu1 %vm103_vm2, %v5534_v54 }
 0x48a   :  { %4452 = vmatprep.mubr.f32.mxu1 %v9259_v59 }
 0x48d   :  { %5547 = vmatmul.mubr.msk.f32.gmra.mrb[12].mxu1 %vm103_vm2, %v5535_v35 }
 0x48e   :  { %4458 = vmatprep.mubr.f32.mxu1 %v9259_v59 }
 0x491   :  { %5548 = vmatmul.mubr.msk.f32.gmra.mrb[14].mxu1 %vm103_vm2, %v5536_v4 }
 0x492   :  { %4464 = vmatprep.mubr.f32.mxu1 %v9259_v59 }
 0x495   :  { %5549 = vmatmul.mubr.msk.f32.gmra.mrb[16].mxu1 %vm103_vm2, %v5537_v14 }
 0x496   :  { %4470 = vmatprep.mubr.f32.mxu1 %v9259_v59 }
 0x499   :  { %5550 = vmatmul.mubr.msk.f32.gmra.mrb[18].mxu1 %vm103_vm2, %v5538_v52 }
 0x49a   :  { %4476 = vmatprep.mubr.f32.mxu1 %v9259_v59 }
 0x49d   :  { %5551 = vmatmul.mubr.msk.f32.gmra.mrb[20].mxu1 %vm103_vm2, %v5539_v2 }
 0x49e   :  { %4482 = vmatprep.mubr.f32.mxu1 %v9259_v59 }
 0x4a1   :  { %5552 = vmatmul.mubr.msk.f32.gmra.mrb[22].mxu1 %vm103_vm2, %v5540_v24 }
 0x4a2   :  { %4488 = vmatprep.mubr.f32.mxu1 %v9259_v59 }
 0x4a5   :  { %5553 = vmatmul.mubr.msk.f32.gmra.mrb[24].mxu1 %vm103_vm2, %v5541_v63 }
 0x4a6   :  { %4494 = vmatprep.mubr.f32.mxu1 %v9259_v59 }
 0x4a9   :  { %5554 = vmatmul.mubr.msk.f32.gmra.mrb[26].mxu1 %vm103_vm2, %v5542_v11 }
 0x4aa   :  { %4681 = vmatprep.mubr.f32.mxu1 %v9259_v59 }
 0x4ad   :  { %5568 = vmatmul.mubr.msk.f32.vlgmr.msra.gmra.mrb[4].mxu1 %vm103_vm2, %v5556_v0 }
 0x4ae   :  { %4687 = vmatprep.mubr.f32.mxu1 %v9259_v59 }
 0x4b1   :  { %5569 = vmatmul.mubr.msk.f32.gmra.mrb[6].mxu1 %vm103_vm2, %v5557_v57 }
 0x4b2   :  { %4693 = vmatprep.mubr.f32.mxu1 %v9259_v59 }
 0x4b5   :  { %5570 = vmatmul.mubr.msk.f32.gmra.mrb[8].mxu1 %vm103_vm2, %v5558_v18 }
 0x4b6   :  { %4699 = vmatprep.mubr.f32.mxu1 %v9259_v59 }
 0x4b9   :  { %5571 = vmatmul.mubr.msk.f32.gmra.mrb[10].mxu1 %vm103_vm2, %v5559_v27 }
 0x4ba   :  { %4705 = vmatprep.mubr.f32.mxu1 %v9259_v59 }
 0x4bd   :  { %5572 = vmatmul.mubr.msk.f32.gmra.mrb[12].mxu1 %vm103_vm2, %v5560_v55 }
 0x4be   :  { %4711 = vmatprep.mubr.f32.mxu1 %v9259_v59 }
 0x4c1   :  { %5573 = vmatmul.mubr.msk.f32.gmra.mrb[14].mxu1 %vm103_vm2, %v5561_v28 }
 0x4c2   :  { %4717 = vmatprep.mubr.f32.mxu1 %v9259_v59 }
 0x4c5   :  { %5574 = vmatmul.mubr.msk.f32.gmra.mrb[16].mxu1 %vm103_vm2, %v5562_v39 }
 0x4c6   :  { %4723 = vmatprep.mubr.f32.mxu1 %v9259_v59 }
 0x4c9   :  { %5575 = vmatmul.mubr.msk.f32.gmra.mrb[18].mxu1 %vm103_vm2, %v5563_v44 }
 0x4ca   :  { %4729 = vmatprep.mubr.f32.mxu1 %v9259_v59 }
 0x4cd   :  { %5576 = vmatmul.mubr.msk.f32.gmra.mrb[20].mxu1 %vm103_vm2, %v5564_v56 }
 0x4ce   :  { %4735 = vmatprep.mubr.f32.mxu1 %v9259_v59 }
 0x4d1   :  { %5577 = vmatmul.mubr.msk.f32.gmra.mrb[22].mxu1 %vm103_vm2, %v5565_v38 }
 0x4d2   :  { %4741 = vmatprep.mubr.f32.mxu1 %v9259_v59 }
 0x4d5   :  { %5578 = vmatmul.mubr.msk.f32.gmra.mrb[24].mxu1 %vm103_vm2, %v5566_v9 }
 0x4d6   :  { %4747 = vmatprep.mubr.f32.mxu1 %v9259_v59 }
 0x4d9   :  { %5579 = vmatmul.mubr.msk.f32.gmra.mrb[26].mxu1 %vm103_vm2, %v5567_v17 }
 0x580   :  { %v4683_v23 = vpop.f32.mrb[4].mxu1 }
 0x581   :  { %v9021_v30 = vadd.f32 %v8571_v1, %v4683_v23  ;;  %v4685_v62 = vpop.f32.mrb[5].mxu1 }
 0x582   :  { %v9024_v48 = vadd.f32 %v8571_v1, %v4685_v62 }
 0x583   :  { %v4898_v20 = vmin.f32 %v9021_v30, 0.0  ;;  %vm4874_vm0 = vcmp.gt.f32.partialorder %v9021_v30, 0.0 }
 0x584   :  { %v4899_v6 = vmin.f32 %v9024_v48, 0.0  ;;  %v4689_v61 = vpop.f32.mrb[6].mxu1  ;;  %vm4875_vm1 = vcmp.gt.f32.partialorder %v9024_v48, 0.0 }
 0x585   :  { %v4922_v10 = vmul.f32 1.442695, %v4898_v20  ;;  %v4852_v36 = vadd.f32 %v8578_v37, %v4689_v61  ;;  %v4691_v26 = vpop.f32.mrb[7].mxu1 }
 0x586   :  { %v4924_v50 = vmul.f32 1.442695, %v4899_v6  ;;  %v9030_v8 = vadd.f32 %v8578_v37, %v4691_v26 }
 0x587   :  { %6246 = vpow2.f32 %v4922_v10  ;;  %v4900_v60 = vmin.f32 %v4852_v36, 0.0  ;;  %vm4876_vm2 = vcmp.gt.f32.partialorder %v4852_v36, 0.0 }
 0x588   :  { %6248 = vpow2.f32 %v4924_v50  ;;  %v4901_v46 = vmin.f32 %v9030_v8, 0.0  ;;  %v4695_v1 = vpop.f32.mrb[8].mxu1  ;;  %vm4877_vm3 = vcmp.gt.f32.partialorder %v9030_v8, 0.0 }
 0x589   :  { %v4926_v51 = vmul.f32 1.442695, %v4900_v60  ;;  %v9034_v40 = vadd.f32 %v8581_v3, %v4695_v1  ;;  %v4697_v13 = vpop.f32.mrb[9].mxu1 }
 0x58a   :  { %v4928_v41 = vmul.f32 1.442695, %v4901_v46  ;;  %v9037_v5 = vadd.f32 %v8581_v3, %v4697_v13 }
 0x58b   :  { %6250 = vpow2.f32 %v4926_v51  ;;  %v4902_v12 = vmin.f32 %v9034_v40, 0.0  ;;  %vm4878_vm4 = vcmp.gt.f32.partialorder %v9034_v40, 0.0 }
 0x58c   :  { %6252 = vpow2.f32 %v4928_v41  ;;  %v4903_v37 = vmin.f32 %v9037_v5, 0.0  ;;  %v4701_v15 = vpop.f32.mrb[10].mxu1  ;;  %vm4879_vm5 = vcmp.gt.f32.partialorder %v9037_v5, 0.0 }
 0x58d   :  { %v4930_v25 = vmul.f32 1.442695, %v4902_v12  ;;  %v9042_v32 = vadd.f32 %v8594_v21, %v4701_v15  ;;  %v4703_v47 = vpop.f32.mrb[11].mxu1 }
 0x58e   :  { %v4932_v53 = vmul.f32 1.442695, %v4903_v37  ;;  %v9045_v16 = vadd.f32 %v8594_v21, %v4703_v47 }
 0x58f   :  { %6254 = vpow2.f32 %v4930_v25  ;;  %v4904_v3 = vmin.f32 %v9042_v32, 0.0  ;;  %vm4880_vm6 = vcmp.gt.f32.partialorder %v9042_v32, 0.0 }
 0x590   :  { %6256 = vpow2.f32 %v4932_v53  ;;  %v4905_v22 = vmin.f32 %v9045_v16, 0.0  ;;  %v4707_v49 = vpop.f32.mrb[12].mxu1  ;;  %vm4881_vm7 = vcmp.gt.f32.partialorder %v9045_v16, 0.0 }
 0x591   :  { %v6247_v19 = vpop.eup %6246  ;;  %v4934_v42 = vmul.f32 1.442695, %v4904_v3  ;;  %v9050_v54 = vadd.f32 %v8600_v31, %v4707_v49  ;;  %v4709_v35 = vpop.f32.mrb[13].mxu1 }
 0x592   :  { %v6249_v4 = vpop.eup %6248  ;;  %v4936_v14 = vmul.f32 1.442695, %v4905_v22  ;;  %v9053_v52 = vadd.f32 %v8600_v31, %v4709_v35  ;;  %v5580_v21 = vadd.f32 -1.0, %v6247_v19 }
 0x593   :  { %6258 = vpow2.f32 %v4934_v42  ;;  %v4906_v2 = vmin.f32 %v9050_v54, 0.0  ;;  %v5581_v24 = vadd.f32 -1.0, %v6249_v4  ;;  %vm4882_vm8 = vcmp.gt.f32.partialorder %v9050_v54, 0.0 }
 0x594   :  { %6260 = vpow2.f32 %v4936_v14  ;;  %v4907_v63 = vmin.f32 %v9053_v52, 0.0  ;;  %v4713_v11 = vpop.f32.mrb[14].mxu1  ;;  %v4994_v44 = vsel %vm4874_vm0, %v9021_v30, %v5580_v21  ;;  %vm4883_vm9 = vcmp.gt.f32.partialorder %v9053_v52, 0.0 }
 0x595   :  { %v6251_v0 = vpop.eup %6250  ;;  %v4938_v57 = vmul.f32 1.442695, %v4906_v2  ;;  %v9060_v18 = vadd.f32 %v8617_v7, %v4713_v11  ;;  %v4715_v31 = vpop.f32.mrb[15].mxu1  ;;  %v4995_v62 = vsel %vm4875_vm1, %v9024_v48, %v5581_v24 }
 0x596   :  { %v6253_v27 = vpop.eup %6252  ;;  %v5582_v55 = vadd.f32 -1.0, %v6251_v0  ;;  %v4940_v28 = vmul.f32 1.442695, %v4907_v63  ;;  %v9064_v39 = vadd.f32 %v8617_v7, %v4715_v31 }
 0x597   :  { %v5583_v56 = vadd.f32 -1.0, %v6253_v27  ;;  %6262 = vpow2.f32 %v4938_v57  ;;  %v4908_v38 = vmin.f32 %v9060_v18, 0.0  ;;  %vm4884_vm10 = vcmp.gt.f32.partialorder %v9060_v18, 0.0 }
 0x598   :  { %v4996_v9 = vsel %vm4876_vm2, %v4852_v36, %v5582_v55  ;;  %6264 = vpow2.f32 %v4940_v28  ;;  %v4909_v17 = vmin.f32 %v9064_v39, 0.0  ;;  %v4719_v23 = vpop.f32.mrb[16].mxu1  ;;  %vm4885_vm11 = vcmp.gt.f32.partialorder %v9064_v39, 0.0 }
 0x599   :  { %v6255_v20 = vpop.eup %6254  ;;  %v5780_v7 = vpack.c.bf16 %v4996_v9, %v4994_v44  ;;  %v4942_v6 = vmul.f32 1.442695, %v4908_v38  ;;  %v9075_v61 = vadd.f32 %v8620_v43, %v4719_v23  ;;  %v4721_v30 = vpop.f32.mrb[17].mxu1  ;;  %v4997_v10 = vsel %vm4877_vm3, %v9030_v8, %v5583_v56 }
 0x59a   :  { %v6257_v36 = vpop.eup %6256  ;;  %v4944_v26 = vmul.f32 1.442695, %v4909_v17  ;;  %v9081_v50 = vadd.f32 %v8620_v43, %v4721_v30  ;;  %v5778_v60 = vpack.c.bf16 %v4997_v10, %v4995_v62  ;;  %v5584_v46 = vadd.f32 -1.0, %v6255_v20 }
 0x59b   :  { %6266 = vpow2.f32 %v4942_v6  ;;  %v4910_v48 = vmin.f32 %v9075_v61, 0.0  ;;  %v5585_v1 = vadd.f32 -1.0, %v6257_v36  ;;  %vm4886_vm12 = vcmp.gt.f32.partialorder %v9075_v61, 0.0 }
 0x59c   :  { %6268 = vpow2.f32 %v4944_v26  ;;  %v4911_v51 = vmin.f32 %v9081_v50, 0.0  ;;  %v4725_v13 = vpop.f32.mrb[18].mxu1  ;;  %5779 = vmatprep.subr.bf16.mxu0 %v5778_v60  ;;  %v4998_v53 = vsel %vm4878_vm4, %v9034_v40, %v5584_v46  ;;  %vm4887_vm13 = vcmp.gt.f32.partialorder %v9081_v50, 0.0 }
 0x59d   :  { %v6259_v41 = vpop.eup %6258  ;;  %v4946_v43 = vmul.f32 1.442695, %v4910_v48  ;;  %v9089_v8 = vadd.f32 %v8637_v34, %v4725_v13  ;;  %v4727_v12 = vpop.f32.mrb[19].mxu1  ;;  %5781 = vmatpush1.bf16.msra.mxu0 %v5780_v7  ;;  %v4999_v35 = vsel %vm4879_vm5, %v9037_v5, %v5585_v1 }
 0x59e   :  { %v6261_v37 = vpop.eup %6260  ;;  %v5586_v15 = vadd.f32 -1.0, %v6259_v41  ;;  %v4948_v25 = vmul.f32 1.442695, %v4911_v51  ;;  %v9093_v47 = vadd.f32 %v8637_v34, %v4727_v12 }
 0x59f   :  { %v5587_v3 = vadd.f32 -1.0, %v6261_v37  ;;  %6270 = vpow2.f32 %v4946_v43  ;;  %v4912_v22 = vmin.f32 %v9089_v8, 0.0  ;;  %vm4888_vm14 = vcmp.gt.f32.partialorder %v9089_v8, 0.0 }
 0x5a0   :  { %v5000_v49 = vsel %vm4880_vm6, %v9042_v32, %v5586_v15  ;;  %6272 = vpow2.f32 %v4948_v25  ;;  %v4913_v19 = vmin.f32 %v9093_v47, 0.0  ;;  %v4731_v42 = vpop.f32.mrb[20].mxu1  ;;  %vm4889_vm0 = vcmp.gt.f32.partialorder %v9093_v47, 0.0 }
 0x5a1   :  { %v6263_v34 = vpop.eup %6262  ;;  %v5784_v4 = vpack.c.bf16 %v5000_v49, %v4998_v53  ;;  %v4950_v14 = vmul.f32 1.442695, %v4912_v22  ;;  %v9105_v21 = vadd.f32 %v8645_v45, %v4731_v42  ;;  %v4733_v40 = vpop.f32.mrb[21].mxu1  ;;  %v5001_v2 = vsel %vm4881_vm7, %v9045_v16, %v5587_v3 }
 0x5a2   :  { %v6265_v32 = vpop.eup %6264  ;;  %v4952_v24 = vmul.f32 1.442695, %v4913_v19  ;;  %v9111_v63 = vadd.f32 %v8645_v45, %v4733_v40  ;;  %v5782_v11 = vpack.c.bf16 %v5001_v2, %v4999_v35  ;;  %v5588_v0 = vadd.f32 -1.0, %v6263_v34 }
 0x5a3   :  { %6274 = vpow2.f32 %v4950_v14  ;;  %v4914_v5 = vmin.f32 %v9105_v21, 0.0  ;;  %v5589_v57 = vadd.f32 -1.0, %v6265_v32  ;;  %vm4890_vm1 = vcmp.gt.f32.partialorder %v9105_v21, 0.0 }
 0x5a4   :  { %6276 = vpow2.f32 %v4952_v24  ;;  %v4915_v31 = vmin.f32 %v9111_v63, 0.0  ;;  %v4737_v27 = vpop.f32.mrb[22].mxu1  ;;  %5783 = vmatprep.subr.bf16.mxu0 %v5782_v11  ;;  %v5002_v17 = vsel %vm4882_vm8, %v9050_v54, %v5588_v0  ;;  %vm4891_vm3 = vcmp.gt.f32.partialorder %v9111_v63, 0.0 }
 0x5a5   :  { %v6267_v55 = vpop.eup %6266  ;;  %v4954_v45 = vmul.f32 1.442695, %v4914_v5  ;;  %v9119_v16 = vadd.f32 %v8655_v33, %v4737_v27  ;;  %v4739_v28 = vpop.f32.mrb[23].mxu1  ;;  %5785 = vmatpush1.bf16.msra.mxu0 %v5784_v4  ;;  %v5003_v30 = vsel %vm4883_vm9, %v9053_v52, %v5589_v57 }
 0x5a6   :  { %v6269_v44 = vpop.eup %6268  ;;  %v5590_v56 = vadd.f32 -1.0, %v6267_v55  ;;  %v4956_v38 = vmul.f32 1.442695, %v4915_v31  ;;  %v9123_v9 = vadd.f32 %v8655_v33, %v4739_v28 }
 0x5a7   :  { %v5591_v23 = vadd.f32 -1.0, %v6269_v44  ;;  %6278 = vpow2.f32 %v4954_v45  ;;  %v4916_v62 = vmin.f32 %v9119_v16, 0.0  ;;  %vm4892_vm2 = vcmp.gt.f32.partialorder %v9119_v16, 0.0 }
 0x5a8   :  { %v5004_v20 = vsel %vm4884_vm10, %v9060_v18, %v5590_v56  ;;  %6280 = vpow2.f32 %v4956_v38  ;;  %v4917_v7 = vmin.f32 %v9123_v9, 0.0  ;;  %v4743_v6 = vpop.f32.mrb[24].mxu1  ;;  %vm4893_vm4 = vcmp.gt.f32.partialorder %v9123_v9, 0.0 }
 0x5a9   :  { %v6271_v33 = vpop.eup %6270  ;;  %v5788_v10 = vpack.c.bf16 %v5004_v20, %v5002_v17  ;;  %v4958_v36 = vmul.f32 1.442695, %v4916_v62  ;;  %v9135_v26 = vadd.f32 %v8662_v29, %v4743_v6  ;;  %v4745_v54 = vpop.f32.mrb[25].mxu1  ;;  %v5005_v60 = vsel %vm4885_vm11, %v9064_v39, %v5591_v23 }
 0x5aa   :  { %v6273_v18 = vpop.eup %6272  ;;  %v4960_v46 = vmul.f32 1.442695, %v4917_v7  ;;  %v9141_v48 = vadd.f32 %v8662_v29, %v4745_v54  ;;  %v5786_v1 = vpack.c.bf16 %v5005_v60, %v5003_v30  ;;  %v5592_v51 = vadd.f32 -1.0, %v6271_v33  ;;  %v5018_v30 = vld [vmem:[%s9197_s3] sm:$0xff]  ;;  %v5019_v33 = vld [vmem:[%s9197_s3 + $0x8] sm:$0x1] }
 0x5ab   :  { %6282 = vpow2.f32 %v4958_v36  ;;  %v4918_v52 = vmin.f32 %v9135_v26, 0.0  ;;  %v5593_v39 = vadd.f32 -1.0, %v6273_v18  ;;  %vm4894_vm5 = vcmp.gt.f32.partialorder %v9135_v26, 0.0  ;;  %v5030_v18 = vpop.permute.xlu0 %5029 }
 0x5ac   :  { %6284 = vpow2.f32 %v4960_v46  ;;  %v4919_v13 = vmin.f32 %v9141_v48, 0.0  ;;  %v4749_v41 = vpop.f32.mrb[26].mxu1  ;;  %5787 = vmatprep.subr.bf16.mxu0 %v5786_v1  ;;  %v5006_v19 = vsel %vm4886_vm12, %v9075_v61, %v5592_v51  ;;  %vm4895_vm7 = vcmp.gt.f32.partialorder %v9141_v48, 0.0 }
 0x5ad   :  { %v6275_v43 = vpop.eup %6274  ;;  %v4962_v12 = vmul.f32 1.442695, %v4918_v52  ;;  %v4872_v29 = vadd.f32 %v8678_v58, %v4749_v41  ;;  %v4751_v37 = vpop.f32.mrb[27].mxu1  ;;  %5789 = vmatpush1.bf16.msra.mxu0 %v5788_v10 }
 0x5ae   :  { %v6277_v15 = vpop.eup %6276  ;;  %v5594_v25 = vadd.f32 -1.0, %v6275_v43  ;;  %v4964_v53 = vmul.f32 1.442695, %v4919_v13  ;;  %v4873_v3 = vadd.f32 %v8678_v58, %v4751_v37  ;;  %v5007_v58 = vsel %vm4887_vm13, %v9081_v50, %v5593_v39  ;;  %v5025_v10 = vpop.permute.xlu1 %5024 }
 0x5af   :  { %v5595_v22 = vadd.f32 -1.0, %v6277_v15  ;;  %6286 = vpow2.f32 %v4962_v12  ;;  %v4920_v49 = vmin.f32 %v4872_v29, 0.0  ;;  %vm4896_vm6 = vcmp.gt.f32.partialorder %v4872_v29, 0.0 }
 0x5b0   :  { %v5008_v42 = vsel %vm4888_vm14, %v9089_v8, %v5594_v25  ;;  %6288 = vpow2.f32 %v4964_v53  ;;  %v4921_v35 = vmin.f32 %v4873_v3, 0.0  ;;  %vm4897_vm8 = vcmp.gt.f32.partialorder %v4873_v3, 0.0 }
 0x5b1   :  { %v6279_v34 = vpop.eup %6278  ;;  %v5792_v4 = vpack.c.bf16 %v5008_v42, %v5006_v19  ;;  %v4966_v14 = vmul.f32 1.442695, %v4920_v49  ;;  %v5009_v40 = vsel %vm4889_vm0, %v9093_v47, %v5595_v22 }
 0x5b2   :  { %v6281_v2 = vpop.eup %6280  ;;  %v4968_v32 = vmul.f32 1.442695, %v4921_v35  ;;  %v5790_v24 = vpack.c.bf16 %v5009_v40, %v5007_v58  ;;  %v5596_v11 = vadd.f32 -1.0, %v6279_v34 }
 0x5b3   :  { %6290 = vpow2.f32 %v4966_v14  ;;  %v5597_v8 = vadd.f32 -1.0, %v6281_v2 }
 0x5b4   :  { %6292 = vpow2.f32 %v4968_v32  ;;  %5791 = vmatprep.subr.bf16.mxu0 %v5790_v24  ;;  %v5010_v50 = vsel %vm4890_vm1, %v9105_v21, %v5596_v11 }
 0x5b5   :  { %v6283_v61 = vpop.eup %6282  ;;  %5793 = vmatpush1.bf16.msra.mxu0 %v5792_v4  ;;  %v5011_v55 = vsel %vm4891_vm3, %v9111_v63, %v5597_v8 }
 0x5b6   :  { %v6285_v0 = vpop.eup %6284  ;;  %v5598_v5 = vadd.f32 -1.0, %v6283_v61 }
 0x5b7   :  { %v5599_v57 = vadd.f32 -1.0, %v6285_v0 }
 0x5b8   :  { %v5012_v47 = vsel %vm4892_vm2, %v9119_v16, %v5598_v5 }
 0x5b9   :  { %v6287_v31 = vpop.eup %6286  ;;  %v5796_v27 = vpack.c.bf16 %v5012_v47, %v5010_v50  ;;  %v5013_v45 = vsel %vm4893_vm4, %v9123_v9, %v5599_v57 }
 0x5ba   :  { %v6289_v28 = vpop.eup %6288  ;;  %v5794_v44 = vpack.c.bf16 %v5013_v45, %v5011_v55  ;;  %v5600_v56 = vadd.f32 -1.0, %v6287_v31 }
 0x5bb   :  { %v5601_v17 = vadd.f32 -1.0, %v6289_v28 }
 0x5bc   :  { %5795 = vmatprep.subr.bf16.mxu0 %v5794_v44  ;;  %v5014_v62 = vsel %vm4894_vm5, %v9135_v26, %v5600_v56 }
 0x5bd   :  { %v6291_v38 = vpop.eup %6290  ;;  %5797 = vmatpush1.bf16.msra.mxu0 %v5796_v27  ;;  %v5015_v20 = vsel %vm4895_vm7, %v9141_v48, %v5601_v17 }
 0x5be   :  { %v6293_v21 = vpop.eup %6292  ;;  %v5602_v23 = vadd.f32 -1.0, %v6291_v38 }
 0x5bf   :  { %v5603_v16 = vadd.f32 -1.0, %v6293_v21 }
 0x5c0   :  { %v5016_v63 = vsel %vm4896_vm6, %v4872_v29, %v5602_v23 }
 0x5c1   :  { %v5800_v9 = vpack.c.bf16 %v5016_v63, %v5014_v62  ;;  %v5017_v7 = vsel %vm4897_vm8, %v4873_v3, %v5603_v16 }
 0x5c2   :  { %v5798_v6 = vpack.c.bf16 %v5017_v7, %v5015_v20 }
 0x5c4   :  { %5799 = vmatprep.subr.bf16.mxu0 %v5798_v6 }
 0x5c5   :  { %5801 = vmatpush1.bf16.msra.mxu0 %v5800_v9 }
 0x5c8   :  { %5604 = vmatmul.mubr.msk.f32.vlgmr.msra.gmra.mrb[24].mxu0 %vm2496_vm15, %v5018_v30 }
 0x5c9   :  { %5108 = vmatprep.mubr.f32.mxu0 %v9259_v59 }
 0x5cc   :  { %5605 = vmatmul.mubr.msk.f32.gmra.mrb[26].mxu0 %vm2496_vm15, %v5019_v33 }
 0x69b   :  { %v5104_v36 = vpop.f32.mrb[24].mxu0 }
 0x69c   :  { %v5105_v26 = vadd.f32 %v5104_v36, %v5025_v10  ;;  %v5106_v54 = vpop.f32.mrb[25].mxu0 }
 0x69d   :  { %v5107_v60 = vadd.f32 %v5106_v54, %v5025_v10 }
 0x69e   :  { %5606 = vst [vmem:[%s9198_s6 + $0x20] sm:$0xff] %v5105_v26 }
 0x69f   :  { %5607 = vst [vmem:[%s9198_s6 + $0x28] sm:$0xff] %v5107_v60  ;;  %v5110_v59 = vpop.f32.mrb[26].mxu0 }
 0x6a0   :  { %v5111_v46 = vadd.f32 %v5110_v59, %v5030_v18  ;;  %v5112_v48 = vpop.f32.mrb[27].mxu0 }
 0x6a1   :  { %v5113_v1 = vadd.f32 %v5112_v48, %v5030_v18 }
 0x6a2   :  { %5608 = vst [vmem:[%s9198_s6 + $0x30] sm:$0x1] %v5111_v46 }
 0x6a3   :  { %5609 = vst [vmem:[%s9198_s6 + $0x38] sm:$0x1] %v5113_v1 }

</bundles_post_ra>
